<compile_context>
chip_gen: v5e
topology: v5e:2x2
jax: 0.10.0
libtpu: 0.0.40
codegen_flags: <defaults>
</compile_context>

<pallas_src>
import jax
import jax.numpy as jnp
from jax import lax
from jax.experimental import pallas as pl
from jax.experimental.pallas import tpu as pltpu

NUM_CLASSES = 10
C1 = 12                 # channels after conv1 / conv2 / conv3
K = 5                   # conv kernel size
H2 = 7                  # spatial side after conv2 / conv3
NPIX2 = H2 * H2         # 49
NPHASE_PIX = 4 * NPIX2  # 196 = conv1 output pixels (14x14) in phase-major order
FC1_IN = C1 * NPIX2     # 588
FC1_OUT = 100


def _stride2_tap(d):
    """Decompose a 5x5 / stride-2 / pad-2 tap offset d into (source phase, in-phase shift)."""
    if d % 2 == 0:
        return 0, d // 2 - 1
    return 1, (d - 3) // 2


def _lenet_kernel(slab1_ref, colmask_ref,
                  w1_ref, b1_ref, w2_ref, b2_ref, w3_ref, b3_ref,
                  wfc1_ref, bfc1_ref, wfc2_ref, bfc2_ref,
                  out_ref,
                  pbuf_ref, qbuf_ref, slab2_ref, slab3_ref, fbuf_ref):
    f32 = jnp.float32

    # ---- conv1 (5x5, stride 2): single (12,25)@(25,196) matmul + bias + sigmoid.
    # slab1 columns are conv1 output pixels ordered (row parity, col parity, 7, 7).
    out1 = jnp.dot(w1_ref[...], slab1_ref[0], preferred_element_type=f32)   # (12, 196)
    out1 = jax.nn.sigmoid(out1 + b1_ref[...])

    # ---- conv2 (5x5, stride 2) as one K=300 matmul over an in-VMEM im2col slab.
    # Write the 4 phase grids into a zero-flanked buffer (only flanks re-zeroed each step).
    pbuf_ref[:, :, 0:8] = jnp.zeros((4, C1, 8), f32)
    pbuf_ref[:, :, 57:65] = jnp.zeros((4, C1, 8), f32)
    for ph in range(4):
        pbuf_ref[ph, :, 8:57] = out1[:, ph * NPIX2:(ph + 1) * NPIX2]

    for dh in range(K):
        pr, ri = _stride2_tap(dh)
        for dw in range(K):
            pc, ci = _stride2_tap(dw)
            start = 8 + 7 * ri + ci
            win = pbuf_ref[pr * 2 + pc, :, start:start + NPIX2]             # (12, 49)
            if ci != 0:
                win = win * colmask_ref[ci + 2]     # zero columns that wrapped across rows
            t = dh * K + dw
            slab2_ref[t * C1:(t + 1) * C1, :] = win

    out2 = jnp.dot(w2_ref[...], slab2_ref[...], preferred_element_type=f32)  # (12, 49)
    out2 = jax.nn.sigmoid(out2 + b2_ref[...])

    # ---- conv3 (5x5, stride 1): same trick, zero flanks of 16 absorb row out-of-bounds.
    qbuf_ref[:, 0:16] = jnp.zeros((C1, 16), f32)
    qbuf_ref[:, 65:81] = jnp.zeros((C1, 16), f32)
    qbuf_ref[:, 16:65] = out2

    for dh in range(K):
        for dw in range(K):
            start = 16 + 7 * (dh - 2) + (dw - 2)
            win = qbuf_ref[:, start:start + NPIX2]                          # (12, 49)
            if dw != 2:
                win = win * colmask_ref[dw]                                 # ci = dw - 2
            t = dh * K + dw
            slab3_ref[t * C1:(t + 1) * C1, :] = win

    out3 = jnp.dot(w3_ref[...], slab3_ref[...], preferred_element_type=f32)  # (12, 49)
    out3 = jax.nn.sigmoid(out3 + b3_ref[...])

    # ---- flatten in PyTorch (C, H, W) order into a single lane-dense row, then the MLP.
    for c in range(C1):
        fbuf_ref[:, c * NPIX2:(c + 1) * NPIX2] = out3[c:c + 1, :]
    flat = fbuf_ref[...]                                                    # (1, 588)

    h = jax.nn.sigmoid(jnp.dot(flat, wfc1_ref[...],
                               preferred_element_type=f32) + bfc1_ref[...])  # (1, 100)
    logits = jnp.dot(h, wfc2_ref[...], preferred_element_type=f32) + bfc2_ref[...]
    out_ref[0] = logits                                                     # (1, num_classes)


def _conv1_im2col(x):
    """(N,1,28,28) -> (N, 25, 196) im2col slab for conv1 (5x5, stride 2, pad 2).

    Output pixels are enumerated phase-major (row parity, col parity, 7, 7) so the
    in-kernel stride-2 conv2 only needs unit-stride windows of each phase grid.
    """
    N = x.shape[0]
    xpad = jnp.pad(x[:, 0], ((0, 0), (2, 2), (2, 2)))                       # (N, 32, 32)
    taps = []
    for dh in range(K):
        for dw in range(K):
            w = lax.slice(xpad, (0, dh, dw), (N, dh + 28, dw + 28), (1, 2, 2))  # (N,14,14)
            w = w.reshape(N, 7, 2, 7, 2)                                    # (n, i, pr, j, pc)
            w = jnp.transpose(w, (0, 2, 4, 1, 3)).reshape(N, NPHASE_PIX)    # (n, pr,pc,i,j)
            taps.append(w)
    return jnp.stack(taps, axis=1)                                          # (N, 25, 196)


def _const_spec(a):
    nd = a.ndim
    return pl.BlockSpec(a.shape, lambda n, _nd=nd: (0,) * _nd)


def lenet_smooth_forward(x, prm):
    """x: (N, 1, 28, 28) float32 -> logits (N, num_classes)."""
    N = x.shape[0]
    slab1 = _conv1_im2col(x.astype(jnp.float32))

    args = (slab1, prm["colmask"],
            prm["w1"], prm["b1"], prm["w2"], prm["b2"], prm["w3"], prm["b3"],
            prm["wfc1"], prm["bfc1"], prm["wfc2"], prm["bfc2"])

    in_specs = [pl.BlockSpec((1, K * K, NPHASE_PIX), lambda n: (n, 0, 0))]
    in_specs += [_const_spec(a) for a in args[1:]]

    out = pl.pallas_call(
        _lenet_kernel,
        out_shape=jax.ShapeDtypeStruct((N, 1, NUM_CLASSES), jnp.float32),
        grid=(N,),
        in_specs=in_specs,
        out_specs=pl.BlockSpec((1, 1, NUM_CLASSES), lambda n: (n, 0, 0)),
        scratch_shapes=[
            pltpu.VMEM((4, C1, 65), jnp.float32),        # conv2 phase grids, zero-flanked
            pltpu.VMEM((C1, 81), jnp.float32),           # conv3 source, zero-flanked
            pltpu.VMEM((K * K * C1, NPIX2), jnp.float32),  # conv2 im2col slab (300, 49)
            pltpu.VMEM((K * K * C1, NPIX2), jnp.float32),  # conv3 im2col slab (300, 49)
            pltpu.VMEM((1, FC1_IN), jnp.float32),        # flattened features (1, 588)
        ],
        compiler_params=pltpu.CompilerParams(dimension_semantics=("parallel",)),
    )(*args)
    return out[:, 0, :]


def init_torch_params(key, num_classes=NUM_CLASSES):
    """Deterministic synthetic parameters in PyTorch layouts (O,I,kH,kW / out,in)."""
    ks = jax.random.split(key, 10)

    def uni(k, shape, fan_in):
        b = 1.0 / jnp.sqrt(float(fan_in))
        return jax.random.uniform(k, shape, jnp.float32, -b, b)

    return {
        "conv1_w": uni(ks[0], (C1, 1, K, K), K * K),
        "conv1_b": uni(ks[1], (C1,), K * K),
        "conv2_w": uni(ks[2], (C1, C1, K, K), C1 * K * K),
        "conv2_b": uni(ks[3], (C1,), C1 * K * K),
        "conv3_w": uni(ks[4], (C1, C1, K, K), C1 * K * K),
        "conv3_b": uni(ks[5], (C1,), C1 * K * K),
        "fc1_w": uni(ks[6], (FC1_OUT, FC1_IN), FC1_IN),
        "fc1_b": uni(ks[7], (FC1_OUT,), FC1_IN),
        "fc2_w": uni(ks[8], (num_classes, FC1_OUT), FC1_OUT),
        "fc2_b": uni(ks[9], (num_classes,), FC1_OUT),
    }


def prepare_kernel_params(tp):
    """PyTorch-layout params -> lane-dense kernel layouts (done once, outside the kernel)."""
    prm = {
        "w1": tp["conv1_w"].reshape(C1, K * K),                                       # (12, 25)
        "b1": tp["conv1_b"].reshape(C1, 1),
        "w2": jnp.transpose(tp["conv2_w"], (0, 2, 3, 1)).reshape(C1, K * K * C1),     # (12, 300)
        "b2": tp["conv2_b"].reshape(C1, 1),
        "w3": jnp.transpose(tp["conv3_w"], (0, 2, 3, 1)).reshape(C1, K * K * C1),     # (12, 300)
        "b3": tp["conv3_b"].reshape(C1, 1),
        "wfc1": tp["fc1_w"].T,                                                        # (588, 100)
        "bfc1": tp["fc1_b"].reshape(1, FC1_OUT),
        "wfc2": tp["fc2_w"].T,                                                        # (100, 10)
        "bfc2": tp["fc2_b"].reshape(1, -1),
    }
    # colmask[ci+2, 0, q] = 1 iff the column shift ci keeps (q % 7) + ci inside [0, 6].
    b_idx = jnp.arange(NPIX2) % H2
    masks = [((b_idx + ci >= 0) & (b_idx + ci <= H2 - 1)).astype(jnp.float32)
             for ci in range(-2, 3)]
    prm["colmask"] = jnp.stack(masks, axis=0).reshape(5, 1, NPIX2)
    return prm


def reference_forward(x, tp):
    """Pure-JAX reference (lax.conv at HIGHEST precision) for correctness checking."""
    hp = lax.Precision.HIGHEST

    def conv(h, w, b, stride):
        out = lax.conv_general_dilated(
            h, w, window_strides=(stride, stride), padding=((2, 2), (2, 2)),
            dimension_numbers=("NCHW", "OIHW", "NCHW"), precision=hp)
        return out + b.reshape(1, -1, 1, 1)

    h = jax.nn.sigmoid(conv(x, tp["conv1_w"], tp["conv1_b"], 2))
    h = jax.nn.sigmoid(conv(h, tp["conv2_w"], tp["conv2_b"], 2))
    h = jax.nn.sigmoid(conv(h, tp["conv3_w"], tp["conv3_b"], 1))
    h = h.reshape(h.shape[0], -1)                                   # NCHW flatten order
    h = jax.nn.sigmoid(jnp.dot(h, tp["fc1_w"].T, precision=hp) + tp["fc1_b"])
    return jnp.dot(h, tp["fc2_w"].T, precision=hp) + tp["fc2_b"]


if __name__ == "__main__":
    key = jax.random.PRNGKey(0)
    kx, kp = jax.random.split(key)

    N = 2
    x = jax.random.normal(kx, (N, 1, 28, 28), jnp.float32)
    torch_params = init_torch_params(kp)
    kernel_params = prepare_kernel_params(torch_params)

    out = jax.block_until_ready(lenet_smooth_forward(x, kernel_params))
    ref = reference_forward(x, torch_params)

    assert out.shape == (N, NUM_CLASSES), out.shape
    max_err = float(jnp.max(jnp.abs(out - ref)))
    assert max_err < 2e-3, f"mismatch vs reference: {max_err}"

    print("KERNEL_OK")
</pallas_src>

<mosaic_0001>
module attributes {stable_mosaic.version = 11 : i64} {
  func.func @_lenet_kernel(%arg0: i32, %arg1: memref<1x25x196xf32, #tpu.memory_space<vmem>>, %arg2: memref<5x1x49xf32, #tpu.memory_space<vmem>>, %arg3: memref<12x25xf32, #tpu.memory_space<vmem>>, %arg4: memref<12x1xf32, #tpu.memory_space<vmem>>, %arg5: memref<12x300xf32, #tpu.memory_space<vmem>>, %arg6: memref<12x1xf32, #tpu.memory_space<vmem>>, %arg7: memref<12x300xf32, #tpu.memory_space<vmem>>, %arg8: memref<12x1xf32, #tpu.memory_space<vmem>>, %arg9: memref<588x100xf32, #tpu.memory_space<vmem>>, %arg10: memref<1x100xf32, #tpu.memory_space<vmem>>, %arg11: memref<100x10xf32, #tpu.memory_space<vmem>>, %arg12: memref<1x10xf32, #tpu.memory_space<vmem>>, %arg13: memref<1x1x10xf32, #tpu.memory_space<vmem>>, %arg14: memref<4x12x65xf32, #tpu.memory_space<vmem>>, %arg15: memref<12x81xf32, #tpu.memory_space<vmem>>, %arg16: memref<300x49xf32, #tpu.memory_space<vmem>>, %arg17: memref<300x49xf32, #tpu.memory_space<vmem>>, %arg18: memref<1x588xf32, #tpu.memory_space<vmem>>) attributes {dimension_semantics = [#tpu.dimension_semantics<parallel>], iteration_bounds = array<i64: 2>, scalar_prefetch = 0 : i64, scratch_operands = 5 : i64, tpu.core_type = #tpu.core_type<tc>, window_params = [{transform_indices = @transform_0, window_bounds = array<i64: 1, 25, 196>}, {pipeline_mode = #tpu.pipeline_mode<synchronous>, transform_indices = @transform_1, window_bounds = array<i64: 5, 1, 49>}, {pipeline_mode = #tpu.pipeline_mode<synchronous>, transform_indices = @transform_2, window_bounds = array<i64: 12, 25>}, {pipeline_mode = #tpu.pipeline_mode<synchronous>, transform_indices = @transform_3, window_bounds = array<i64: 12, 1>}, {pipeline_mode = #tpu.pipeline_mode<synchronous>, transform_indices = @transform_4, window_bounds = array<i64: 12, 300>}, {pipeline_mode = #tpu.pipeline_mode<synchronous>, transform_indices = @transform_5, window_bounds = array<i64: 12, 1>}, {pipeline_mode = #tpu.pipeline_mode<synchronous>, transform_indices = @transform_6, window_bounds = array<i64: 12, 300>}, {pipeline_mode = #tpu.pipeline_mode<synchronous>, transform_indices = @transform_7, window_bounds = array<i64: 12, 1>}, {pipeline_mode = #tpu.pipeline_mode<synchronous>, transform_indices = @transform_8, window_bounds = array<i64: 588, 100>}, {pipeline_mode = #tpu.pipeline_mode<synchronous>, transform_indices = @transform_9, window_bounds = array<i64: 1, 100>}, {pipeline_mode = #tpu.pipeline_mode<synchronous>, transform_indices = @transform_10, window_bounds = array<i64: 100, 10>}, {pipeline_mode = #tpu.pipeline_mode<synchronous>, transform_indices = @transform_11, window_bounds = array<i64: 1, 10>}, {transform_indices = @transform_12, window_bounds = array<i64: 1, 1, 10>}]} {
    %c0 = arith.constant 0 : index
    %c0_0 = arith.constant 0 : index
    %0 = vector.load %arg3[%c0, %c0_0] : memref<12x25xf32, #tpu.memory_space<vmem>>, vector<12x25xf32>
    %c0_1 = arith.constant 0 : index
    %c0_2 = arith.constant 0 : index
    %c0_3 = arith.constant 0 : index
    %1 = vector.load %arg1[%c0_1, %c0_2, %c0_3] : memref<1x25x196xf32, #tpu.memory_space<vmem>>, vector<1x25x196xf32>
    %2 = vector.shape_cast %1 : vector<1x25x196xf32> to vector<25x196xf32>
    %cst = arith.constant dense<0.000000e+00> : vector<12x196xf32>
    %3 = tpu.matmul %0, %2, %cst {dimension_numbers = #tpu.dot_dimension_numbers<[1], [0], [0], [1], [0, 0, 1, 1], [], []>} : vector<12x25xf32>, vector<25x196xf32>, vector<12x196xf32> -> vector<12x196xf32>
    %c0_4 = arith.constant 0 : index
    %c0_5 = arith.constant 0 : index
    %4 = vector.load %arg4[%c0_4, %c0_5] : memref<12x1xf32, #tpu.memory_space<vmem>>, vector<12x1xf32>
    %5 = vector.broadcast %4 : vector<12x1xf32> to vector<12x196xf32>
    %6 = arith.addf %3, %5 : vector<12x196xf32>
    %7 = arith.negf %6 : vector<12x196xf32>
    %8 = math.exp %7 : vector<12x196xf32>
    %cst_6 = arith.constant 1.000000e+00 : f32
    %9 = vector.broadcast %cst_6 : f32 to vector<12x196xf32>
    %10 = arith.addf %9, %8 : vector<12x196xf32>
    %11 = arith.divf %9, %10 : vector<12x196xf32>
    %cst_7 = arith.constant 0.000000e+00 : f32
    %12 = vector.broadcast %cst_7 : f32 to vector<4x12x8xf32>
    %c0_8 = arith.constant 0 : index
    %c0_9 = arith.constant 0 : index
    %c0_10 = arith.constant 0 : index
    %13 = vector.load %arg14[%c0_8, %c0_9, %c0_10] : memref<4x12x65xf32, #tpu.memory_space<vmem>>, vector<4x12x8xf32>
    tpu.vector_store %arg14[%c0_8, %c0_9, %c0_10], %12 {strides = array<i32>} : memref<4x12x65xf32, #tpu.memory_space<vmem>>, vector<4x12x8xf32>,
    %cst_11 = arith.constant 0.000000e+00 : f32
    %14 = vector.broadcast %cst_11 : f32 to vector<4x12x8xf32>
    %c0_12 = arith.constant 0 : index
    %c0_13 = arith.constant 0 : index
    %c57 = arith.constant 57 : index
    %15 = vector.load %arg14[%c0_12, %c0_13, %c57] : memref<4x12x65xf32, #tpu.memory_space<vmem>>, vector<4x12x8xf32>
    tpu.vector_store %arg14[%c0_12, %c0_13, %c57], %14 {strides = array<i32>} : memref<4x12x65xf32, #tpu.memory_space<vmem>>, vector<4x12x8xf32>,
    %16 = vector.extract_strided_slice %11 {offsets = [0, 0], sizes = [12, 49], strides = [1, 1]} : vector<12x196xf32> to vector<12x49xf32>
    %c0_14 = arith.constant 0 : index
    %c0_15 = arith.constant 0 : index
    %c8 = arith.constant 8 : index
    %17 = vector.load %arg14[%c0_14, %c0_15, %c8] : memref<4x12x65xf32, #tpu.memory_space<vmem>>, vector<1x12x49xf32>
    %18 = vector.shape_cast %17 : vector<1x12x49xf32> to vector<12x49xf32>
    %19 = vector.shape_cast %16 : vector<12x49xf32> to vector<1x12x49xf32>
    tpu.vector_store %arg14[%c0_14, %c0_15, %c8], %19 {strides = array<i32>} : memref<4x12x65xf32, #tpu.memory_space<vmem>>, vector<1x12x49xf32>,
    %20 = vector.extract_strided_slice %11 {offsets = [0, 49], sizes = [12, 49], strides = [1, 1]} : vector<12x196xf32> to vector<12x49xf32>
    %c1 = arith.constant 1 : index
    %c0_16 = arith.constant 0 : index
    %c8_17 = arith.constant 8 : index
    %21 = vector.load %arg14[%c1, %c0_16, %c8_17] : memref<4x12x65xf32, #tpu.memory_space<vmem>>, vector<1x12x49xf32>
    %22 = vector.shape_cast %21 : vector<1x12x49xf32> to vector<12x49xf32>
    %23 = vector.shape_cast %20 : vector<12x49xf32> to vector<1x12x49xf32>
    tpu.vector_store %arg14[%c1, %c0_16, %c8_17], %23 {strides = array<i32>} : memref<4x12x65xf32, #tpu.memory_space<vmem>>, vector<1x12x49xf32>,
    %24 = vector.extract_strided_slice %11 {offsets = [0, 98], sizes = [12, 49], strides = [1, 1]} : vector<12x196xf32> to vector<12x49xf32>
    %c2 = arith.constant 2 : index
    %c0_18 = arith.constant 0 : index
    %c8_19 = arith.constant 8 : index
    %25 = vector.load %arg14[%c2, %c0_18, %c8_19] : memref<4x12x65xf32, #tpu.memory_space<vmem>>, vector<1x12x49xf32>
    %26 = vector.shape_cast %25 : vector<1x12x49xf32> to vector<12x49xf32>
    %27 = vector.shape_cast %24 : vector<12x49xf32> to vector<1x12x49xf32>
    tpu.vector_store %arg14[%c2, %c0_18, %c8_19], %27 {strides = array<i32>} : memref<4x12x65xf32, #tpu.memory_space<vmem>>, vector<1x12x49xf32>,
    %28 = vector.extract_strided_slice %11 {offsets = [0, 147], sizes = [12, 49], strides = [1, 1]} : vector<12x196xf32> to vector<12x49xf32>
    %c3 = arith.constant 3 : index
    %c0_20 = arith.constant 0 : index
    %c8_21 = arith.constant 8 : index
    %29 = vector.load %arg14[%c3, %c0_20, %c8_21] : memref<4x12x65xf32, #tpu.memory_space<vmem>>, vector<1x12x49xf32>
    %30 = vector.shape_cast %29 : vector<1x12x49xf32> to vector<12x49xf32>
    %31 = vector.shape_cast %28 : vector<12x49xf32> to vector<1x12x49xf32>
    tpu.vector_store %arg14[%c3, %c0_20, %c8_21], %31 {strides = array<i32>} : memref<4x12x65xf32, #tpu.memory_space<vmem>>, vector<1x12x49xf32>,
    %c0_22 = arith.constant 0 : index
    %c0_23 = arith.constant 0 : index
    %c0_24 = arith.constant 0 : index
    %32 = vector.load %arg14[%c0_22, %c0_23, %c0_24] : memref<4x12x65xf32, #tpu.memory_space<vmem>>, vector<1x12x49xf32>
    %33 = vector.shape_cast %32 : vector<1x12x49xf32> to vector<12x49xf32>
    %c1_25 = arith.constant 1 : index
    %c0_26 = arith.constant 0 : index
    %c0_27 = arith.constant 0 : index
    %34 = vector.load %arg2[%c1_25, %c0_26, %c0_27] : memref<5x1x49xf32, #tpu.memory_space<vmem>>, vector<1x1x49xf32>
    %35 = vector.shape_cast %34 : vector<1x1x49xf32> to vector<1x49xf32>
    %36 = vector.broadcast %35 : vector<1x49xf32> to vector<12x49xf32>
    %37 = arith.mulf %33, %36 : vector<12x49xf32>
    %c0_28 = arith.constant 0 : index
    %c0_29 = arith.constant 0 : index
    %38 = vector.load %arg16[%c0_28, %c0_29] : memref<300x49xf32, #tpu.memory_space<vmem>>, vector<12x49xf32>
    tpu.vector_store %arg16[%c0_28, %c0_29], %37 {strides = array<i32>} : memref<300x49xf32, #tpu.memory_space<vmem>>, vector<12x49xf32>,
    %c1_30 = arith.constant 1 : index
    %c0_31 = arith.constant 0 : index
    %c0_32 = arith.constant 0 : index
    %39 = vector.load %arg14[%c1_30, %c0_31, %c0_32] : memref<4x12x65xf32, #tpu.memory_space<vmem>>, vector<1x12x49xf32>
    %40 = vector.shape_cast %39 : vector<1x12x49xf32> to vector<12x49xf32>
    %c1_33 = arith.constant 1 : index
    %c0_34 = arith.constant 0 : index
    %c0_35 = arith.constant 0 : index
    %41 = vector.load %arg2[%c1_33, %c0_34, %c0_35] : memref<5x1x49xf32, #tpu.memory_space<vmem>>, vector<1x1x49xf32>
    %42 = vector.shape_cast %41 : vector<1x1x49xf32> to vector<1x49xf32>
    %43 = vector.broadcast %42 : vector<1x49xf32> to vector<12x49xf32>
    %44 = arith.mulf %40, %43 : vector<12x49xf32>
    %c12 = arith.constant 12 : index
    %c0_36 = arith.constant 0 : index
    %45 = vector.load %arg16[%c12, %c0_36] : memref<300x49xf32, #tpu.memory_space<vmem>>, vector<12x49xf32>
    tpu.vector_store %arg16[%c12, %c0_36], %44 {strides = array<i32>} : memref<300x49xf32, #tpu.memory_space<vmem>>, vector<12x49xf32>,
    %c0_37 = arith.constant 0 : index
    %c0_38 = arith.constant 0 : index
    %c1_39 = arith.constant 1 : index
    %46 = vector.load %arg14[%c0_37, %c0_38, %c1_39] : memref<4x12x65xf32, #tpu.memory_space<vmem>>, vector<1x12x49xf32>
    %47 = vector.shape_cast %46 : vector<1x12x49xf32> to vector<12x49xf32>
    %c24 = arith.constant 24 : index
    %c0_40 = arith.constant 0 : index
    %48 = vector.load %arg16[%c24, %c0_40] : memref<300x49xf32, #tpu.memory_space<vmem>>, vector<12x49xf32>
    tpu.vector_store %arg16[%c24, %c0_40], %47 {strides = array<i32>} : memref<300x49xf32, #tpu.memory_space<vmem>>, vector<12x49xf32>,
    %c1_41 = arith.constant 1 : index
    %c0_42 = arith.constant 0 : index
    %c1_43 = arith.constant 1 : index
    %49 = vector.load %arg14[%c1_41, %c0_42, %c1_43] : memref<4x12x65xf32, #tpu.memory_space<vmem>>, vector<1x12x49xf32>
    %50 = vector.shape_cast %49 : vector<1x12x49xf32> to vector<12x49xf32>
    %c36 = arith.constant 36 : index
    %c0_44 = arith.constant 0 : index
    %51 = vector.load %arg16[%c36, %c0_44] : memref<300x49xf32, #tpu.memory_space<vmem>>, vector<12x49xf32>
    tpu.vector_store %arg16[%c36, %c0_44], %50 {strides = array<i32>} : memref<300x49xf32, #tpu.memory_space<vmem>>, vector<12x49xf32>,
    %c0_45 = arith.constant 0 : index
    %c0_46 = arith.constant 0 : index
    %c2_47 = arith.constant 2 : index
    %52 = vector.load %arg14[%c0_45, %c0_46, %c2_47] : memref<4x12x65xf32, #tpu.memory_space<vmem>>, vector<1x12x49xf32>
    %53 = vector.shape_cast %52 : vector<1x12x49xf32> to vector<12x49xf32>
    %c3_48 = arith.constant 3 : index
    %c0_49 = arith.constant 0 : index
    %c0_50 = arith.constant 0 : index
    %54 = vector.load %arg2[%c3_48, %c0_49, %c0_50] : memref<5x1x49xf32, #tpu.memory_space<vmem>>, vector<1x1x49xf32>
    %55 = vector.shape_cast %54 : vector<1x1x49xf32> to vector<1x49xf32>
    %56 = vector.broadcast %55 : vector<1x49xf32> to vector<12x49xf32>
    %57 = arith.mulf %53, %56 : vector<12x49xf32>
    %c48 = arith.constant 48 : index
    %c0_51 = arith.constant 0 : index
    %58 = vector.load %arg16[%c48, %c0_51] : memref<300x49xf32, #tpu.memory_space<vmem>>, vector<12x49xf32>
    tpu.vector_store %arg16[%c48, %c0_51], %57 {strides = array<i32>} : memref<300x49xf32, #tpu.memory_space<vmem>>, vector<12x49xf32>,
    %c2_52 = arith.constant 2 : index
    %c0_53 = arith.constant 0 : index
    %c0_54 = arith.constant 0 : index
    %59 = vector.load %arg14[%c2_52, %c0_53, %c0_54] : memref<4x12x65xf32, #tpu.memory_space<vmem>>, vector<1x12x49xf32>
    %60 = vector.shape_cast %59 : vector<1x12x49xf32> to vector<12x49xf32>
    %c1_55 = arith.constant 1 : index
    %c0_56 = arith.constant 0 : index
    %c0_57 = arith.constant 0 : index
    %61 = vector.load %arg2[%c1_55, %c0_56, %c0_57] : memref<5x1x49xf32, #tpu.memory_space<vmem>>, vector<1x1x49xf32>
    %62 = vector.shape_cast %61 : vector<1x1x49xf32> to vector<1x49xf32>
    %63 = vector.broadcast %62 : vector<1x49xf32> to vector<12x49xf32>
    %64 = arith.mulf %60, %63 : vector<12x49xf32>
    %c60 = arith.constant 60 : index
    %c0_58 = arith.constant 0 : index
    %65 = vector.load %arg16[%c60, %c0_58] : memref<300x49xf32, #tpu.memory_space<vmem>>, vector<12x49xf32>
    tpu.vector_store %arg16[%c60, %c0_58], %64 {strides = array<i32>} : memref<300x49xf32, #tpu.memory_space<vmem>>, vector<12x49xf32>,
    %c3_59 = arith.constant 3 : index
    %c0_60 = arith.constant 0 : index
    %c0_61 = arith.constant 0 : index
    %66 = vector.load %arg14[%c3_59, %c0_60, %c0_61] : memref<4x12x65xf32, #tpu.memory_space<vmem>>, vector<1x12x49xf32>
    %67 = vector.shape_cast %66 : vector<1x12x49xf32> to vector<12x49xf32>
    %c1_62 = arith.constant 1 : index
    %c0_63 = arith.constant 0 : index
    %c0_64 = arith.constant 0 : index
    %68 = vector.load %arg2[%c1_62, %c0_63, %c0_64] : memref<5x1x49xf32, #tpu.memory_space<vmem>>, vector<1x1x49xf32>
    %69 = vector.shape_cast %68 : vector<1x1x49xf32> to vector<1x49xf32>
    %70 = vector.broadcast %69 : vector<1x49xf32> to vector<12x49xf32>
    %71 = arith.mulf %67, %70 : vector<12x49xf32>
    %c72 = arith.constant 72 : index
    %c0_65 = arith.constant 0 : index
    %72 = vector.load %arg16[%c72, %c0_65] : memref<300x49xf32, #tpu.memory_space<vmem>>, vector<12x49xf32>
    tpu.vector_store %arg16[%c72, %c0_65], %71 {strides = array<i32>} : memref<300x49xf32, #tpu.memory_space<vmem>>, vector<12x49xf32>,
    %c2_66 = arith.constant 2 : index
    %c0_67 = arith.constant 0 : index
    %c1_68 = arith.constant 1 : index
    %73 = vector.load %arg14[%c2_66, %c0_67, %c1_68] : memref<4x12x65xf32, #tpu.memory_space<vmem>>, vector<1x12x49xf32>
    %74 = vector.shape_cast %73 : vector<1x12x49xf32> to vector<12x49xf32>
    %c84 = arith.constant 84 : index
    %c0_69 = arith.constant 0 : index
    %75 = vector.load %arg16[%c84, %c0_69] : memref<300x49xf32, #tpu.memory_space<vmem>>, vector<12x49xf32>
    tpu.vector_store %arg16[%c84, %c0_69], %74 {strides = array<i32>} : memref<300x49xf32, #tpu.memory_space<vmem>>, vector<12x49xf32>,
    %c3_70 = arith.constant 3 : index
    %c0_71 = arith.constant 0 : index
    %c1_72 = arith.constant 1 : index
    %76 = vector.load %arg14[%c3_70, %c0_71, %c1_72] : memref<4x12x65xf32, #tpu.memory_space<vmem>>, vector<1x12x49xf32>
    %77 = vector.shape_cast %76 : vector<1x12x49xf32> to vector<12x49xf32>
    %c96 = arith.constant 96 : index
    %c0_73 = arith.constant 0 : index
    %78 = vector.load %arg16[%c96, %c0_73] : memref<300x49xf32, #tpu.memory_space<vmem>>, vector<12x49xf32>
    tpu.vector_store %arg16[%c96, %c0_73], %77 {strides = array<i32>} : memref<300x49xf32, #tpu.memory_space<vmem>>, vector<12x49xf32>,
    %c2_74 = arith.constant 2 : index
    %c0_75 = arith.constant 0 : index
    %c2_76 = arith.constant 2 : index
    %79 = vector.load %arg14[%c2_74, %c0_75, %c2_76] : memref<4x12x65xf32, #tpu.memory_space<vmem>>, vector<1x12x49xf32>
    %80 = vector.shape_cast %79 : vector<1x12x49xf32> to vector<12x49xf32>
    %c3_77 = arith.constant 3 : index
    %c0_78 = arith.constant 0 : index
    %c0_79 = arith.constant 0 : index
    %81 = vector.load %arg2[%c3_77, %c0_78, %c0_79] : memref<5x1x49xf32, #tpu.memory_space<vmem>>, vector<1x1x49xf32>
    %82 = vector.shape_cast %81 : vector<1x1x49xf32> to vector<1x49xf32>
    %83 = vector.broadcast %82 : vector<1x49xf32> to vector<12x49xf32>
    %84 = arith.mulf %80, %83 : vector<12x49xf32>
    %c108 = arith.constant 108 : index
    %c0_80 = arith.constant 0 : index
    %85 = vector.load %arg16[%c108, %c0_80] : memref<300x49xf32, #tpu.memory_space<vmem>>, vector<12x49xf32>
    tpu.vector_store %arg16[%c108, %c0_80], %84 {strides = array<i32>} : memref<300x49xf32, #tpu.memory_space<vmem>>, vector<12x49xf32>,
    %c0_81 = arith.constant 0 : index
    %c0_82 = arith.constant 0 : index
    %c7 = arith.constant 7 : index
    %86 = vector.load %arg14[%c0_81, %c0_82, %c7] : memref<4x12x65xf32, #tpu.memory_space<vmem>>, vector<1x12x49xf32>
    %87 = vector.shape_cast %86 : vector<1x12x49xf32> to vector<12x49xf32>
    %c1_83 = arith.constant 1 : index
    %c0_84 = arith.constant 0 : index
    %c0_85 = arith.constant 0 : index
    %88 = vector.load %arg2[%c1_83, %c0_84, %c0_85] : memref<5x1x49xf32, #tpu.memory_space<vmem>>, vector<1x1x49xf32>
    %89 = vector.shape_cast %88 : vector<1x1x49xf32> to vector<1x49xf32>
    %90 = vector.broadcast %89 : vector<1x49xf32> to vector<12x49xf32>
    %91 = arith.mulf %87, %90 : vector<12x49xf32>
    %c120 = arith.constant 120 : index
    %c0_86 = arith.constant 0 : index
    %92 = vector.load %arg16[%c120, %c0_86] : memref<300x49xf32, #tpu.memory_space<vmem>>, vector<12x49xf32>
    tpu.vector_store %arg16[%c120, %c0_86], %91 {strides = array<i32>} : memref<300x49xf32, #tpu.memory_space<vmem>>, vector<12x49xf32>,
    %c1_87 = arith.constant 1 : index
    %c0_88 = arith.constant 0 : index
    %c7_89 = arith.constant 7 : index
    %93 = vector.load %arg14[%c1_87, %c0_88, %c7_89] : memref<4x12x65xf32, #tpu.memory_space<vmem>>, vector<1x12x49xf32>
    %94 = vector.shape_cast %93 : vector<1x12x49xf32> to vector<12x49xf32>
    %c1_90 = arith.constant 1 : index
    %c0_91 = arith.constant 0 : index
    %c0_92 = arith.constant 0 : index
    %95 = vector.load %arg2[%c1_90, %c0_91, %c0_92] : memref<5x1x49xf32, #tpu.memory_space<vmem>>, vector<1x1x49xf32>
    %96 = vector.shape_cast %95 : vector<1x1x49xf32> to vector<1x49xf32>
    %97 = vector.broadcast %96 : vector<1x49xf32> to vector<12x49xf32>
    %98 = arith.mulf %94, %97 : vector<12x49xf32>
    %c132 = arith.constant 132 : index
    %c0_93 = arith.constant 0 : index
    %99 = vector.load %arg16[%c132, %c0_93] : memref<300x49xf32, #tpu.memory_space<vmem>>, vector<12x49xf32>
    tpu.vector_store %arg16[%c132, %c0_93], %98 {strides = array<i32>} : memref<300x49xf32, #tpu.memory_space<vmem>>, vector<12x49xf32>,
    %c0_94 = arith.constant 0 : index
    %c0_95 = arith.constant 0 : index
    %c8_96 = arith.constant 8 : index
    %100 = vector.load %arg14[%c0_94, %c0_95, %c8_96] : memref<4x12x65xf32, #tpu.memory_space<vmem>>, vector<1x12x49xf32>
    %101 = vector.shape_cast %100 : vector<1x12x49xf32> to vector<12x49xf32>
    %c144 = arith.constant 144 : index
    %c0_97 = arith.constant 0 : index
    %102 = vector.load %arg16[%c144, %c0_97] : memref<300x49xf32, #tpu.memory_space<vmem>>, vector<12x49xf32>
    tpu.vector_store %arg16[%c144, %c0_97], %101 {strides = array<i32>} : memref<300x49xf32, #tpu.memory_space<vmem>>, vector<12x49xf32>,
    %c1_98 = arith.constant 1 : index
    %c0_99 = arith.constant 0 : index
    %c8_100 = arith.constant 8 : index
    %103 = vector.load %arg14[%c1_98, %c0_99, %c8_100] : memref<4x12x65xf32, #tpu.memory_space<vmem>>, vector<1x12x49xf32>
    %104 = vector.shape_cast %103 : vector<1x12x49xf32> to vector<12x49xf32>
    %c156 = arith.constant 156 : index
    %c0_101 = arith.constant 0 : index
    %105 = vector.load %arg16[%c156, %c0_101] : memref<300x49xf32, #tpu.memory_space<vmem>>, vector<12x49xf32>
    tpu.vector_store %arg16[%c156, %c0_101], %104 {strides = array<i32>} : memref<300x49xf32, #tpu.memory_space<vmem>>, vector<12x49xf32>,
    %c0_102 = arith.constant 0 : index
    %c0_103 = arith.constant 0 : index
    %c9 = arith.constant 9 : index
    %106 = vector.load %arg14[%c0_102, %c0_103, %c9] : memref<4x12x65xf32, #tpu.memory_space<vmem>>, vector<1x12x49xf32>
    %107 = vector.shape_cast %106 : vector<1x12x49xf32> to vector<12x49xf32>
    %c3_104 = arith.constant 3 : index
    %c0_105 = arith.constant 0 : index
    %c0_106 = arith.constant 0 : index
    %108 = vector.load %arg2[%c3_104, %c0_105, %c0_106] : memref<5x1x49xf32, #tpu.memory_space<vmem>>, vector<1x1x49xf32>
    %109 = vector.shape_cast %108 : vector<1x1x49xf32> to vector<1x49xf32>
    %110 = vector.broadcast %109 : vector<1x49xf32> to vector<12x49xf32>
    %111 = arith.mulf %107, %110 : vector<12x49xf32>
    %c168 = arith.constant 168 : index
    %c0_107 = arith.constant 0 : index
    %112 = vector.load %arg16[%c168, %c0_107] : memref<300x49xf32, #tpu.memory_space<vmem>>, vector<12x49xf32>
    tpu.vector_store %arg16[%c168, %c0_107], %111 {strides = array<i32>} : memref<300x49xf32, #tpu.memory_space<vmem>>, vector<12x49xf32>,
    %c2_108 = arith.constant 2 : index
    %c0_109 = arith.constant 0 : index
    %c7_110 = arith.constant 7 : index
    %113 = vector.load %arg14[%c2_108, %c0_109, %c7_110] : memref<4x12x65xf32, #tpu.memory_space<vmem>>, vector<1x12x49xf32>
    %114 = vector.shape_cast %113 : vector<1x12x49xf32> to vector<12x49xf32>
    %c1_111 = arith.constant 1 : index
    %c0_112 = arith.constant 0 : index
    %c0_113 = arith.constant 0 : index
    %115 = vector.load %arg2[%c1_111, %c0_112, %c0_113] : memref<5x1x49xf32, #tpu.memory_space<vmem>>, vector<1x1x49xf32>
    %116 = vector.shape_cast %115 : vector<1x1x49xf32> to vector<1x49xf32>
    %117 = vector.broadcast %116 : vector<1x49xf32> to vector<12x49xf32>
    %118 = arith.mulf %114, %117 : vector<12x49xf32>
    %c180 = arith.constant 180 : index
    %c0_114 = arith.constant 0 : index
    %119 = vector.load %arg16[%c180, %c0_114] : memref<300x49xf32, #tpu.memory_space<vmem>>, vector<12x49xf32>
    tpu.vector_store %arg16[%c180, %c0_114], %118 {strides = array<i32>} : memref<300x49xf32, #tpu.memory_space<vmem>>, vector<12x49xf32>,
    %c3_115 = arith.constant 3 : index
    %c0_116 = arith.constant 0 : index
    %c7_117 = arith.constant 7 : index
    %120 = vector.load %arg14[%c3_115, %c0_116, %c7_117] : memref<4x12x65xf32, #tpu.memory_space<vmem>>, vector<1x12x49xf32>
    %121 = vector.shape_cast %120 : vector<1x12x49xf32> to vector<12x49xf32>
    %c1_118 = arith.constant 1 : index
    %c0_119 = arith.constant 0 : index
    %c0_120 = arith.constant 0 : index
    %122 = vector.load %arg2[%c1_118, %c0_119, %c0_120] : memref<5x1x49xf32, #tpu.memory_space<vmem>>, vector<1x1x49xf32>
    %123 = vector.shape_cast %122 : vector<1x1x49xf32> to vector<1x49xf32>
    %124 = vector.broadcast %123 : vector<1x49xf32> to vector<12x49xf32>
    %125 = arith.mulf %121, %124 : vector<12x49xf32>
    %c192 = arith.constant 192 : index
    %c0_121 = arith.constant 0 : index
    %126 = vector.load %arg16[%c192, %c0_121] : memref<300x49xf32, #tpu.memory_space<vmem>>, vector<12x49xf32>
    tpu.vector_store %arg16[%c192, %c0_121], %125 {strides = array<i32>} : memref<300x49xf32, #tpu.memory_space<vmem>>, vector<12x49xf32>,
    %c2_122 = arith.constant 2 : index
    %c0_123 = arith.constant 0 : index
    %c8_124 = arith.constant 8 : index
    %127 = vector.load %arg14[%c2_122, %c0_123, %c8_124] : memref<4x12x65xf32, #tpu.memory_space<vmem>>, vector<1x12x49xf32>
    %128 = vector.shape_cast %127 : vector<1x12x49xf32> to vector<12x49xf32>
    %c204 = arith.constant 204 : index
    %c0_125 = arith.constant 0 : index
    %129 = vector.load %arg16[%c204, %c0_125] : memref<300x49xf32, #tpu.memory_space<vmem>>, vector<12x49xf32>
    tpu.vector_store %arg16[%c204, %c0_125], %128 {strides = array<i32>} : memref<300x49xf32, #tpu.memory_space<vmem>>, vector<12x49xf32>,
    %c3_126 = arith.constant 3 : index
    %c0_127 = arith.constant 0 : index
    %c8_128 = arith.constant 8 : index
    %130 = vector.load %arg14[%c3_126, %c0_127, %c8_128] : memref<4x12x65xf32, #tpu.memory_space<vmem>>, vector<1x12x49xf32>
    %131 = vector.shape_cast %130 : vector<1x12x49xf32> to vector<12x49xf32>
    %c216 = arith.constant 216 : index
    %c0_129 = arith.constant 0 : index
    %132 = vector.load %arg16[%c216, %c0_129] : memref<300x49xf32, #tpu.memory_space<vmem>>, vector<12x49xf32>
    tpu.vector_store %arg16[%c216, %c0_129], %131 {strides = array<i32>} : memref<300x49xf32, #tpu.memory_space<vmem>>, vector<12x49xf32>,
    %c2_130 = arith.constant 2 : index
    %c0_131 = arith.constant 0 : index
    %c9_132 = arith.constant 9 : index
    %133 = vector.load %arg14[%c2_130, %c0_131, %c9_132] : memref<4x12x65xf32, #tpu.memory_space<vmem>>, vector<1x12x49xf32>
    %134 = vector.shape_cast %133 : vector<1x12x49xf32> to vector<12x49xf32>
    %c3_133 = arith.constant 3 : index
    %c0_134 = arith.constant 0 : index
    %c0_135 = arith.constant 0 : index
    %135 = vector.load %arg2[%c3_133, %c0_134, %c0_135] : memref<5x1x49xf32, #tpu.memory_space<vmem>>, vector<1x1x49xf32>
    %136 = vector.shape_cast %135 : vector<1x1x49xf32> to vector<1x49xf32>
    %137 = vector.broadcast %136 : vector<1x49xf32> to vector<12x49xf32>
    %138 = arith.mulf %134, %137 : vector<12x49xf32>
    %c228 = arith.constant 228 : index
    %c0_136 = arith.constant 0 : index
    %139 = vector.load %arg16[%c228, %c0_136] : memref<300x49xf32, #tpu.memory_space<vmem>>, vector<12x49xf32>
    tpu.vector_store %arg16[%c228, %c0_136], %138 {strides = array<i32>} : memref<300x49xf32, #tpu.memory_space<vmem>>, vector<12x49xf32>,
    %c0_137 = arith.constant 0 : index
    %c0_138 = arith.constant 0 : index
    %c14 = arith.constant 14 : index
    %140 = vector.load %arg14[%c0_137, %c0_138, %c14] : memref<4x12x65xf32, #tpu.memory_space<vmem>>, vector<1x12x49xf32>
    %141 = vector.shape_cast %140 : vector<1x12x49xf32> to vector<12x49xf32>
    %c1_139 = arith.constant 1 : index
    %c0_140 = arith.constant 0 : index
    %c0_141 = arith.constant 0 : index
    %142 = vector.load %arg2[%c1_139, %c0_140, %c0_141] : memref<5x1x49xf32, #tpu.memory_space<vmem>>, vector<1x1x49xf32>
    %143 = vector.shape_cast %142 : vector<1x1x49xf32> to vector<1x49xf32>
    %144 = vector.broadcast %143 : vector<1x49xf32> to vector<12x49xf32>
    %145 = arith.mulf %141, %144 : vector<12x49xf32>
    %c240 = arith.constant 240 : index
    %c0_142 = arith.constant 0 : index
    %146 = vector.load %arg16[%c240, %c0_142] : memref<300x49xf32, #tpu.memory_space<vmem>>, vector<12x49xf32>
    tpu.vector_store %arg16[%c240, %c0_142], %145 {strides = array<i32>} : memref<300x49xf32, #tpu.memory_space<vmem>>, vector<12x49xf32>,
    %c1_143 = arith.constant 1 : index
    %c0_144 = arith.constant 0 : index
    %c14_145 = arith.constant 14 : index
    %147 = vector.load %arg14[%c1_143, %c0_144, %c14_145] : memref<4x12x65xf32, #tpu.memory_space<vmem>>, vector<1x12x49xf32>
    %148 = vector.shape_cast %147 : vector<1x12x49xf32> to vector<12x49xf32>
    %c1_146 = arith.constant 1 : index
    %c0_147 = arith.constant 0 : index
    %c0_148 = arith.constant 0 : index
    %149 = vector.load %arg2[%c1_146, %c0_147, %c0_148] : memref<5x1x49xf32, #tpu.memory_space<vmem>>, vector<1x1x49xf32>
    %150 = vector.shape_cast %149 : vector<1x1x49xf32> to vector<1x49xf32>
    %151 = vector.broadcast %150 : vector<1x49xf32> to vector<12x49xf32>
    %152 = arith.mulf %148, %151 : vector<12x49xf32>
    %c252 = arith.constant 252 : index
    %c0_149 = arith.constant 0 : index
    %153 = vector.load %arg16[%c252, %c0_149] : memref<300x49xf32, #tpu.memory_space<vmem>>, vector<12x49xf32>
    tpu.vector_store %arg16[%c252, %c0_149], %152 {strides = array<i32>} : memref<300x49xf32, #tpu.memory_space<vmem>>, vector<12x49xf32>,
    %c0_150 = arith.constant 0 : index
    %c0_151 = arith.constant 0 : index
    %c15 = arith.constant 15 : index
    %154 = vector.load %arg14[%c0_150, %c0_151, %c15] : memref<4x12x65xf32, #tpu.memory_space<vmem>>, vector<1x12x49xf32>
    %155 = vector.shape_cast %154 : vector<1x12x49xf32> to vector<12x49xf32>
    %c264 = arith.constant 264 : index
    %c0_152 = arith.constant 0 : index
    %156 = vector.load %arg16[%c264, %c0_152] : memref<300x49xf32, #tpu.memory_space<vmem>>, vector<12x49xf32>
    tpu.vector_store %arg16[%c264, %c0_152], %155 {strides = array<i32>} : memref<300x49xf32, #tpu.memory_space<vmem>>, vector<12x49xf32>,
    %c1_153 = arith.constant 1 : index
    %c0_154 = arith.constant 0 : index
    %c15_155 = arith.constant 15 : index
    %157 = vector.load %arg14[%c1_153, %c0_154, %c15_155] : memref<4x12x65xf32, #tpu.memory_space<vmem>>, vector<1x12x49xf32>
    %158 = vector.shape_cast %157 : vector<1x12x49xf32> to vector<12x49xf32>
    %c276 = arith.constant 276 : index
    %c0_156 = arith.constant 0 : index
    %159 = vector.load %arg16[%c276, %c0_156] : memref<300x49xf32, #tpu.memory_space<vmem>>, vector<12x49xf32>
    tpu.vector_store %arg16[%c276, %c0_156], %158 {strides = array<i32>} : memref<300x49xf32, #tpu.memory_space<vmem>>, vector<12x49xf32>,
    %c0_157 = arith.constant 0 : index
    %c0_158 = arith.constant 0 : index
    %c16 = arith.constant 16 : index
    %160 = vector.load %arg14[%c0_157, %c0_158, %c16] : memref<4x12x65xf32, #tpu.memory_space<vmem>>, vector<1x12x49xf32>
    %161 = vector.shape_cast %160 : vector<1x12x49xf32> to vector<12x49xf32>
    %c3_159 = arith.constant 3 : index
    %c0_160 = arith.constant 0 : index
    %c0_161 = arith.constant 0 : index
    %162 = vector.load %arg2[%c3_159, %c0_160, %c0_161] : memref<5x1x49xf32, #tpu.memory_space<vmem>>, vector<1x1x49xf32>
    %163 = vector.shape_cast %162 : vector<1x1x49xf32> to vector<1x49xf32>
    %164 = vector.broadcast %163 : vector<1x49xf32> to vector<12x49xf32>
    %165 = arith.mulf %161, %164 : vector<12x49xf32>
    %c288 = arith.constant 288 : index
    %c0_162 = arith.constant 0 : index
    %166 = vector.load %arg16[%c288, %c0_162] : memref<300x49xf32, #tpu.memory_space<vmem>>, vector<12x49xf32>
    tpu.vector_store %arg16[%c288, %c0_162], %165 {strides = array<i32>} : memref<300x49xf32, #tpu.memory_space<vmem>>, vector<12x49xf32>,
    %c0_163 = arith.constant 0 : index
    %c0_164 = arith.constant 0 : index
    %167 = vector.load %arg5[%c0_163, %c0_164] : memref<12x300xf32, #tpu.memory_space<vmem>>, vector<12x300xf32>
    %c0_165 = arith.constant 0 : index
    %c0_166 = arith.constant 0 : index
    %168 = vector.load %arg16[%c0_165, %c0_166] : memref<300x49xf32, #tpu.memory_space<vmem>>, vector<300x49xf32>
    %cst_167 = arith.constant dense<0.000000e+00> : vector<12x49xf32>
    %169 = tpu.matmul %167, %168, %cst_167 {dimension_numbers = #tpu.dot_dimension_numbers<[1], [0], [0], [1], [0, 0, 1, 1], [], []>} : vector<12x300xf32>, vector<300x49xf32>, vector<12x49xf32> -> vector<12x49xf32>
    %c0_168 = arith.constant 0 : index
    %c0_169 = arith.constant 0 : index
    %170 = vector.load %arg6[%c0_168, %c0_169] : memref<12x1xf32, #tpu.memory_space<vmem>>, vector<12x1xf32>
    %171 = vector.broadcast %170 : vector<12x1xf32> to vector<12x49xf32>
    %172 = arith.addf %169, %171 : vector<12x49xf32>
    %173 = arith.negf %172 : vector<12x49xf32>
    %174 = math.exp %173 : vector<12x49xf32>
    %cst_170 = arith.constant 1.000000e+00 : f32
    %175 = vector.broadcast %cst_170 : f32 to vector<12x49xf32>
    %176 = arith.addf %175, %174 : vector<12x49xf32>
    %177 = arith.divf %175, %176 : vector<12x49xf32>
    %cst_171 = arith.constant 0.000000e+00 : f32
    %178 = vector.broadcast %cst_171 : f32 to vector<12x16xf32>
    %c0_172 = arith.constant 0 : index
    %c0_173 = arith.constant 0 : index
    %179 = vector.load %arg15[%c0_172, %c0_173] : memref<12x81xf32, #tpu.memory_space<vmem>>, vector<12x16xf32>
    tpu.vector_store %arg15[%c0_172, %c0_173], %178 {strides = array<i32>} : memref<12x81xf32, #tpu.memory_space<vmem>>, vector<12x16xf32>,
    %cst_174 = arith.constant 0.000000e+00 : f32
    %180 = vector.broadcast %cst_174 : f32 to vector<12x16xf32>
    %c0_175 = arith.constant 0 : index
    %c65 = arith.constant 65 : index
    %181 = vector.load %arg15[%c0_175, %c65] : memref<12x81xf32, #tpu.memory_space<vmem>>, vector<12x16xf32>
    tpu.vector_store %arg15[%c0_175, %c65], %180 {strides = array<i32>} : memref<12x81xf32, #tpu.memory_space<vmem>>, vector<12x16xf32>,
    %c0_176 = arith.constant 0 : index
    %c16_177 = arith.constant 16 : index
    %182 = vector.load %arg15[%c0_176, %c16_177] : memref<12x81xf32, #tpu.memory_space<vmem>>, vector<12x49xf32>
    tpu.vector_store %arg15[%c0_176, %c16_177], %177 {strides = array<i32>} : memref<12x81xf32, #tpu.memory_space<vmem>>, vector<12x49xf32>,
    %c0_178 = arith.constant 0 : index
    %c0_179 = arith.constant 0 : index
    %183 = vector.load %arg15[%c0_178, %c0_179] : memref<12x81xf32, #tpu.memory_space<vmem>>, vector<12x49xf32>
    %c0_180 = arith.constant 0 : index
    %c0_181 = arith.constant 0 : index
    %c0_182 = arith.constant 0 : index
    %184 = vector.load %arg2[%c0_180, %c0_181, %c0_182] : memref<5x1x49xf32, #tpu.memory_space<vmem>>, vector<1x1x49xf32>
    %185 = vector.shape_cast %184 : vector<1x1x49xf32> to vector<1x49xf32>
    %186 = vector.broadcast %185 : vector<1x49xf32> to vector<12x49xf32>
    %187 = arith.mulf %183, %186 : vector<12x49xf32>
    %c0_183 = arith.constant 0 : index
    %c0_184 = arith.constant 0 : index
    %188 = vector.load %arg17[%c0_183, %c0_184] : memref<300x49xf32, #tpu.memory_space<vmem>>, vector<12x49xf32>
    tpu.vector_store %arg17[%c0_183, %c0_184], %187 {strides = array<i32>} : memref<300x49xf32, #tpu.memory_space<vmem>>, vector<12x49xf32>,
    %c0_185 = arith.constant 0 : index
    %c1_186 = arith.constant 1 : index
    %189 = vector.load %arg15[%c0_185, %c1_186] : memref<12x81xf32, #tpu.memory_space<vmem>>, vector<12x49xf32>
    %c1_187 = arith.constant 1 : index
    %c0_188 = arith.constant 0 : index
    %c0_189 = arith.constant 0 : index
    %190 = vector.load %arg2[%c1_187, %c0_188, %c0_189] : memref<5x1x49xf32, #tpu.memory_space<vmem>>, vector<1x1x49xf32>
    %191 = vector.shape_cast %190 : vector<1x1x49xf32> to vector<1x49xf32>
    %192 = vector.broadcast %191 : vector<1x49xf32> to vector<12x49xf32>
    %193 = arith.mulf %189, %192 : vector<12x49xf32>
    %c12_190 = arith.constant 12 : index
    %c0_191 = arith.constant 0 : index
    %194 = vector.load %arg17[%c12_190, %c0_191] : memref<300x49xf32, #tpu.memory_space<vmem>>, vector<12x49xf32>
    tpu.vector_store %arg17[%c12_190, %c0_191], %193 {strides = array<i32>} : memref<300x49xf32, #tpu.memory_space<vmem>>, vector<12x49xf32>,
    %c0_192 = arith.constant 0 : index
    %c2_193 = arith.constant 2 : index
    %195 = vector.load %arg15[%c0_192, %c2_193] : memref<12x81xf32, #tpu.memory_space<vmem>>, vector<12x49xf32>
    %c24_194 = arith.constant 24 : index
    %c0_195 = arith.constant 0 : index
    %196 = vector.load %arg17[%c24_194, %c0_195] : memref<300x49xf32, #tpu.memory_space<vmem>>, vector<12x49xf32>
    tpu.vector_store %arg17[%c24_194, %c0_195], %195 {strides = array<i32>} : memref<300x49xf32, #tpu.memory_space<vmem>>, vector<12x49xf32>,
    %c0_196 = arith.constant 0 : index
    %c3_197 = arith.constant 3 : index
    %197 = vector.load %arg15[%c0_196, %c3_197] : memref<12x81xf32, #tpu.memory_space<vmem>>, vector<12x49xf32>
    %c3_198 = arith.constant 3 : index
    %c0_199 = arith.constant 0 : index
    %c0_200 = arith.constant 0 : index
    %198 = vector.load %arg2[%c3_198, %c0_199, %c0_200] : memref<5x1x49xf32, #tpu.memory_space<vmem>>, vector<1x1x49xf32>
    %199 = vector.shape_cast %198 : vector<1x1x49xf32> to vector<1x49xf32>
    %200 = vector.broadcast %199 : vector<1x49xf32> to vector<12x49xf32>
    %201 = arith.mulf %197, %200 : vector<12x49xf32>
    %c36_201 = arith.constant 36 : index
    %c0_202 = arith.constant 0 : index
    %202 = vector.load %arg17[%c36_201, %c0_202] : memref<300x49xf32, #tpu.memory_space<vmem>>, vector<12x49xf32>
    tpu.vector_store %arg17[%c36_201, %c0_202], %201 {strides = array<i32>} : memref<300x49xf32, #tpu.memory_space<vmem>>, vector<12x49xf32>,
    %c0_203 = arith.constant 0 : index
    %c4 = arith.constant 4 : index
    %203 = vector.load %arg15[%c0_203, %c4] : memref<12x81xf32, #tpu.memory_space<vmem>>, vector<12x49xf32>
    %c4_204 = arith.constant 4 : index
    %c0_205 = arith.constant 0 : index
    %c0_206 = arith.constant 0 : index
    %204 = vector.load %arg2[%c4_204, %c0_205, %c0_206] : memref<5x1x49xf32, #tpu.memory_space<vmem>>, vector<1x1x49xf32>
    %205 = vector.shape_cast %204 : vector<1x1x49xf32> to vector<1x49xf32>
    %206 = vector.broadcast %205 : vector<1x49xf32> to vector<12x49xf32>
    %207 = arith.mulf %203, %206 : vector<12x49xf32>
    %c48_207 = arith.constant 48 : index
    %c0_208 = arith.constant 0 : index
    %208 = vector.load %arg17[%c48_207, %c0_208] : memref<300x49xf32, #tpu.memory_space<vmem>>, vector<12x49xf32>
    tpu.vector_store %arg17[%c48_207, %c0_208], %207 {strides = array<i32>} : memref<300x49xf32, #tpu.memory_space<vmem>>, vector<12x49xf32>,
    %c0_209 = arith.constant 0 : index
    %c7_210 = arith.constant 7 : index
    %209 = vector.load %arg15[%c0_209, %c7_210] : memref<12x81xf32, #tpu.memory_space<vmem>>, vector<12x49xf32>
    %c0_211 = arith.constant 0 : index
    %c0_212 = arith.constant 0 : index
    %c0_213 = arith.constant 0 : index
    %210 = vector.load %arg2[%c0_211, %c0_212, %c0_213] : memref<5x1x49xf32, #tpu.memory_space<vmem>>, vector<1x1x49xf32>
    %211 = vector.shape_cast %210 : vector<1x1x49xf32> to vector<1x49xf32>
    %212 = vector.broadcast %211 : vector<1x49xf32> to vector<12x49xf32>
    %213 = arith.mulf %209, %212 : vector<12x49xf32>
    %c60_214 = arith.constant 60 : index
    %c0_215 = arith.constant 0 : index
    %214 = vector.load %arg17[%c60_214, %c0_215] : memref<300x49xf32, #tpu.memory_space<vmem>>, vector<12x49xf32>
    tpu.vector_store %arg17[%c60_214, %c0_215], %213 {strides = array<i32>} : memref<300x49xf32, #tpu.memory_space<vmem>>, vector<12x49xf32>,
    %c0_216 = arith.constant 0 : index
    %c8_217 = arith.constant 8 : index
    %215 = vector.load %arg15[%c0_216, %c8_217] : memref<12x81xf32, #tpu.memory_space<vmem>>, vector<12x49xf32>
    %c1_218 = arith.constant 1 : index
    %c0_219 = arith.constant 0 : index
    %c0_220 = arith.constant 0 : index
    %216 = vector.load %arg2[%c1_218, %c0_219, %c0_220] : memref<5x1x49xf32, #tpu.memory_space<vmem>>, vector<1x1x49xf32>
    %217 = vector.shape_cast %216 : vector<1x1x49xf32> to vector<1x49xf32>
    %218 = vector.broadcast %217 : vector<1x49xf32> to vector<12x49xf32>
    %219 = arith.mulf %215, %218 : vector<12x49xf32>
    %c72_221 = arith.constant 72 : index
    %c0_222 = arith.constant 0 : index
    %220 = vector.load %arg17[%c72_221, %c0_222] : memref<300x49xf32, #tpu.memory_space<vmem>>, vector<12x49xf32>
    tpu.vector_store %arg17[%c72_221, %c0_222], %219 {strides = array<i32>} : memref<300x49xf32, #tpu.memory_space<vmem>>, vector<12x49xf32>,
    %c0_223 = arith.constant 0 : index
    %c9_224 = arith.constant 9 : index
    %221 = vector.load %arg15[%c0_223, %c9_224] : memref<12x81xf32, #tpu.memory_space<vmem>>, vector<12x49xf32>
    %c84_225 = arith.constant 84 : index
    %c0_226 = arith.constant 0 : index
    %222 = vector.load %arg17[%c84_225, %c0_226] : memref<300x49xf32, #tpu.memory_space<vmem>>, vector<12x49xf32>
    tpu.vector_store %arg17[%c84_225, %c0_226], %221 {strides = array<i32>} : memref<300x49xf32, #tpu.memory_space<vmem>>, vector<12x49xf32>,
    %c0_227 = arith.constant 0 : index
    %c10 = arith.constant 10 : index
    %223 = vector.load %arg15[%c0_227, %c10] : memref<12x81xf32, #tpu.memory_space<vmem>>, vector<12x49xf32>
    %c3_228 = arith.constant 3 : index
    %c0_229 = arith.constant 0 : index
    %c0_230 = arith.constant 0 : index
    %224 = vector.load %arg2[%c3_228, %c0_229, %c0_230] : memref<5x1x49xf32, #tpu.memory_space<vmem>>, vector<1x1x49xf32>
    %225 = vector.shape_cast %224 : vector<1x1x49xf32> to vector<1x49xf32>
    %226 = vector.broadcast %225 : vector<1x49xf32> to vector<12x49xf32>
    %227 = arith.mulf %223, %226 : vector<12x49xf32>
    %c96_231 = arith.constant 96 : index
    %c0_232 = arith.constant 0 : index
    %228 = vector.load %arg17[%c96_231, %c0_232] : memref<300x49xf32, #tpu.memory_space<vmem>>, vector<12x49xf32>
    tpu.vector_store %arg17[%c96_231, %c0_232], %227 {strides = array<i32>} : memref<300x49xf32, #tpu.memory_space<vmem>>, vector<12x49xf32>,
    %c0_233 = arith.constant 0 : index
    %c11 = arith.constant 11 : index
    %229 = vector.load %arg15[%c0_233, %c11] : memref<12x81xf32, #tpu.memory_space<vmem>>, vector<12x49xf32>
    %c4_234 = arith.constant 4 : index
    %c0_235 = arith.constant 0 : index
    %c0_236 = arith.constant 0 : index
    %230 = vector.load %arg2[%c4_234, %c0_235, %c0_236] : memref<5x1x49xf32, #tpu.memory_space<vmem>>, vector<1x1x49xf32>
    %231 = vector.shape_cast %230 : vector<1x1x49xf32> to vector<1x49xf32>
    %232 = vector.broadcast %231 : vector<1x49xf32> to vector<12x49xf32>
    %233 = arith.mulf %229, %232 : vector<12x49xf32>
    %c108_237 = arith.constant 108 : index
    %c0_238 = arith.constant 0 : index
    %234 = vector.load %arg17[%c108_237, %c0_238] : memref<300x49xf32, #tpu.memory_space<vmem>>, vector<12x49xf32>
    tpu.vector_store %arg17[%c108_237, %c0_238], %233 {strides = array<i32>} : memref<300x49xf32, #tpu.memory_space<vmem>>, vector<12x49xf32>,
    %c0_239 = arith.constant 0 : index
    %c14_240 = arith.constant 14 : index
    %235 = vector.load %arg15[%c0_239, %c14_240] : memref<12x81xf32, #tpu.memory_space<vmem>>, vector<12x49xf32>
    %c0_241 = arith.constant 0 : index
    %c0_242 = arith.constant 0 : index
    %c0_243 = arith.constant 0 : index
    %236 = vector.load %arg2[%c0_241, %c0_242, %c0_243] : memref<5x1x49xf32, #tpu.memory_space<vmem>>, vector<1x1x49xf32>
    %237 = vector.shape_cast %236 : vector<1x1x49xf32> to vector<1x49xf32>
    %238 = vector.broadcast %237 : vector<1x49xf32> to vector<12x49xf32>
    %239 = arith.mulf %235, %238 : vector<12x49xf32>
    %c120_244 = arith.constant 120 : index
    %c0_245 = arith.constant 0 : index
    %240 = vector.load %arg17[%c120_244, %c0_245] : memref<300x49xf32, #tpu.memory_space<vmem>>, vector<12x49xf32>
    tpu.vector_store %arg17[%c120_244, %c0_245], %239 {strides = array<i32>} : memref<300x49xf32, #tpu.memory_space<vmem>>, vector<12x49xf32>,
    %c0_246 = arith.constant 0 : index
    %c15_247 = arith.constant 15 : index
    %241 = vector.load %arg15[%c0_246, %c15_247] : memref<12x81xf32, #tpu.memory_space<vmem>>, vector<12x49xf32>
    %c1_248 = arith.constant 1 : index
    %c0_249 = arith.constant 0 : index
    %c0_250 = arith.constant 0 : index
    %242 = vector.load %arg2[%c1_248, %c0_249, %c0_250] : memref<5x1x49xf32, #tpu.memory_space<vmem>>, vector<1x1x49xf32>
    %243 = vector.shape_cast %242 : vector<1x1x49xf32> to vector<1x49xf32>
    %244 = vector.broadcast %243 : vector<1x49xf32> to vector<12x49xf32>
    %245 = arith.mulf %241, %244 : vector<12x49xf32>
    %c132_251 = arith.constant 132 : index
    %c0_252 = arith.constant 0 : index
    %246 = vector.load %arg17[%c132_251, %c0_252] : memref<300x49xf32, #tpu.memory_space<vmem>>, vector<12x49xf32>
    tpu.vector_store %arg17[%c132_251, %c0_252], %245 {strides = array<i32>} : memref<300x49xf32, #tpu.memory_space<vmem>>, vector<12x49xf32>,
    %c0_253 = arith.constant 0 : index
    %c16_254 = arith.constant 16 : index
    %247 = vector.load %arg15[%c0_253, %c16_254] : memref<12x81xf32, #tpu.memory_space<vmem>>, vector<12x49xf32>
    %c144_255 = arith.constant 144 : index
    %c0_256 = arith.constant 0 : index
    %248 = vector.load %arg17[%c144_255, %c0_256] : memref<300x49xf32, #tpu.memory_space<vmem>>, vector<12x49xf32>
    tpu.vector_store %arg17[%c144_255, %c0_256], %247 {strides = array<i32>} : memref<300x49xf32, #tpu.memory_space<vmem>>, vector<12x49xf32>,
    %c0_257 = arith.constant 0 : index
    %c17 = arith.constant 17 : index
    %249 = vector.load %arg15[%c0_257, %c17] : memref<12x81xf32, #tpu.memory_space<vmem>>, vector<12x49xf32>
    %c3_258 = arith.constant 3 : index
    %c0_259 = arith.constant 0 : index
    %c0_260 = arith.constant 0 : index
    %250 = vector.load %arg2[%c3_258, %c0_259, %c0_260] : memref<5x1x49xf32, #tpu.memory_space<vmem>>, vector<1x1x49xf32>
    %251 = vector.shape_cast %250 : vector<1x1x49xf32> to vector<1x49xf32>
    %252 = vector.broadcast %251 : vector<1x49xf32> to vector<12x49xf32>
    %253 = arith.mulf %249, %252 : vector<12x49xf32>
    %c156_261 = arith.constant 156 : index
    %c0_262 = arith.constant 0 : index
    %254 = vector.load %arg17[%c156_261, %c0_262] : memref<300x49xf32, #tpu.memory_space<vmem>>, vector<12x49xf32>
    tpu.vector_store %arg17[%c156_261, %c0_262], %253 {strides = array<i32>} : memref<300x49xf32, #tpu.memory_space<vmem>>, vector<12x49xf32>,
    %c0_263 = arith.constant 0 : index
    %c18 = arith.constant 18 : index
    %255 = vector.load %arg15[%c0_263, %c18] : memref<12x81xf32, #tpu.memory_space<vmem>>, vector<12x49xf32>
    %c4_264 = arith.constant 4 : index
    %c0_265 = arith.constant 0 : index
    %c0_266 = arith.constant 0 : index
    %256 = vector.load %arg2[%c4_264, %c0_265, %c0_266] : memref<5x1x49xf32, #tpu.memory_space<vmem>>, vector<1x1x49xf32>
    %257 = vector.shape_cast %256 : vector<1x1x49xf32> to vector<1x49xf32>
    %258 = vector.broadcast %257 : vector<1x49xf32> to vector<12x49xf32>
    %259 = arith.mulf %255, %258 : vector<12x49xf32>
    %c168_267 = arith.constant 168 : index
    %c0_268 = arith.constant 0 : index
    %260 = vector.load %arg17[%c168_267, %c0_268] : memref<300x49xf32, #tpu.memory_space<vmem>>, vector<12x49xf32>
    tpu.vector_store %arg17[%c168_267, %c0_268], %259 {strides = array<i32>} : memref<300x49xf32, #tpu.memory_space<vmem>>, vector<12x49xf32>,
    %c0_269 = arith.constant 0 : index
    %c21 = arith.constant 21 : index
    %261 = vector.load %arg15[%c0_269, %c21] : memref<12x81xf32, #tpu.memory_space<vmem>>, vector<12x49xf32>
    %c0_270 = arith.constant 0 : index
    %c0_271 = arith.constant 0 : index
    %c0_272 = arith.constant 0 : index
    %262 = vector.load %arg2[%c0_270, %c0_271, %c0_272] : memref<5x1x49xf32, #tpu.memory_space<vmem>>, vector<1x1x49xf32>
    %263 = vector.shape_cast %262 : vector<1x1x49xf32> to vector<1x49xf32>
    %264 = vector.broadcast %263 : vector<1x49xf32> to vector<12x49xf32>
    %265 = arith.mulf %261, %264 : vector<12x49xf32>
    %c180_273 = arith.constant 180 : index
    %c0_274 = arith.constant 0 : index
    %266 = vector.load %arg17[%c180_273, %c0_274] : memref<300x49xf32, #tpu.memory_space<vmem>>, vector<12x49xf32>
    tpu.vector_store %arg17[%c180_273, %c0_274], %265 {strides = array<i32>} : memref<300x49xf32, #tpu.memory_space<vmem>>, vector<12x49xf32>,
    %c0_275 = arith.constant 0 : index
    %c22 = arith.constant 22 : index
    %267 = vector.load %arg15[%c0_275, %c22] : memref<12x81xf32, #tpu.memory_space<vmem>>, vector<12x49xf32>
    %c1_276 = arith.constant 1 : index
    %c0_277 = arith.constant 0 : index
    %c0_278 = arith.constant 0 : index
    %268 = vector.load %arg2[%c1_276, %c0_277, %c0_278] : memref<5x1x49xf32, #tpu.memory_space<vmem>>, vector<1x1x49xf32>
    %269 = vector.shape_cast %268 : vector<1x1x49xf32> to vector<1x49xf32>
    %270 = vector.broadcast %269 : vector<1x49xf32> to vector<12x49xf32>
    %271 = arith.mulf %267, %270 : vector<12x49xf32>
    %c192_279 = arith.constant 192 : index
    %c0_280 = arith.constant 0 : index
    %272 = vector.load %arg17[%c192_279, %c0_280] : memref<300x49xf32, #tpu.memory_space<vmem>>, vector<12x49xf32>
    tpu.vector_store %arg17[%c192_279, %c0_280], %271 {strides = array<i32>} : memref<300x49xf32, #tpu.memory_space<vmem>>, vector<12x49xf32>,
    %c0_281 = arith.constant 0 : index
    %c23 = arith.constant 23 : index
    %273 = vector.load %arg15[%c0_281, %c23] : memref<12x81xf32, #tpu.memory_space<vmem>>, vector<12x49xf32>
    %c204_282 = arith.constant 204 : index
    %c0_283 = arith.constant 0 : index
    %274 = vector.load %arg17[%c204_282, %c0_283] : memref<300x49xf32, #tpu.memory_space<vmem>>, vector<12x49xf32>
    tpu.vector_store %arg17[%c204_282, %c0_283], %273 {strides = array<i32>} : memref<300x49xf32, #tpu.memory_space<vmem>>, vector<12x49xf32>,
    %c0_284 = arith.constant 0 : index
    %c24_285 = arith.constant 24 : index
    %275 = vector.load %arg15[%c0_284, %c24_285] : memref<12x81xf32, #tpu.memory_space<vmem>>, vector<12x49xf32>
    %c3_286 = arith.constant 3 : index
    %c0_287 = arith.constant 0 : index
    %c0_288 = arith.constant 0 : index
    %276 = vector.load %arg2[%c3_286, %c0_287, %c0_288] : memref<5x1x49xf32, #tpu.memory_space<vmem>>, vector<1x1x49xf32>
    %277 = vector.shape_cast %276 : vector<1x1x49xf32> to vector<1x49xf32>
    %278 = vector.broadcast %277 : vector<1x49xf32> to vector<12x49xf32>
    %279 = arith.mulf %275, %278 : vector<12x49xf32>
    %c216_289 = arith.constant 216 : index
    %c0_290 = arith.constant 0 : index
    %280 = vector.load %arg17[%c216_289, %c0_290] : memref<300x49xf32, #tpu.memory_space<vmem>>, vector<12x49xf32>
    tpu.vector_store %arg17[%c216_289, %c0_290], %279 {strides = array<i32>} : memref<300x49xf32, #tpu.memory_space<vmem>>, vector<12x49xf32>,
    %c0_291 = arith.constant 0 : index
    %c25 = arith.constant 25 : index
    %281 = vector.load %arg15[%c0_291, %c25] : memref<12x81xf32, #tpu.memory_space<vmem>>, vector<12x49xf32>
    %c4_292 = arith.constant 4 : index
    %c0_293 = arith.constant 0 : index
    %c0_294 = arith.constant 0 : index
    %282 = vector.load %arg2[%c4_292, %c0_293, %c0_294] : memref<5x1x49xf32, #tpu.memory_space<vmem>>, vector<1x1x49xf32>
    %283 = vector.shape_cast %282 : vector<1x1x49xf32> to vector<1x49xf32>
    %284 = vector.broadcast %283 : vector<1x49xf32> to vector<12x49xf32>
    %285 = arith.mulf %281, %284 : vector<12x49xf32>
    %c228_295 = arith.constant 228 : index
    %c0_296 = arith.constant 0 : index
    %286 = vector.load %arg17[%c228_295, %c0_296] : memref<300x49xf32, #tpu.memory_space<vmem>>, vector<12x49xf32>
    tpu.vector_store %arg17[%c228_295, %c0_296], %285 {strides = array<i32>} : memref<300x49xf32, #tpu.memory_space<vmem>>, vector<12x49xf32>,
    %c0_297 = arith.constant 0 : index
    %c28 = arith.constant 28 : index
    %287 = vector.load %arg15[%c0_297, %c28] : memref<12x81xf32, #tpu.memory_space<vmem>>, vector<12x49xf32>
    %c0_298 = arith.constant 0 : index
    %c0_299 = arith.constant 0 : index
    %c0_300 = arith.constant 0 : index
    %288 = vector.load %arg2[%c0_298, %c0_299, %c0_300] : memref<5x1x49xf32, #tpu.memory_space<vmem>>, vector<1x1x49xf32>
    %289 = vector.shape_cast %288 : vector<1x1x49xf32> to vector<1x49xf32>
    %290 = vector.broadcast %289 : vector<1x49xf32> to vector<12x49xf32>
    %291 = arith.mulf %287, %290 : vector<12x49xf32>
    %c240_301 = arith.constant 240 : index
    %c0_302 = arith.constant 0 : index
    %292 = vector.load %arg17[%c240_301, %c0_302] : memref<300x49xf32, #tpu.memory_space<vmem>>, vector<12x49xf32>
    tpu.vector_store %arg17[%c240_301, %c0_302], %291 {strides = array<i32>} : memref<300x49xf32, #tpu.memory_space<vmem>>, vector<12x49xf32>,
    %c0_303 = arith.constant 0 : index
    %c29 = arith.constant 29 : index
    %293 = vector.load %arg15[%c0_303, %c29] : memref<12x81xf32, #tpu.memory_space<vmem>>, vector<12x49xf32>
    %c1_304 = arith.constant 1 : index
    %c0_305 = arith.constant 0 : index
    %c0_306 = arith.constant 0 : index
    %294 = vector.load %arg2[%c1_304, %c0_305, %c0_306] : memref<5x1x49xf32, #tpu.memory_space<vmem>>, vector<1x1x49xf32>
    %295 = vector.shape_cast %294 : vector<1x1x49xf32> to vector<1x49xf32>
    %296 = vector.broadcast %295 : vector<1x49xf32> to vector<12x49xf32>
    %297 = arith.mulf %293, %296 : vector<12x49xf32>
    %c252_307 = arith.constant 252 : index
    %c0_308 = arith.constant 0 : index
    %298 = vector.load %arg17[%c252_307, %c0_308] : memref<300x49xf32, #tpu.memory_space<vmem>>, vector<12x49xf32>
    tpu.vector_store %arg17[%c252_307, %c0_308], %297 {strides = array<i32>} : memref<300x49xf32, #tpu.memory_space<vmem>>, vector<12x49xf32>,
    %c0_309 = arith.constant 0 : index
    %c30 = arith.constant 30 : index
    %299 = vector.load %arg15[%c0_309, %c30] : memref<12x81xf32, #tpu.memory_space<vmem>>, vector<12x49xf32>
    %c264_310 = arith.constant 264 : index
    %c0_311 = arith.constant 0 : index
    %300 = vector.load %arg17[%c264_310, %c0_311] : memref<300x49xf32, #tpu.memory_space<vmem>>, vector<12x49xf32>
    tpu.vector_store %arg17[%c264_310, %c0_311], %299 {strides = array<i32>} : memref<300x49xf32, #tpu.memory_space<vmem>>, vector<12x49xf32>,
    %c0_312 = arith.constant 0 : index
    %c31 = arith.constant 31 : index
    %301 = vector.load %arg15[%c0_312, %c31] : memref<12x81xf32, #tpu.memory_space<vmem>>, vector<12x49xf32>
    %c3_313 = arith.constant 3 : index
    %c0_314 = arith.constant 0 : index
    %c0_315 = arith.constant 0 : index
    %302 = vector.load %arg2[%c3_313, %c0_314, %c0_315] : memref<5x1x49xf32, #tpu.memory_space<vmem>>, vector<1x1x49xf32>
    %303 = vector.shape_cast %302 : vector<1x1x49xf32> to vector<1x49xf32>
    %304 = vector.broadcast %303 : vector<1x49xf32> to vector<12x49xf32>
    %305 = arith.mulf %301, %304 : vector<12x49xf32>
    %c276_316 = arith.constant 276 : index
    %c0_317 = arith.constant 0 : index
    %306 = vector.load %arg17[%c276_316, %c0_317] : memref<300x49xf32, #tpu.memory_space<vmem>>, vector<12x49xf32>
    tpu.vector_store %arg17[%c276_316, %c0_317], %305 {strides = array<i32>} : memref<300x49xf32, #tpu.memory_space<vmem>>, vector<12x49xf32>,
    %c0_318 = arith.constant 0 : index
    %c32 = arith.constant 32 : index
    %307 = vector.load %arg15[%c0_318, %c32] : memref<12x81xf32, #tpu.memory_space<vmem>>, vector<12x49xf32>
    %c4_319 = arith.constant 4 : index
    %c0_320 = arith.constant 0 : index
    %c0_321 = arith.constant 0 : index
    %308 = vector.load %arg2[%c4_319, %c0_320, %c0_321] : memref<5x1x49xf32, #tpu.memory_space<vmem>>, vector<1x1x49xf32>
    %309 = vector.shape_cast %308 : vector<1x1x49xf32> to vector<1x49xf32>
    %310 = vector.broadcast %309 : vector<1x49xf32> to vector<12x49xf32>
    %311 = arith.mulf %307, %310 : vector<12x49xf32>
    %c288_322 = arith.constant 288 : index
    %c0_323 = arith.constant 0 : index
    %312 = vector.load %arg17[%c288_322, %c0_323] : memref<300x49xf32, #tpu.memory_space<vmem>>, vector<12x49xf32>
    tpu.vector_store %arg17[%c288_322, %c0_323], %311 {strides = array<i32>} : memref<300x49xf32, #tpu.memory_space<vmem>>, vector<12x49xf32>,
    %c0_324 = arith.constant 0 : index
    %c0_325 = arith.constant 0 : index
    %313 = vector.load %arg7[%c0_324, %c0_325] : memref<12x300xf32, #tpu.memory_space<vmem>>, vector<12x300xf32>
    %c0_326 = arith.constant 0 : index
    %c0_327 = arith.constant 0 : index
    %314 = vector.load %arg17[%c0_326, %c0_327] : memref<300x49xf32, #tpu.memory_space<vmem>>, vector<300x49xf32>
    %cst_328 = arith.constant dense<0.000000e+00> : vector<12x49xf32>
    %315 = tpu.matmul %313, %314, %cst_328 {dimension_numbers = #tpu.dot_dimension_numbers<[1], [0], [0], [1], [0, 0, 1, 1], [], []>} : vector<12x300xf32>, vector<300x49xf32>, vector<12x49xf32> -> vector<12x49xf32>
    %c0_329 = arith.constant 0 : index
    %c0_330 = arith.constant 0 : index
    %316 = vector.load %arg8[%c0_329, %c0_330] : memref<12x1xf32, #tpu.memory_space<vmem>>, vector<12x1xf32>
    %317 = vector.broadcast %316 : vector<12x1xf32> to vector<12x49xf32>
    %318 = arith.addf %315, %317 : vector<12x49xf32>
    %319 = arith.negf %318 : vector<12x49xf32>
    %320 = math.exp %319 : vector<12x49xf32>
    %cst_331 = arith.constant 1.000000e+00 : f32
    %321 = vector.broadcast %cst_331 : f32 to vector<12x49xf32>
    %322 = arith.addf %321, %320 : vector<12x49xf32>
    %323 = arith.divf %321, %322 : vector<12x49xf32>
    %324 = vector.extract_strided_slice %323 {offsets = [0, 0], sizes = [1, 49], strides = [1, 1]} : vector<12x49xf32> to vector<1x49xf32>
    %c0_332 = arith.constant 0 : index
    %c0_333 = arith.constant 0 : index
    %325 = vector.load %arg18[%c0_332, %c0_333] : memref<1x588xf32, #tpu.memory_space<vmem>>, vector<1x49xf32>
    tpu.vector_store %arg18[%c0_332, %c0_333], %324 {strides = array<i32>} : memref<1x588xf32, #tpu.memory_space<vmem>>, vector<1x49xf32>,
    %326 = vector.extract_strided_slice %323 {offsets = [1, 0], sizes = [1, 49], strides = [1, 1]} : vector<12x49xf32> to vector<1x49xf32>
    %c0_334 = arith.constant 0 : index
    %c49 = arith.constant 49 : index
    %327 = vector.load %arg18[%c0_334, %c49] : memref<1x588xf32, #tpu.memory_space<vmem>>, vector<1x49xf32>
    tpu.vector_store %arg18[%c0_334, %c49], %326 {strides = array<i32>} : memref<1x588xf32, #tpu.memory_space<vmem>>, vector<1x49xf32>,
    %328 = vector.extract_strided_slice %323 {offsets = [2, 0], sizes = [1, 49], strides = [1, 1]} : vector<12x49xf32> to vector<1x49xf32>
    %c0_335 = arith.constant 0 : index
    %c98 = arith.constant 98 : index
    %329 = vector.load %arg18[%c0_335, %c98] : memref<1x588xf32, #tpu.memory_space<vmem>>, vector<1x49xf32>
    tpu.vector_store %arg18[%c0_335, %c98], %328 {strides = array<i32>} : memref<1x588xf32, #tpu.memory_space<vmem>>, vector<1x49xf32>,
    %330 = vector.extract_strided_slice %323 {offsets = [3, 0], sizes = [1, 49], strides = [1, 1]} : vector<12x49xf32> to vector<1x49xf32>
    %c0_336 = arith.constant 0 : index
    %c147 = arith.constant 147 : index
    %331 = vector.load %arg18[%c0_336, %c147] : memref<1x588xf32, #tpu.memory_space<vmem>>, vector<1x49xf32>
    tpu.vector_store %arg18[%c0_336, %c147], %330 {strides = array<i32>} : memref<1x588xf32, #tpu.memory_space<vmem>>, vector<1x49xf32>,
    %332 = vector.extract_strided_slice %323 {offsets = [4, 0], sizes = [1, 49], strides = [1, 1]} : vector<12x49xf32> to vector<1x49xf32>
    %c0_337 = arith.constant 0 : index
    %c196 = arith.constant 196 : index
    %333 = vector.load %arg18[%c0_337, %c196] : memref<1x588xf32, #tpu.memory_space<vmem>>, vector<1x49xf32>
    tpu.vector_store %arg18[%c0_337, %c196], %332 {strides = array<i32>} : memref<1x588xf32, #tpu.memory_space<vmem>>, vector<1x49xf32>,
    %334 = vector.extract_strided_slice %323 {offsets = [5, 0], sizes = [1, 49], strides = [1, 1]} : vector<12x49xf32> to vector<1x49xf32>
    %c0_338 = arith.constant 0 : index
    %c245 = arith.constant 245 : index
    %335 = vector.load %arg18[%c0_338, %c245] : memref<1x588xf32, #tpu.memory_space<vmem>>, vector<1x49xf32>
    tpu.vector_store %arg18[%c0_338, %c245], %334 {strides = array<i32>} : memref<1x588xf32, #tpu.memory_space<vmem>>, vector<1x49xf32>,
    %336 = vector.extract_strided_slice %323 {offsets = [6, 0], sizes = [1, 49], strides = [1, 1]} : vector<12x49xf32> to vector<1x49xf32>
    %c0_339 = arith.constant 0 : index
    %c294 = arith.constant 294 : index
    %337 = vector.load %arg18[%c0_339, %c294] : memref<1x588xf32, #tpu.memory_space<vmem>>, vector<1x49xf32>
    tpu.vector_store %arg18[%c0_339, %c294], %336 {strides = array<i32>} : memref<1x588xf32, #tpu.memory_space<vmem>>, vector<1x49xf32>,
    %338 = vector.extract_strided_slice %323 {offsets = [7, 0], sizes = [1, 49], strides = [1, 1]} : vector<12x49xf32> to vector<1x49xf32>
    %c0_340 = arith.constant 0 : index
    %c343 = arith.constant 343 : index
    %339 = vector.load %arg18[%c0_340, %c343] : memref<1x588xf32, #tpu.memory_space<vmem>>, vector<1x49xf32>
    tpu.vector_store %arg18[%c0_340, %c343], %338 {strides = array<i32>} : memref<1x588xf32, #tpu.memory_space<vmem>>, vector<1x49xf32>,
    %340 = vector.extract_strided_slice %323 {offsets = [8, 0], sizes = [1, 49], strides = [1, 1]} : vector<12x49xf32> to vector<1x49xf32>
    %c0_341 = arith.constant 0 : index
    %c392 = arith.constant 392 : index
    %341 = vector.load %arg18[%c0_341, %c392] : memref<1x588xf32, #tpu.memory_space<vmem>>, vector<1x49xf32>
    tpu.vector_store %arg18[%c0_341, %c392], %340 {strides = array<i32>} : memref<1x588xf32, #tpu.memory_space<vmem>>, vector<1x49xf32>,
    %342 = vector.extract_strided_slice %323 {offsets = [9, 0], sizes = [1, 49], strides = [1, 1]} : vector<12x49xf32> to vector<1x49xf32>
    %c0_342 = arith.constant 0 : index
    %c441 = arith.constant 441 : index
    %343 = vector.load %arg18[%c0_342, %c441] : memref<1x588xf32, #tpu.memory_space<vmem>>, vector<1x49xf32>
    tpu.vector_store %arg18[%c0_342, %c441], %342 {strides = array<i32>} : memref<1x588xf32, #tpu.memory_space<vmem>>, vector<1x49xf32>,
    %344 = vector.extract_strided_slice %323 {offsets = [10, 0], sizes = [1, 49], strides = [1, 1]} : vector<12x49xf32> to vector<1x49xf32>
    %c0_343 = arith.constant 0 : index
    %c490 = arith.constant 490 : index
    %345 = vector.load %arg18[%c0_343, %c490] : memref<1x588xf32, #tpu.memory_space<vmem>>, vector<1x49xf32>
    tpu.vector_store %arg18[%c0_343, %c490], %344 {strides = array<i32>} : memref<1x588xf32, #tpu.memory_space<vmem>>, vector<1x49xf32>,
    %346 = vector.extract_strided_slice %323 {offsets = [11, 0], sizes = [1, 49], strides = [1, 1]} : vector<12x49xf32> to vector<1x49xf32>
    %c0_344 = arith.constant 0 : index
    %c539 = arith.constant 539 : index
    %347 = vector.load %arg18[%c0_344, %c539] : memref<1x588xf32, #tpu.memory_space<vmem>>, vector<1x49xf32>
    tpu.vector_store %arg18[%c0_344, %c539], %346 {strides = array<i32>} : memref<1x588xf32, #tpu.memory_space<vmem>>, vector<1x49xf32>,
    %c0_345 = arith.constant 0 : index
    %c0_346 = arith.constant 0 : index
    %348 = vector.load %arg18[%c0_345, %c0_346] : memref<1x588xf32, #tpu.memory_space<vmem>>, vector<1x588xf32>
    %c0_347 = arith.constant 0 : index
    %c0_348 = arith.constant 0 : index
    %349 = vector.load %arg9[%c0_347, %c0_348] : memref<588x100xf32, #tpu.memory_space<vmem>>, vector<588x100xf32>
    %cst_349 = arith.constant dense<0.000000e+00> : vector<1x100xf32>
    %350 = tpu.matmul %348, %349, %cst_349 {dimension_numbers = #tpu.dot_dimension_numbers<[1], [0], [0], [1], [0, 0, 1, 1], [], []>} : vector<1x588xf32>, vector<588x100xf32>, vector<1x100xf32> -> vector<1x100xf32>
    %c0_350 = arith.constant 0 : index
    %c0_351 = arith.constant 0 : index
    %351 = vector.load %arg10[%c0_350, %c0_351] : memref<1x100xf32, #tpu.memory_space<vmem>>, vector<1x100xf32>
    %352 = arith.addf %350, %351 : vector<1x100xf32>
    %353 = arith.negf %352 : vector<1x100xf32>
    %354 = math.exp %353 : vector<1x100xf32>
    %cst_352 = arith.constant 1.000000e+00 : f32
    %355 = vector.broadcast %cst_352 : f32 to vector<1x100xf32>
    %356 = arith.addf %355, %354 : vector<1x100xf32>
    %357 = arith.divf %355, %356 : vector<1x100xf32>
    %c0_353 = arith.constant 0 : index
    %c0_354 = arith.constant 0 : index
    %358 = vector.load %arg11[%c0_353, %c0_354] : memref<100x10xf32, #tpu.memory_space<vmem>>, vector<100x10xf32>
    %cst_355 = arith.constant dense<0.000000e+00> : vector<1x10xf32>
    %359 = tpu.matmul %357, %358, %cst_355 {dimension_numbers = #tpu.dot_dimension_numbers<[1], [0], [0], [1], [0, 0, 1, 1], [], []>} : vector<1x100xf32>, vector<100x10xf32>, vector<1x10xf32> -> vector<1x10xf32>
    %c0_356 = arith.constant 0 : index
    %c0_357 = arith.constant 0 : index
    %360 = vector.load %arg12[%c0_356, %c0_357] : memref<1x10xf32, #tpu.memory_space<vmem>>, vector<1x10xf32>
    %361 = arith.addf %359, %360 : vector<1x10xf32>
    %c0_358 = arith.constant 0 : index
    %c0_359 = arith.constant 0 : index
    %c0_360 = arith.constant 0 : index
    %362 = vector.load %arg13[%c0_358, %c0_359, %c0_360] : memref<1x1x10xf32, #tpu.memory_space<vmem>>, vector<1x1x10xf32>
    %363 = vector.shape_cast %362 : vector<1x1x10xf32> to vector<1x10xf32>
    %364 = vector.shape_cast %361 : vector<1x10xf32> to vector<1x1x10xf32>
    tpu.vector_store %arg13[%c0_358, %c0_359, %c0_360], %364 {strides = array<i32>} : memref<1x1x10xf32, #tpu.memory_space<vmem>>, vector<1x1x10xf32>,
    return
  }
  func.func @transform_0(%arg0: i32) -> (i32, i32, i32) {
    %c0_i32 = arith.constant 0 : i32
    %c0_i32_0 = arith.constant 0 : i32
    %c0_i32_1 = arith.constant 0 : i32
    return %arg0, %c0_i32, %c0_i32_0 : i32, i32, i32
  }
  func.func @transform_1(%arg0: i32) -> (i32, i32, i32) {
    %c0_i32 = arith.constant 0 : i32
    %c0_i32_0 = arith.constant 0 : i32
    %c0_i32_1 = arith.constant 0 : i32
    %c0_i32_2 = arith.constant 0 : i32
    return %c0_i32, %c0_i32_0, %c0_i32_1 : i32, i32, i32
  }
  func.func @transform_2(%arg0: i32) -> (i32, i32) {
    %c0_i32 = arith.constant 0 : i32
    %c0_i32_0 = arith.constant 0 : i32
    %c0_i32_1 = arith.constant 0 : i32
    return %c0_i32, %c0_i32_0 : i32, i32
  }
  func.func @transform_3(%arg0: i32) -> (i32, i32) {
    %c0_i32 = arith.constant 0 : i32
    %c0_i32_0 = arith.constant 0 : i32
    %c0_i32_1 = arith.constant 0 : i32
    return %c0_i32, %c0_i32_0 : i32, i32
  }
  func.func @transform_4(%arg0: i32) -> (i32, i32) {
    %c0_i32 = arith.constant 0 : i32
    %c0_i32_0 = arith.constant 0 : i32
    %c0_i32_1 = arith.constant 0 : i32
    return %c0_i32, %c0_i32_0 : i32, i32
  }
  func.func @transform_5(%arg0: i32) -> (i32, i32) {
    %c0_i32 = arith.constant 0 : i32
    %c0_i32_0 = arith.constant 0 : i32
    %c0_i32_1 = arith.constant 0 : i32
    return %c0_i32, %c0_i32_0 : i32, i32
  }
  func.func @transform_6(%arg0: i32) -> (i32, i32) {
    %c0_i32 = arith.constant 0 : i32
    %c0_i32_0 = arith.constant 0 : i32
    %c0_i32_1 = arith.constant 0 : i32
    return %c0_i32, %c0_i32_0 : i32, i32
  }
  func.func @transform_7(%arg0: i32) -> (i32, i32) {
    %c0_i32 = arith.constant 0 : i32
    %c0_i32_0 = arith.constant 0 : i32
    %c0_i32_1 = arith.constant 0 : i32
    return %c0_i32, %c0_i32_0 : i32, i32
  }
  func.func @transform_8(%arg0: i32) -> (i32, i32) {
    %c0_i32 = arith.constant 0 : i32
    %c0_i32_0 = arith.constant 0 : i32
    %c0_i32_1 = arith.constant 0 : i32
    return %c0_i32, %c0_i32_0 : i32, i32
  }
  func.func @transform_9(%arg0: i32) -> (i32, i32) {
    %c0_i32 = arith.constant 0 : i32
    %c0_i32_0 = arith.constant 0 : i32
    %c0_i32_1 = arith.constant 0 : i32
    return %c0_i32, %c0_i32_0 : i32, i32
  }
  func.func @transform_10(%arg0: i32) -> (i32, i32) {
    %c0_i32 = arith.constant 0 : i32
    %c0_i32_0 = arith.constant 0 : i32
    %c0_i32_1 = arith.constant 0 : i32
    return %c0_i32, %c0_i32_0 : i32, i32
  }
  func.func @transform_11(%arg0: i32) -> (i32, i32) {
    %c0_i32 = arith.constant 0 : i32
    %c0_i32_0 = arith.constant 0 : i32
    %c0_i32_1 = arith.constant 0 : i32
    return %c0_i32, %c0_i32_0 : i32, i32
  }
  func.func @transform_12(%arg0: i32) -> (i32, i32, i32) {
    %c0_i32 = arith.constant 0 : i32
    %c0_i32_0 = arith.constant 0 : i32
    %c0_i32_1 = arith.constant 0 : i32
    return %arg0, %c0_i32, %c0_i32_0 : i32, i32, i32
  }
}

</mosaic_0001>

<bundles_post_ra>
// kernel: tpu_custom_call.1
= control target key start
LH: loop header
LB: loop body
LE: loop exit
PB: predicated region body
PF: predicated region fallthrough
CT: control target
= control target key end

     0   :  { %s3760_s0 = inlined_call_operand.vmem [shape: f32[2,25,196], index: 0, kind: input, shape index: {}]   ;;  %s3761_s1 = inlined_call_operand.vmem [shape: f32[5,1,49], index: 1, kind: input, shape index: {}]   ;;  %s3762_s2 = inlined_call_operand.vmem [shape: f32[12,25], index: 2, kind: input, shape index: {}]   ;;  %s3763_s3 = inlined_call_operand.vmem [shape: f32[12,1], index: 3, kind: input, shape index: {}]   ;;  %s3764_s4 = inlined_call_operand.vmem [shape: f32[12,300], index: 4, kind: input, shape index: {}]   ;;  %s3765_s5 = inlined_call_operand.vmem [shape: f32[12,1], index: 5, kind: input, shape index: {}]   ;;  %s3766_s6 = inlined_call_operand.vmem [shape: f32[12,300], index: 6, kind: input, shape index: {}]   ;;  %s3767_s7 = inlined_call_operand.vmem [shape: f32[12,1], index: 7, kind: input, shape index: {}]   ;;  %s3768_s8 = inlined_call_operand.vmem [shape: f32[588,100], index: 8, kind: input, shape index: {}]   ;;  %s3769_s9 = inlined_call_operand.vmem [shape: f32[1,100], index: 9, kind: input, shape index: {}]   ;;  %s3770_s10 = inlined_call_operand.vmem [shape: f32[100,10], index: 10, kind: input, shape index: {}]   ;;  %s3771_s11 = inlined_call_operand.vmem [shape: f32[1,10], index: 11, kind: input, shape index: {}]   ;;  %s3772_s12 = inlined_call_operand.hbm [shape: f32[2,1,10], index: 12, kind: output, shape index: {}]  }
   0x1   :  { %3802 = sst [smem:[#allocation10_spill]] %s3760_s0 }
   0x2   :  { %3803 = sst [smem:[#allocation11_spill]] %s3762_s2 }
   0x3   :  { %3804 = sst [smem:[#allocation12_spill]] %s3763_s3 }
   0x4   :  { %17 = vsyncpa [#allocation8], 0 }
   0x5   :  { %19 = vsyncpa [#allocation8 + $0x1], 0  ;;  %s2702_s21 = smov 0   ;;  %s2704_s22 = smov 0  }
   0x6   :  { %s2706_s23 = smov 0   ;;  %s2708_s24 = smov 0  }
   0x7 LB: > { %s2723_s25 = sadd.s32 4294967295, %s2580_s24   ;;  %s2286_s26 = sadd.s32 4294967294, %s2580_s24   ;;  %s2580_s24 = sphi %s2708_s24, %s3856_s24   ;;  %s2576_s23 = sphi %s2706_s23, %s3855_s23   ;;  %s2572_s22 = sphi %s2704_s22, %s3854_s22   ;;  %s2568_s21 = sphi %s2702_s21, %s3853_s21  }
   0x8   : > { %s2727_s27 = sadd.s32 1, %s2580_s24   ;;  %s289_s28 = sadd.s32 1, %s2576_s23 }
   0x9   : > { %s286_s29 = ssub.s32 %s2580_s24, %s2727_s27  ;;  %p299_p0 = scmp.ne.s32.totalorder %s2576_s23, %s2572_s22 }
   0xa   : > { %p287_p1 = scmp.eq.s32.totalorder %s286_s29, 0  ;;  %p300_p2 = scmp.eq.s32.totalorder %s2723_s25, 1 }
   0xb   : > { %p305_p3 = scmp.ne.s32.totalorder %s2572_s22, %s2568_s21  ;;  %p306_p4 = scmp.eq.s32.totalorder %s2286_s26, 1 }
   0xc   : > { %s2738_s30 = scalar_select %p287_p1, %s2576_s23, %s289_s28  }
   0xd   : > { %p2740_p5 = por %p300_p2, %p299_p0  ;;  %p2744_p6 = por %p306_p4, %p305_p3 }
   0xe   : > { %p2289_p7 = scmp.ge.s32.totalorder %s2580_s24, 1  ;;  %p365_p8 = scmp.lt.s32.totalorder %s2580_s24, 3 }
  0x10   : > { %p366_p9 = pnand %p2289_p7, %p365_p8 }
  0x11   : > { %p406_p10 = scmp.lt.s32.totalorder (!%p366_p9), %s2723_s25, 1  ;;  %s3807_s3 = sld [smem:[#allocation12_spill]] (!%p366_p9) }
  0x12   : > { %369 = sbr.rel (%p366_p9) target bundleno = 1750 (0x6d6), region = 68  ;;  %s3808_s0 = sld [smem:[#allocation10_spill]] (!%p366_p9) }
  0x13   : > { %s3809_s2 = sld [smem:[#allocation11_spill]] (!%p366_p9)  ;;  %s2583_s19 = smov (!%p366_p9), 2  }
  0x14   : > { %s2586_s29 = smov (!%p366_p9), 14   ;;  %s3793_s16 = smov (!%p366_p9), 16  }
  0x15   : > { %s3774_s20 = smov (!%p366_p9), 38   ;;  %s3787_s28 = smov (!%p366_p9), 120  }
  0x16   : > { %s3789_s15 = smov (!%p366_p9), 114  }
  0x17   : > { %v421_v0 = vld [vmem:[%s3807_s3] sm:$0xff]  ;;  %v2582_v1 = vmov 0   ;;  %s407_s17 = scalar_select %p406_p10, %s2723_s25, 1  ;;  %vm440_vm0 = vcmask 1040384   ;;  %v422_v2 = vld [vmem:[%s3807_s3 + $0x8] sm:$0xf] }
  0x18   : > { %2444 = vset.pattern.permute.xlu0 %v2582_v1  ;;  %2445 = vset.pattern.permute.xlu2 %v2582_v1  ;;  %vm433_vm1 = vcmask 203776   ;;  %v2447_v12 = vld [vmem:[%s3761_s1 + $0x3] ss:$0 sm:$0xff]  ;;  %v2448_v14 = vld [vmem:[%s3761_s1 + $0x1] ss:$0 sm:$0xff]  ;;  %s3791_s3 = smov 126  }
  0x19   : > { %425 = vperm.xlu0 %2444, %v421_v0   ;;  %2446 = vset.pattern.permute.xlu1 %v2582_v1  ;;  %s2349_s18 = sshll.u32 %s407_s17, 6  ;;  %v411_v11 = vld [vmem:[%s3809_s2] sm:$0xff]  ;;  %v412_v13 = vld [vmem:[%s3809_s2 + $0x8] sm:$0xf]  ;;  %s2584_s17 = smov 7  }
  0x1a   : > { %s410_s26 = scalar_lea.vmem %s3808_s0, %s2349_s18  ;;  %v2449_v15 = vld [vmem:[%s3761_s1 + $0x3] ss:$0 sm:$0xff]  ;;  %774 = vrot.lane.b32.xlu2 %v2448_v14, %s2584_s17  ;;  %s2585_s18 = smov 9   ;;  %v2450_v16 = vld [vmem:[%s3761_s1 + $0x1] ss:$0 sm:$0xff] }
  0x1b   : > { %v419_v3 = vld [vmem:[%s410_s26 + $0x30] sm:$0x1]  ;;  %v420_v4 = vld [vmem:[%s410_s26 + $0x38] sm:$0x1]  ;;  %v417_v5 = vld [vmem:[%s410_s26 + $0x20] sm:$0xff]  ;;  %942 = vrot.lane.b32.xlu1 %v2450_v16, %s2586_s29  ;;  %s3795_s0 = smov 8  }
  0x1c   : > { %2292 = vmatpush.msk.msra.mxu0 %vm440_vm0, %v419_v3  ;;  %2295 = vmatpush.msk.msra.mxu2 %vm440_vm0, %v420_v4  ;;  %v418_v6 = vld [vmem:[%s410_s26 + $0x28] sm:$0xff]  ;;  %v415_v7 = vld [vmem:[%s410_s26 + $0x10] sm:$0xff]  ;;  %v416_v8 = vld [vmem:[%s410_s26 + $0x18] sm:$0xff]  ;;  %s3775_s2 = smov 117  }
  0x1d   : > { %v413_v9 = vld [vmem:[%s410_s26] sm:$0xff]  ;;  %v414_v10 = vld [vmem:[%s410_s26 + $0x8] sm:$0xff]  ;;  %s3779_s26 = smov 119  }
  0x1e   : > { %460 = vmatpush.msra.mxu0 %v417_v5  ;;  %483 = vmatpush.msra.mxu2 %v418_v6  ;;  %v2451_v17 = vld [vmem:[%s3761_s1 + $0x1] ss:$0 sm:$0xff]  ;;  %v2452_v18 = vld [vmem:[%s3761_s1 + $0x3] ss:$0 sm:$0xff] }
  0x1f   : > { %v2453_v19 = vld [vmem:[%s3761_s1 + $0x1] ss:$0 sm:$0xff]  ;;  %v2456_v22 = vld [vmem:[%s3761_s1 + $0x3] ss:$0 sm:$0xff] }
  0x20   : > { %461 = vmatpush.msra.mxu0 %v415_v7  ;;  %484 = vmatpush.msra.mxu2 %v416_v8  ;;  %v2454_v20 = vld [vmem:[%s3761_s1 + $0x1] ss:$0 sm:$0xff]  ;;  %v2457_v23 = vld [vmem:[%s3761_s1 + $0x3] ss:$0 sm:$0xff] }
  0x21   : > { %430 = vperm.xlu0 %2444, %v422_v2   ;;  %v2455_v21 = vld [vmem:[%s3761_s1 + $0x1] ss:$0 sm:$0xff] }
  0x22   : > { %462 = vmatpush.msra.mxu0 %v413_v9  ;;  %485 = vmatpush.msra.mxu2 %v414_v10 }
  0x23   : > { %2293 = vmatmul.msk.f32.vlgmr.msra.gmra.mxu0 %vm433_vm1, %v411_v11  ;;  %2296 = vmatmul.msk.f32.vlgmr.msra.gmra.mxu2 %vm433_vm1, %v411_v11 }
  0x24   : > { %962 = vrot.lane.b32.xlu2 %v2451_v17, %s2586_s29  ;;  %858 = vrot.lane.b32.xlu1 %v2453_v19, %s2584_s17 }
  0x29   : > { %754 = vrot.lane.b32.xlu0 %v2447_v12, %s2583_s19 }
  0x2b   : > { %2294 = vmatmul.msk.f32.gmra.mxu0 %vm433_vm1, %v412_v13  ;;  %2297 = vmatmul.msk.f32.gmra.mxu2 %vm433_vm1, %v412_v13 }
  0x2c   : > { %878 = vrot.lane.b32.xlu2 %v2454_v20, %s2584_s17  ;;  %1006 = vrot.lane.b32.xlu1 %v2456_v22, %s3793_s16  ;;  %v2592_v22 = vmov 0.0   ;;  %s2607_s16 = smov 25  }
  0x31   : > { %922 = vrot.lane.b32.xlu0 %v2449_v15, %s2585_s18 }
  0x34   : > { %838 = vrot.lane.b32.xlu2 %v2457_v23, %s2585_s18  ;;  %s3773_s18 = smov 87  }
  0x39   : > { %690 = vrot.lane.b32.xlu0 %v2452_v18, %s2583_s19  ;;  %s3777_s19 = smov 127  }
  0x41   : > { %794 = vrot.lane.b32.xlu0 %v2455_v21, %s2584_s17 }
  0x74   : > { %v2836_v23 = vpop.permute.xlu2 %774 }
  0x8b   : > { %v426_v24 = vpop.permute.xlu0 %425 }
  0x93   : > { %v431_v30 = vpop.permute.xlu0 %430 }
  0xa0   : > { %v464_v25 = vpop.f32.mrf.mxu0 }
  0xa1   : > { %v465_v26 = vadd.f32 %v464_v25, %v426_v24 }
  0xa3   : > { %v2298_v27 = vmul.f32 -1.442695, %v465_v26 }
  0xa5   : > { %2482 = vpow2.f32 %v2298_v27  ;;  %v2844_v27 = vpop.permute.xlu1 %942 }
  0xa6   : > { %v487_v28 = vpop.f32.mrf.mxu2 }
  0xa7   : > { %v488_v29 = vadd.f32 %v487_v28, %v426_v24  ;;  %v2838_v24 = vpop.permute.xlu2 %962  ;;  %v2846_v28 = vpop.permute.xlu0 %754 }
  0xa8   : > { %v467_v31 = vpop.f32.mrf.mxu0 }
  0xa9   : > { %v2299_v32 = vmul.f32 -1.442695, %v488_v29  ;;  %v468_v33 = vadd.f32 %v467_v31, %v431_v30  ;;  %v2857_v31 = vld [vmem:[%s3761_s1 + $0x1] ss:$0 sm:$0xff] }
  0xab   : > { %v2483_v34 = vpop.eup %2482  ;;  %2484 = vpow2.f32 %v2299_v32  ;;  %v2300_v35 = vmul.f32 -1.442695, %v468_v33 }
  0xac   : > { %v505_v36 = vadd.f32 1.0, %v2483_v34 }
  0xad   : > { %2486 = vpow2.f32 %v2300_v35 }
  0xae   : > { %2488 = vrcp.f32 %v505_v36  ;;  %v490_v37 = vpop.f32.mrf.mxu2  ;;  %v520_v47 = vand.u32 2147483648, %v505_v36  ;;  %v518_v50 = vand.u32 2147483647, %v505_v36  ;;  %vm514_vm3 = vweird.f32 %v505_v36 }
  0xaf   : > { %v491_v38 = vadd.f32 %v490_v37, %v431_v30  ;;  %v2840_v25 = vpop.permute.xlu2 %878  ;;  %v2849_v30 = vpop.permute.xlu1 %858 }
  0xb0   : > { %v521_v56 = vor.u32 1.1754944e-38, %v520_v47  ;;  %vm519_vm5 = vcmp.eq.f32.partialorder %v518_v50, 8.507059e+37  ;;  %v2870_v34 = vpop.permute.xlu0 %922  ;;  %v2459_v50 = vld [vmem:[%s3761_s1 + $0x1] ss:$0 sm:$0xff] }
  0xb1   : > { %v2485_v39 = vpop.eup %2484  ;;  %v2301_v40 = vmul.f32 -1.442695, %v491_v38 }
  0xb2   : > { %v506_v41 = vadd.f32 1.0, %v2485_v39 }
  0xb3   : > { %v2487_v42 = vpop.eup %2486  ;;  %2490 = vpow2.f32 %v2301_v40 }
  0xb4   : > { %v2489_v43 = vpop.eup %2488  ;;  %2492 = vrcp.f32 %v506_v41  ;;  %v2811_v44 = vadd.f32 1.0, %v2487_v42  ;;  %v535_v63 = vand.u32 2147483648, %v506_v41  ;;  %vm529_vm7 = vweird.f32 %v506_v41 }
  0xb5   : > { %v510_v45 = vmul.f32 %v2489_v43, %v505_v36  ;;  %vm515_vm2 = vweird.f32 %v2489_v43  ;;  %v533_v1 = vand.u32 2147483647, %v506_v41 }
  0xb6   : > { %2494 = vrcp.f32 %v2811_v44  ;;  %vm516_vm4 = vmor %vm514_vm3, %vm515_vm2  ;;  %v536_v6 = vor.u32 1.1754944e-38, %v535_v63  ;;  %vm544_vm12 = vweird.f32 %v2811_v44  ;;  %v550_v13 = vand.u32 2147483648, %v2811_v44 }
  0xb7   : > { %v511_v46 = vsub.f32 1.0, %v510_v45  ;;  %vm534_vm9 = vcmp.eq.f32.partialorder %v533_v1, 8.507059e+37  ;;  %v548_v15 = vand.u32 2147483647, %v2811_v44  ;;  %vm569_vm2 = vcmask 64512   ;;  %v2842_v26 = vpop.permute.xlu2 %838  ;;  %v2877_v35 = vpop.permute.xlu1 %1006 }
  0xb8   : > { %v551_v20 = vor.u32 1.1754944e-38, %v550_v13  ;;  %vm579_vm3 = vcmask 531912   ;;  %573 = vst.msk [vmem:[#allocation2 + $0x10] sm:$0xff] %vm569_vm2, %v2592_v22  ;;  %v2881_v36 = vpop.permute.xlu0 %690 }
  0xb9   : > { %v2491_v48 = vpop.eup %2490  ;;  %v512_v49 = vmul.f32 %v2489_v43, %v511_v46  ;;  %vm549_vm1 = vcmp.eq.f32.partialorder %v548_v15, 8.507059e+37  ;;  %583 = vst.msk [vmem:[#allocation2 + $0x10] sm:$0xff] %vm579_vm3, %v2592_v22 }
  0xba   : > { %v2493_v51 = vpop.eup %2492  ;;  %v508_v52 = vadd.f32 1.0, %v2491_v48  ;;  %570 = vst.msk [vmem:[#allocation2] sm:$0xff] %vm569_vm2, %v2592_v22 }
  0xbb   : > { %v513_v53 = vadd.f32 %v2489_v43, %v512_v49  ;;  %v525_v54 = vmul.f32 %v2493_v51, %v506_v41  ;;  %vm530_vm6 = vweird.f32 %v2493_v51  ;;  %575 = vst.msk [vmem:[#allocation2 + $0x20] sm:$0xff] %vm569_vm2, %v2592_v22  ;;  %v2461_v41 = vld [vmem:[%s3761_s1 + $0x1] ss:$0 sm:$0xff] }
  0xbc   : > { %v2495_v55 = vpop.eup %2494  ;;  %2496 = vrcp.f32 %v508_v52  ;;  %vm531_vm8 = vmor %vm529_vm7, %vm530_vm6  ;;  %v565_v9 = vand.u32 2147483648, %v508_v52  ;;  %v563_v11 = vand.u32 2147483647, %v508_v52  ;;  %vm559_vm13 = vweird.f32 %v508_v52  ;;  %577 = vst.msk [vmem:[#allocation2 + $0x30] sm:$0xff] %vm569_vm2, %v2592_v22 }
  0xbd   : > { %v517_v57 = vsel %vm516_vm4, %v2489_v43, %v513_v53  ;;  %v526_v58 = vsub.f32 1.0, %v525_v54  ;;  %v540_v59 = vmul.f32 %v2495_v55, %v2811_v44  ;;  %vm545_vm10 = vweird.f32 %v2495_v55  ;;  %580 = vst.msk [vmem:[#allocation2] sm:$0xff] %vm579_vm3, %v2592_v22 }
  0xbe   : > { %v522_v60 = vsel %vm519_vm5, %v521_v56, %v517_v57  ;;  %vm546_vm14 = vmor %vm544_vm12, %vm545_vm10  ;;  %v566_v16 = vor.u32 1.1754944e-38, %v565_v9  ;;  %vm564_vm0 = vcmp.eq.f32.partialorder %v563_v11, 8.507059e+37  ;;  %585 = vst.msk [vmem:[#allocation2 + $0x20] sm:$0xff] %vm579_vm3, %v2592_v22  ;;  %vm597_vm4 = vcmask 465984   ;;  %v2458_v56 = vld [vmem:[%s3761_s1 + $0x1] ss:$0 sm:$0xff] }
  0xbf   : > { %601 = vrot.lane.b32.xlu2 %v522_v60, %s3773_s18  ;;  %591 = vrot.lane.b32.xlu1 %v522_v60, %s3795_s0  ;;  %v527_v61 = vmul.f32 %v2493_v51, %v526_v58  ;;  %v541_v62 = vsub.f32 1.0, %v540_v59  ;;  %587 = vst.msk [vmem:[#allocation2 + $0x30] sm:$0xff] %vm579_vm3, %v2592_v22  ;;  %vm571_vm5 = vcmask 60416   ;;  %vm581_vm6 = vcmask 527816  }
  0xc0   : > { %576 = vst.msk [vmem:[#allocation2 + $0x28] sm:$0xf] %vm571_vm5, %v2592_v22  ;;  %vm646_vm7 = vcmask 400384   ;;  %v2887_v40 = vpop.permute.xlu0 %794  ;;  %vm648_vm10 = vcmask 396288   ;;  %vm1077_vm12 = vcmask 359424  }
  0xc1   : > { %v528_v0 = vadd.f32 %v2493_v51, %v527_v61  ;;  %v542_v5 = vmul.f32 %v2495_v55, %v541_v62  ;;  %586 = vst.msk [vmem:[#allocation2 + $0x28] sm:$0xf] %vm581_vm6, %v2592_v22 }
  0xc2   : > { %v2497_v2 = vpop.eup %2496  ;;  %572 = vst.msk [vmem:[#allocation2 + $0x8] sm:$0xf] %vm571_vm5, %v2592_v22 }
  0xc3   : > { %v532_v3 = vsel %vm531_vm8, %v2493_v51, %v528_v0  ;;  %v555_v4 = vmul.f32 %v2497_v2, %v508_v52  ;;  %vm560_vm11 = vweird.f32 %v2497_v2  ;;  %v543_v12 = vadd.f32 %v2495_v55, %v542_v5  ;;  %574 = vst.msk [vmem:[#allocation2 + $0x18] sm:$0xf] %vm571_vm5, %v2592_v22 }
  0xc4   : > { %v537_v8 = vsel %vm534_vm9, %v536_v6, %v532_v3  ;;  %vm561_vm15 = vmor %vm559_vm13, %vm560_vm11  ;;  %578 = vst.msk [vmem:[#allocation2 + $0x38] sm:$0xf] %vm571_vm5, %v2592_v22  ;;  %vm620_vm8 = vcmask 310272   ;;  %vm599_vm9 = vcmask 461888   ;;  %vm1084_vm11 = vcmask 1043456  }
  0xc5   : > { %v556_v7 = vsub.f32 1.0, %v555_v4  ;;  %v547_v18 = vsel %vm546_vm14, %v2495_v55, %v543_v12  ;;  %582 = vst.msk [vmem:[#allocation2 + $0x8] sm:$0xf] %vm581_vm6, %v2592_v22  ;;  %vm1197_vm5 = vcmask 125952  }
  0xc6   : > { %v552_v21 = vsel %vm549_vm1, %v551_v20, %v547_v18  ;;  %584 = vst.msk [vmem:[#allocation2 + $0x18] sm:$0xf] %vm581_vm6, %v2592_v22 }
  0xc7   : > { %614 = vrot.lane.b32.xlu2 %v537_v8, %s3774_s20  ;;  %612 = vrot.lane.b32.xlu1 %v522_v60, %s3774_s20  ;;  %v557_v10 = vmul.f32 %v2497_v2, %v556_v7  ;;  %588 = vst.msk [vmem:[#allocation2 + $0x38] sm:$0xf] %vm581_vm6, %v2592_v22  ;;  %vm1201_vm6 = vcmask 658952  }
  0xc8   : > { %1198 = vst.msk [vmem:[#allocation3 + $0x8] sm:$0xf] %vm1197_vm5, %v2592_v22 }
  0xc9   : > { %v558_v14 = vadd.f32 %v2497_v2, %v557_v10  ;;  %1202 = vst.msk [vmem:[#allocation3 + $0x8] sm:$0xf] %vm1201_vm6, %v2592_v22 }
  0xcb   : > { %v562_v17 = vsel %vm561_vm15, %v2497_v2, %v558_v14 }
  0xcc   : > { %v567_v19 = vsel %vm564_vm0, %v566_v16, %v562_v17 }
  0xcd   : > { %618 = vrot.lane.b32.xlu0 %v567_v19, %s3774_s20 }
  0xcf   : > { %616 = vrot.lane.b32.xlu2 %v552_v21, %s3774_s20  ;;  %628 = vrot.lane.b32.xlu1 %v537_v8, %s3775_s2  ;;  %s3781_s20 = smov 113  }
  0xd5   : > { %630 = vrot.lane.b32.xlu0 %v567_v19, %s3775_s2  ;;  %s3785_s2 = smov 121  }
  0xd7   : > { %593 = vrot.lane.b32.xlu1 %v552_v21, %s3795_s0 }
  0xdf   : > { %603 = vrot.lane.b32.xlu1 %v552_v21, %s3773_s18  ;;  %s3783_s18 = smov 112  }
 0x119   : > { %v602_v29 = vpop.permute.xlu2 %601 }
 0x11a   : > { %608 = vst.msk [vmem:[#allocation2 + $0x10] sm:$0xff] %vm597_vm4, %v602_v29 }
 0x121   : > { %v2861_v32 = vld [vmem:[#allocation2 + $0x10] sm:$0xff]  ;;  %v615_v39 = vpop.permute.xlu2 %614 }
 0x122   : > { %676 = vrot.lane.b32.xlu0 %v2861_v32, %s3777_s19  ;;  %v656_v33 = vmul.f32 %v2857_v31, %v2861_v32  ;;  %v965_v37 = vmul.f32 %v2838_v24, %v2861_v32 }
 0x124   : > { %658 = vst.msk [vmem:[#allocation4 + $0xc] sm:$0xff] %vm646_vm7, %v656_v33 }
 0x129   : > { %v617_v48 = vpop.permute.xlu2 %616 }
 0x12a   : > { %825 = vrot.lane.b32.xlu0 %v2861_v32, %s3787_s28 }
 0x131   : > { %v592_v38 = vpop.permute.xlu1 %591 }
 0x132   : > { %598 = vst.msk [vmem:[#allocation2] sm:$0xff] %vm597_vm4, %v592_v38  ;;  %969 = vrot.lane.b32.xlu0 %v965_v37, %s3789_s15 }
 0x139   : > { %v2892_v42 = vld [vmem:[#allocation2] sm:$0xff]  ;;  %v613_v43 = vpop.permute.xlu1 %612 }
 0x13a   : > { %v621_v44 = vsel %vm620_vm8, %v613_v43, %v615_v39  ;;  %664 = vrot.lane.b32.xlu2 %v2892_v42, %s3777_s19  ;;  %v841_v45 = vmul.f32 %v2842_v26, %v2892_v42  ;;  %v693_v46 = vmul.f32 %v2881_v36, %v2892_v42  ;;  %v644_v47 = vmul.f32 %v2461_v41, %v2892_v42 }
 0x13b   : > { %626 = vst.msk [vmem:[#allocation2 + $0x20] sm:$0xff] %vm597_vm4, %v621_v44  ;;  %v777_v52 = vmul.f32 %v2836_v23, %v2892_v42  ;;  %v945_v58 = vmul.f32 %v2844_v27, %v2892_v42 }
 0x13c   : > { %845 = vrot.lane.b32.xlu1 %v841_v45, %s3779_s26  ;;  %697 = vrot.lane.b32.xlu0 %v693_v46, %s3791_s3  ;;  %647 = vst.msk [vmem:[#allocation4] sm:$0xff] %vm646_vm7, %v644_v47  ;;  %v1066_v46 = vld [vmem:[%s3765_s5 + $0x8] sm:$0xf]  ;;  %v1009_v47 = vmul.f32 %v2877_v35, %v2892_v42 }
 0x13f   : > { %v619_v49 = vpop.permute.xlu0 %618 }
 0x140   : > { %v622_v51 = vsel %vm620_vm8, %v617_v48, %v619_v49  ;;  %v797_v48 = vmul.f32 %v2887_v40, %v2861_v32  ;;  %vm1195_vm8 = vcmask 130048  }
 0x141   : > { %627 = vst.msk [vmem:[#allocation2 + $0x28] sm:$0xf] %vm599_vm9, %v622_v51  ;;  %v629_v53 = vpop.permute.xlu1 %628 }
 0x142   : > { %635 = vst.msk [vmem:[#allocation2 + $0x30] sm:$0xff] %vm597_vm4, %v629_v53  ;;  %781 = vrot.lane.b32.xlu2 %v777_v52, %s3785_s2  ;;  %v893_v54 = vld [vmem:[#allocation2 + $0x20] sm:$0xff] }
 0x143   : > { %v711_v55 = vmul.f32 %v2459_v50, %v893_v54  ;;  %v925_v14 = vmul.f32 %v2870_v34, %v893_v54  ;;  %v757_v15 = vmul.f32 %v893_v54, %v2846_v28  ;;  %v861_v17 = vmul.f32 %v893_v54, %v2849_v30  ;;  %1196 = vst.msk [vmem:[#allocation3] sm:$0xff] %vm1195_vm8, %v2592_v22 }
 0x144   : > { %897 = vrot.lane.b32.xlu1 %v893_v54, %s3787_s28 }
 0x145   : > { %713 = vst.msk [vmem:[#allocation4 + $0x3c] sm:$0xff] %vm646_vm7, %v711_v55 }
 0x147   : > { %v631_v57 = vpop.permute.xlu0 %630 }
 0x148   : > { %636 = vst.msk [vmem:[#allocation2 + $0x38] sm:$0xf] %vm599_vm9, %v631_v57  ;;  %v706_v62 = vld [vmem:[#allocation2 + $0x28] sm:$0xf] }
 0x149   : > { %v715_v59 = vld [vmem:[#allocation2 + $0x30] sm:$0xff]  ;;  %v594_v60 = vpop.permute.xlu1 %593  ;;  %v712_v63 = vmul.f32 %v2459_v50, %v706_v62  ;;  %v894_v21 = vld [vmem:[#allocation2 + $0x28] sm:$0xf] }
 0x14a   : > { %600 = vst.msk [vmem:[#allocation2 + $0x8] sm:$0xf] %vm599_vm9, %v594_v60  ;;  %949 = vrot.lane.b32.xlu2 %v945_v58, %s3789_s15  ;;  %741 = vrot.lane.b32.xlu0 %v715_v59, %s3777_s19  ;;  %v721_v61 = vmul.f32 %v2458_v56, %v715_v59  ;;  %v881_v1 = vmul.f32 %v2840_v25, %v715_v59  ;;  %v726_v37 = vld [vmem:[#allocation2 + $0x28] sm:$0xf] }
 0x14b   : > { %714 = vst.msk [vmem:[#allocation4 + $0x44] sm:$0xf] %vm648_vm10, %v712_v63  ;;  %v854_v38 = vld [vmem:[#allocation2 + $0x28] sm:$0xf] }
 0x14c   : > { %723 = vst.msk [vmem:[#allocation4 + $0x48] sm:$0xff] %vm646_vm7, %v721_v61  ;;  %v750_v39 = vld [vmem:[#allocation2 + $0x28] sm:$0xf] }
 0x14d   : > { %v758_v43 = vmul.f32 %v2846_v28, %v750_v39 }
 0x14f   : > { %v716_v0 = vld [vmem:[#allocation2 + $0x38] sm:$0xf] }
 0x150   : > { %v722_v2 = vmul.f32 %v2458_v56, %v716_v0  ;;  %v906_v16 = vld [vmem:[#allocation2 + $0x38] sm:$0xf] }
 0x151   : > { %v638_v3 = vld [vmem:[#allocation2 + $0x8] sm:$0xf]  ;;  %v604_v4 = vpop.permute.xlu1 %603  ;;  %v874_v18 = vld [vmem:[#allocation2 + $0x38] sm:$0xf] }
 0x152   : > { %609 = vst.msk [vmem:[#allocation2 + $0x18] sm:$0xf] %vm599_vm9, %v604_v4  ;;  %885 = vrot.lane.b32.xlu2 %v881_v1, %s3785_s2  ;;  %909 = vrot.lane.b32.xlu0 %v715_v59, %s3787_s28  ;;  %v645_v5 = vmul.f32 %v2461_v41, %v638_v3  ;;  %v938_v6 = vld [vmem:[#allocation2 + $0x8] sm:$0xf]  ;;  %v882_v20 = vmul.f32 %v2840_v25, %v874_v18  ;;  %v738_v29 = vld [vmem:[#allocation2 + $0x38] sm:$0xf] }
 0x153   : > { %724 = vst.msk [vmem:[#allocation4 + $0x50] sm:$0xf] %vm648_vm10, %v722_v2  ;;  %v946_v7 = vmul.f32 %v2844_v27, %v938_v6  ;;  %v834_v11 = vld [vmem:[#allocation2 + $0x8] sm:$0xf]  ;;  %v862_v41 = vmul.f32 %v2849_v30, %v854_v38  ;;  %vm1199_vm9 = vcmask 663048  }
 0x154   : > { %649 = vst.msk [vmem:[#allocation4 + $0x8] sm:$0xf] %vm648_vm10, %v645_v5  ;;  %v842_v12 = vmul.f32 %v2842_v26, %v834_v11  ;;  %v661_v13 = vld [vmem:[#allocation2 + $0x8] sm:$0xf] }
 0x155   : > { %v685_v19 = vld [vmem:[#allocation2 + $0x8] sm:$0xf]  ;;  %1200 = vst.msk [vmem:[#allocation3] sm:$0xff] %vm1199_vm9, %v2592_v22 }
 0x156   : > { %v694_v26 = vmul.f32 %v2881_v36, %v685_v19  ;;  %v810_v27 = vld [vmem:[#allocation2 + $0x8] sm:$0xf] }
 0x157   : > { %v1002_v25 = vld [vmem:[#allocation2 + $0x8] sm:$0xf] }
 0x158   : > { %v1010_v36 = vmul.f32 %v2877_v35, %v1002_v25  ;;  %v770_v51 = vld [vmem:[#allocation2 + $0x8] sm:$0xf] }
 0x159   : > { %v651_v8 = vld [vmem:[#allocation2 + $0x18] sm:$0xf]  ;;  %v978_v52 = vld [vmem:[#allocation2 + $0x8] sm:$0xf]  ;;  %v778_v53 = vmul.f32 %v2836_v23, %v770_v51 }
 0x15a   : > { %v673_v9 = vld [vmem:[#allocation2 + $0x18] sm:$0xf]  ;;  %729 = vrot.lane.b32.xlu0 %v893_v54, %s3777_s19  ;;  %951 = vrot.lane.b32.xlu2 %v946_v7, %s3789_s15  ;;  %v657_v10 = vmul.f32 %v2857_v31, %v651_v8  ;;  %v918_v31 = vld [vmem:[#allocation2 + $0x28] sm:$0xf] }
 0x15b   : > { %678 = vrot.lane.b32.xlu1 %v673_v9, %s3777_s19  ;;  %v926_v33 = vmul.f32 %v2870_v34, %v918_v31  ;;  %v790_v34 = vld [vmem:[#allocation2 + $0x18] sm:$0xf] }
 0x15c   : > { %659 = vst.msk [vmem:[#allocation4 + $0x14] sm:$0xf] %vm648_vm10, %v657_v10  ;;  %v798_v44 = vmul.f32 %v2887_v40, %v790_v34  ;;  %v822_v45 = vld [vmem:[#allocation2 + $0x18] sm:$0xf] }
 0x15d   : > { %v958_v56 = vld [vmem:[#allocation2 + $0x18] sm:$0xf] }
 0x15e   : > { %v966_v57 = vmul.f32 %v2838_v24, %v958_v56 }
 0x162   : > { %847 = vrot.lane.b32.xlu2 %v842_v12, %s3779_s26  ;;  %666 = vrot.lane.b32.xlu0 %v661_v13, %s3777_s19 }
 0x163   : > { %929 = vrot.lane.b32.xlu1 %v925_v14, %s3779_s26 }
 0x16a   : > { %911 = vrot.lane.b32.xlu2 %v906_v16, %s3787_s28  ;;  %761 = vrot.lane.b32.xlu0 %v757_v15, %s3791_s3 }
 0x16b   : > { %865 = vrot.lane.b32.xlu1 %v861_v17, %s3785_s2 }
 0x172   : > { %899 = vrot.lane.b32.xlu2 %v894_v21, %s3787_s28  ;;  %887 = vrot.lane.b32.xlu0 %v882_v20, %s3785_s2 }
 0x173   : > { %699 = vrot.lane.b32.xlu1 %v694_v26, %s3791_s3 }
 0x17a   : > { %815 = vrot.lane.b32.xlu2 %v810_v27, %s3787_s28  ;;  %813 = vrot.lane.b32.xlu0 %v2892_v42, %s3787_s28 }
 0x17b   : > { %743 = vrot.lane.b32.xlu1 %v738_v29, %s3777_s19 }
 0x182   : > { %931 = vrot.lane.b32.xlu2 %v926_v33, %s3779_s26  ;;  %1015 = vrot.lane.b32.xlu0 %v1010_v36, %s3783_s18  ;;  %s2614_s26 = smov 18  }
 0x183   : > { %731 = vrot.lane.b32.xlu1 %v726_v37, %s3777_s19  ;;  %s2602_s19 = smov 28  }
 0x18a   : > { %867 = vrot.lane.b32.xlu2 %v862_v41, %s3785_s2  ;;  %993 = vrot.lane.b32.xlu0 %v2861_v32, %s3781_s20 }
 0x18b   : > { %763 = vrot.lane.b32.xlu1 %v758_v43, %s3791_s3  ;;  %s2606_s3 = smov 22  }
 0x192   : > { %981 = vrot.lane.b32.xlu0 %v2892_v42, %s3781_s20  ;;  %803 = vrot.lane.b32.xlu2 %v798_v44, %s3785_s2  ;;  %v990_v42 = vld [vmem:[#allocation2 + $0x18] sm:$0xf] }
 0x193   : > { %827 = vrot.lane.b32.xlu1 %v822_v45, %s3787_s28  ;;  %s3799_s28 = smov 124  }
 0x194   : > { %v677_v28 = vpop.permute.xlu0 %676  ;;  %v665_v30 = vpop.permute.xlu2 %664 }
 0x195   : > { %682 = vst.msk [vmem:[#allocation4 + $0x24] sm:$0xff] %vm646_vm7, %v677_v28 }
 0x196   : > { %670 = vst.msk [vmem:[#allocation4 + $0x18] sm:$0xff] %vm646_vm7, %v665_v30 }
 0x19a   : > { %1074 = vperm.xlu0 %2444, %v1066_v46   ;;  %1013 = vrot.lane.b32.xlu2 %v1009_v47, %s3783_s18  ;;  %s2610_s18 = smov 31  }
 0x19b   : > { %801 = vrot.lane.b32.xlu1 %v797_v48, %s3785_s2 }
 0x19c   : > { %v826_v49 = vpop.permute.xlu0 %825  ;;  %v782_v50 = vpop.permute.xlu2 %781 }
 0x19d   : > { %831 = vst.msk [vmem:[#allocation4 + $0x9c] sm:$0xff] %vm646_vm7, %v826_v49 }
 0x19e   : > { %787 = vst.msk [vmem:[#allocation4 + $0x78] sm:$0xff] %vm646_vm7, %v782_v50  ;;  %v1036_v50 = vld [vmem:[#allocation4 + $0x48] sm:$0xff] }
 0x1a2   : > { %983 = vrot.lane.b32.xlu2 %v978_v52, %s3781_s20  ;;  %v1035_v52 = vld [vmem:[#allocation4 + $0x40] sm:$0xff] }
 0x1a3   : > { %783 = vrot.lane.b32.xlu1 %v778_v53, %s3785_s2  ;;  %s2604_s2 = smov 10  }
 0x1a4   : > { %v970_v32 = vpop.permute.xlu0 %969  ;;  %v950_v35 = vpop.permute.xlu2 %949 }
 0x1a5   : > { %975 = vst.msk [vmem:[#allocation4 + $0xfc] sm:$0xff] %vm646_vm7, %v970_v32  ;;  %v1042_v40 = vld [vmem:[#allocation4 + $0x78] sm:$0xff] }
 0x1a6   : > { %955 = vst.msk [vmem:[#allocation4 + $0xf0] sm:$0xff] %vm646_vm7, %v950_v35  ;;  %1088 = vmatpush.msrb.mxu2 %v1042_v40 }
 0x1ab   : > { %995 = vrot.lane.b32.xlu1 %v990_v42, %s3781_s20  ;;  %v1065_v42 = vld [vmem:[%s3765_s5] sm:$0xff]  ;;  %s2603_s20 = smov 29  }
 0x1ac   : > { %v886_v54 = vpop.permute.xlu2 %885  ;;  %1069 = vperm.xlu2 %2445, %v1065_v42  }
 0x1ad   : > { %891 = vst.msk [vmem:[#allocation4 + $0xc0] sm:$0xff] %vm646_vm7, %v886_v54  ;;  %v1057_v63 = vld [vmem:[#allocation4 + $0xf0] sm:$0xff]  ;;  %v2462_v54 = vld [vmem:[%s3761_s1] ss:$0 sm:$0xff] }
 0x1ae   : > { %v698_v55 = vpop.permute.xlu0 %697  ;;  %v846_v23 = vpop.permute.xlu1 %845  ;;  %1395 = vrot.lane.b32.xlu0 %v2462_v54, %s2586_s29  ;;  %s3811_s29 = smov 119  }
 0x1af   : > { %703 = vst.msk [vmem:[#allocation4 + $0x30] sm:$0xff] %vm646_vm7, %v698_v55 }
 0x1b0   : > { %851 = vst.msk [vmem:[#allocation4 + $0xa8] sm:$0xff] %vm646_vm7, %v846_v23  ;;  %v2464_v23 = vld [vmem:[%s3761_s1 + $0x4] ss:$0 sm:$0xff] }
 0x1b3   : > { %971 = vrot.lane.b32.xlu1 %v966_v57, %s3789_s15  ;;  %s2601_s15 = smov 11   ;;  %v1030_v57 = vld [vmem:[#allocation4 + $0x18] sm:$0xff] }
 0x1b4   : > { %v952_v58 = vpop.permute.xlu2 %951  ;;  %v1051_v21 = vld [vmem:[#allocation4 + $0xc0] sm:$0xff] }
 0x1b5   : > { %956 = vst.msk [vmem:[#allocation4 + $0xf8] sm:$0xf] %vm648_vm10, %v952_v58  ;;  %v1022_v58 = vld [vmem:[%s3764_s4 + $0x8] sm:$0xff] }
 0x1b6   : > { %v898_v59 = vpop.permute.xlu1 %897  ;;  %v1033_v40 = vld [vmem:[#allocation4 + $0x30] sm:$0xff] }
 0x1b7   : > { %903 = vst.msk [vmem:[#allocation4 + $0xcc] sm:$0xff] %vm646_vm7, %v898_v59  ;;  %v1048_v33 = vld [vmem:[#allocation4 + $0xa8] sm:$0xff] }
 0x1b8   : > { %v2466_v59 = vld [vmem:[%s3761_s1] ss:$0 sm:$0xff] }
 0x1b9   : > { %1579 = vrot.lane.b32.xlu2 %v2466_v59, %s2602_s19  ;;  %s2613_s19 = smov 15  }
 0x1bb   : > { %1375 = vrot.lane.b32.xlu1 %v2464_v23, %s2601_s15  ;;  %s3812_s15 = smov 126  }
 0x1bc   : > { %v742_v60 = vpop.permute.xlu0 %741  ;;  %v848_v61 = vpop.permute.xlu2 %847  ;;  %v1058_v62 = vld [vmem:[#allocation4 + $0xf8] sm:$0xff] }
 0x1bd   : > { %747 = vst.msk [vmem:[#allocation4 + $0x60] sm:$0xff] %vm646_vm7, %v742_v60  ;;  %1111 = vmatpush.msra.mxu3 %v1058_v62  ;;  %v2463_v62 = vld [vmem:[%s3761_s1 + $0x1] ss:$0 sm:$0xff] }
 0x1be   : > { %852 = vst.msk [vmem:[#allocation4 + $0xb0] sm:$0xf] %vm648_vm10, %v848_v61  ;;  %1599 = vrot.lane.b32.xlu0 %v2463_v62, %s2603_s20  ;;  %s2605_s20 = smov 24  }
 0x1bf   : > { %1112 = vmatpush.msra.mxu3 %v1057_v63  ;;  %v1029_v63 = vld [vmem:[#allocation4 + $0x10] sm:$0xff] }
 0x1c4   : > { %v910_v0 = vpop.permute.xlu0 %909  ;;  %v912_v24 = vpop.permute.xlu2 %911  ;;  %v1039_v28 = vld [vmem:[#allocation4 + $0x60] sm:$0xff] }
 0x1c5   : > { %915 = vst.msk [vmem:[#allocation4 + $0xd8] sm:$0xff] %vm646_vm7, %v910_v0  ;;  %v2467_v0 = vld [vmem:[%s3761_s1 + $0x3] ss:$0 sm:$0xff] }
 0x1c6   : > { %916 = vst.msk [vmem:[#allocation4 + $0xe0] sm:$0xf] %vm648_vm10, %v912_v24  ;;  %v1028_v24 = vld [vmem:[#allocation4 + $0x8] sm:$0xff]  ;;  %1355 = vrot.lane.b32.xlu1 %v2467_v0, %s2604_s2  ;;  %s2608_s2 = smov 32  }
 0x1cc   : > { %v730_v1 = vpop.permute.xlu0 %729  ;;  %v900_v2 = vpop.permute.xlu2 %899  ;;  %v1054_v15 = vld [vmem:[#allocation4 + $0xd8] sm:$0xff] }
 0x1cd   : > { %735 = vst.msk [vmem:[#allocation4 + $0x54] sm:$0xff] %vm646_vm7, %v730_v1  ;;  %v679_v3 = vpop.permute.xlu1 %678  ;;  %v1021_v1 = vld [vmem:[%s3764_s4] sm:$0xff] }
 0x1ce   : > { %904 = vst.msk [vmem:[#allocation4 + $0xd4] sm:$0xf] %vm648_vm10, %v900_v2  ;;  %v1027_v2 = vld [vmem:[#allocation4] sm:$0xff] }
 0x1cf   : > { %683 = vst.msk [vmem:[#allocation4 + $0x2c] sm:$0xf] %vm648_vm10, %v679_v3  ;;  %v1025_v3 = vld [vmem:[%s3764_s4 + $0x20] sm:$0xf] }
 0x1d4   : > { %v816_v4 = vpop.permute.xlu2 %815  ;;  %v667_v5 = vpop.permute.xlu0 %666  ;;  %v1037_v48 = vld [vmem:[#allocation4 + $0x50] sm:$0xff] }
 0x1d5   : > { %820 = vst.msk [vmem:[#allocation4 + $0x98] sm:$0xf] %vm648_vm10, %v816_v4  ;;  %v930_v6 = vpop.permute.xlu1 %929  ;;  %v1053_v16 = vld [vmem:[#allocation4 + $0xd0] sm:$0xff] }
 0x1d6   : > { %671 = vst.msk [vmem:[#allocation4 + $0x20] sm:$0xf] %vm648_vm10, %v667_v5  ;;  %v1032_v55 = vld [vmem:[#allocation4 + $0x28] sm:$0xff] }
 0x1d7   : > { %935 = vst.msk [vmem:[#allocation4 + $0xe4] sm:$0xff] %vm646_vm7, %v930_v6  ;;  %v2465_v6 = vld [vmem:[%s3761_s1 + $0x3] ss:$0 sm:$0xff] }
 0x1d8   : > { %1539 = vrot.lane.b32.xlu0 %v2465_v6, %s2605_s20  ;;  %s2611_s20 = smov 21  }
 0x1dc   : > { %v932_v7 = vpop.permute.xlu2 %931  ;;  %v762_v8 = vpop.permute.xlu0 %761  ;;  %v1046_v49 = vld [vmem:[#allocation4 + $0x98] sm:$0xff] }
 0x1dd   : > { %936 = vst.msk [vmem:[#allocation4 + $0xec] sm:$0xf] %vm648_vm10, %v932_v7  ;;  %v866_v9 = vpop.permute.xlu1 %865  ;;  %v1031_v56 = vld [vmem:[#allocation4 + $0x20] sm:$0xff] }
 0x1de   : > { %767 = vst.msk [vmem:[#allocation4 + $0x6c] sm:$0xff] %vm646_vm7, %v762_v8  ;;  %v1055_v14 = vld [vmem:[#allocation4 + $0xe0] sm:$0xff] }
 0x1df   : > { %871 = vst.msk [vmem:[#allocation4 + $0xb4] sm:$0xff] %vm646_vm7, %v866_v9  ;;  %v1024_v9 = vld [vmem:[%s3764_s4 + $0x18] sm:$0xf] }
 0x1e4   : > { %v868_v10 = vpop.permute.xlu2 %867  ;;  %v888_v11 = vpop.permute.xlu0 %887  ;;  %v1056_v12 = vld [vmem:[#allocation4 + $0xe8] sm:$0xff] }
 0x1e5   : > { %872 = vst.msk [vmem:[#allocation4 + $0xbc] sm:$0xf] %vm648_vm10, %v868_v10  ;;  %v700_v13 = vpop.permute.xlu1 %699  ;;  %1113 = vmatpush.msra.mxu3 %v1056_v12  ;;  %v1023_v10 = vld [vmem:[%s3764_s4 + $0x10] sm:$0xff]  ;;  %v1026_v12 = vld [vmem:[%s3764_s4 + $0x28] sm:$0xf] }
 0x1e6   : > { %892 = vst.msk [vmem:[#allocation4 + $0xc8] sm:$0xf] %vm648_vm10, %v888_v11  ;;  %v1049_v27 = vld [vmem:[#allocation4 + $0xb0] sm:$0xff] }
 0x1e7   : > { %704 = vst.msk [vmem:[#allocation4 + $0x38] sm:$0xf] %vm648_vm10, %v700_v13  ;;  %1114 = vmatpush.msra.mxu3 %v1055_v14  ;;  %v2468_v13 = vld [vmem:[%s3761_s1 + $0x1] ss:$0 sm:$0xff]  ;;  %v2469_v14 = vld [vmem:[%s3761_s1 + $0x4] ss:$0 sm:$0xff] }
 0x1e8   : > { %1507 = vrot.lane.b32.xlu0 %v2468_v13, %s2606_s3  ;;  %1559 = vrot.lane.b32.xlu2 %v2469_v14, %s2607_s16  ;;  %s2609_s3 = smov 4   ;;  %s3798_s16 = smov 99  }
 0x1e9   : > { %1115 = vmatpush.msra.mxu3 %v1054_v15  ;;  %v2470_v15 = vld [vmem:[%s3761_s1 + $0x1] ss:$0 sm:$0xff] }
 0x1ea   : > { %1323 = vrot.lane.b32.xlu1 %v2470_v15, %s3795_s0  ;;  %s3816_s0 = smov 121  }
 0x1eb   : > { %1116 = vmatpush.msra.mxu3 %v1053_v16  ;;  %v2471_v16 = vld [vmem:[%s3761_s1 + $0x4] ss:$0 sm:$0xff] }
 0x1ec   : > { %v814_v17 = vpop.permute.xlu0 %813  ;;  %v804_v18 = vpop.permute.xlu2 %803  ;;  %v1050_v26 = vld [vmem:[#allocation4 + $0xb8] sm:$0xff] }
 0x1ed   : > { %819 = vst.msk [vmem:[#allocation4 + $0x90] sm:$0xff] %vm646_vm7, %v814_v17  ;;  %v744_v19 = vpop.permute.xlu1 %743  ;;  %v1052_v20 = vld [vmem:[#allocation4 + $0xc8] sm:$0xff] }
 0x1ee   : > { %808 = vst.msk [vmem:[#allocation4 + $0x8c] sm:$0xf] %vm648_vm10, %v804_v18  ;;  %1117 = vmatpush.msra.mxu3 %v1052_v20  ;;  %v1034_v53 = vld [vmem:[#allocation4 + $0x38] sm:$0xff]  ;;  %v2472_v17 = vld [vmem:[%s3761_s1] ss:$0 sm:$0xff] }
 0x1ef   : > { %748 = vst.msk [vmem:[#allocation4 + $0x68] sm:$0xf] %vm648_vm10, %v744_v19  ;;  %v2473_v18 = vld [vmem:[%s3761_s1 + $0x4] ss:$0 sm:$0xff]  ;;  %v2474_v19 = vld [vmem:[%s3761_s1 + $0x3] ss:$0 sm:$0xff] }
 0x1f0   : > { %1118 = vmatpush.msra.mxu3 %v1051_v21  ;;  %1651 = vrot.lane.b32.xlu0 %v2471_v16, %s2608_s2  ;;  %v2475_v20 = vld [vmem:[%s3761_s1] ss:$0 sm:$0xff]  ;;  %v2476_v21 = vld [vmem:[%s3761_s1 + $0x3] ss:$0 sm:$0xff]  ;;  %s2612_s2 = smov 3  }
 0x1f1   : > { %1303 = vrot.lane.b32.xlu2 %v2472_v17, %s2584_s17  ;;  %s2616_s17 = smov 1   ;;  %v2481_v16 = vld [vmem:[%s3761_s1] ss:$0 sm:$0xff] }
 0x1f2   : > { %1119 = vmatpush.msra.mxu3 %v1050_v26  ;;  %1283 = vrot.lane.b32.xlu1 %v2473_v18, %s2609_s3  ;;  %v2477_v26 = vld [vmem:[%s3761_s1 + $0x1] ss:$0 sm:$0xff]  ;;  %s3810_s3 = smov 16  }
 0x1f4   : > { %1120 = vmatpush.msra.mxu3 %v1049_v27  ;;  %v1016_v29 = vpop.permute.xlu0 %1015  ;;  %v1014_v31 = vpop.permute.xlu2 %1013  ;;  %v1045_v51 = vld [vmem:[#allocation4 + $0x90] sm:$0xff]  ;;  %v2478_v27 = vld [vmem:[%s3761_s1 + $0x4] ss:$0 sm:$0xff] }
 0x1f5   : > { %1020 = vst.msk [vmem:[#allocation4 + $0x128] sm:$0xf] %vm648_vm10, %v1016_v29  ;;  %v732_v25 = vpop.permute.xlu1 %731  ;;  %v2479_v29 = vld [vmem:[%s3761_s1 + $0x3] ss:$0 sm:$0xff] }
 0x1f6   : > { %1019 = vst.msk [vmem:[#allocation4 + $0x120] sm:$0xff] %vm646_vm7, %v1014_v31  ;;  %1121 = vmatpush.msra.mxu3 %v1048_v33  ;;  %v1040_v45 = vld [vmem:[#allocation4 + $0x68] sm:$0xff] }
 0x1f7   : > { %736 = vst.msk [vmem:[#allocation4 + $0x5c] sm:$0xf] %vm648_vm10, %v732_v25 }
 0x1f8   : > { %1631 = vrot.lane.b32.xlu0 %v2474_v19, %s2610_s18  ;;  %s2615_s18 = smov 17  }
 0x1f9   : > { %1487 = vrot.lane.b32.xlu2 %v2475_v20, %s2611_s20  ;;  %s3800_s20 = smov 100  }
 0x1fa   : > { %1262 = vrot.lane.b32.xlu1 %v2476_v21, %s2612_s2  ;;  %s3814_s2 = smov 117  }
 0x1fc   : > { %v994_v36 = vpop.permute.xlu0 %993  ;;  %v984_v37 = vpop.permute.xlu2 %983  ;;  %v1064_v38 = vld [vmem:[#allocation4 + $0x128] sm:$0xf] }
 0x1fd   : > { %999 = vst.msk [vmem:[#allocation4 + $0x114] sm:$0xff] %vm646_vm7, %v994_v36  ;;  %v764_v39 = vpop.permute.xlu1 %763  ;;  %2317 = vmatpush.msk.msrb.mxu0 %vm1084_vm11, %v1064_v38  ;;  %v1063_v41 = vld [vmem:[#allocation4 + $0x120] sm:$0xff] }
 0x1fe   : > { %988 = vst.msk [vmem:[#allocation4 + $0x110] sm:$0xf] %vm648_vm10, %v984_v37  ;;  %v1038_v30 = vld [vmem:[#allocation4 + $0x58] sm:$0xff]  ;;  %v2480_v37 = vld [vmem:[%s3761_s1 + $0x1] ss:$0 sm:$0xff] }
 0x1ff   : > { %768 = vst.msk [vmem:[#allocation4 + $0x74] sm:$0xf] %vm648_vm10, %v764_v39  ;;  %1145 = vmatpush.msrb.mxu0 %v1063_v41 }
 0x200   : > { %1415 = vrot.lane.b32.xlu0 %v2477_v26, %s2613_s19  ;;  %s3813_s19 = smov 114  }
 0x201   : > { %1467 = vrot.lane.b32.xlu2 %v2478_v27, %s2614_s26  ;;  %s2617_s26 = smov 105  }
 0x202   : > { %1447 = vrot.lane.b32.xlu1 %v2479_v29, %s2615_s18  ;;  %s3797_s18 = smov 103  }
 0x204   : > { %v982_v43 = vpop.permute.xlu0 %981 }
 0x205   : > { %987 = vst.msk [vmem:[#allocation4 + $0x108] sm:$0xff] %vm646_vm7, %v982_v43  ;;  %v828_v34 = vpop.permute.xlu1 %827  ;;  %v1061_v7 = vld [vmem:[#allocation4 + $0x110] sm:$0xff] }
 0x206   : > { %832 = vst.msk [vmem:[#allocation4 + $0xa4] sm:$0xf] %vm648_vm10, %v828_v34  ;;  %v1041_v44 = vld [vmem:[#allocation4 + $0x70] sm:$0xff]  ;;  %v1070_v31 = vpop.permute.xlu2 %1069 }
 0x207   : > { %1089 = vmatpush.msrb.mxu2 %v1041_v44 }
 0x209   : > { %1090 = vmatpush.msrb.mxu2 %v1040_v45  ;;  %1230 = vrot.lane.b32.xlu2 %v2480_v37, %s2616_s17  ;;  %s3796_s17 = smov 104  }
 0x20b   : > { %1091 = vmatpush.msrb.mxu2 %v1039_v28 }
 0x20c   : > { %v1060_v8 = vld [vmem:[#allocation4 + $0x108] sm:$0xff]  ;;  %v1075_v43 = vpop.permute.xlu0 %1074 }
 0x20d   : > { %1092 = vmatpush.msrb.mxu2 %v1038_v30  ;;  %v802_v46 = vpop.permute.xlu1 %801  ;;  %v1047_v47 = vld [vmem:[#allocation4 + $0xa0] sm:$0xff] }
 0x20e   : > { %807 = vst.msk [vmem:[#allocation4 + $0x84] sm:$0xff] %vm646_vm7, %v802_v46  ;;  %1122 = vmatpush.msra.mxu3 %v1047_v47 }
 0x20f   : > { %1093 = vmatpush.msrb.mxu2 %v1037_v48 }
 0x210   : > { %1123 = vmatpush.msra.mxu3 %v1046_v49 }
 0x211   : > { %1094 = vmatpush.msrb.mxu2 %v1036_v50 }
 0x212   : > { %1124 = vmatpush.msra.mxu3 %v1045_v51 }
 0x213   : > { %1095 = vmatpush.msrb.mxu2 %v1035_v52 }
 0x215   : > { %1096 = vmatpush.msrb.mxu2 %v1034_v53  ;;  %v784_v32 = vpop.permute.xlu1 %783  ;;  %v1044_v35 = vld [vmem:[#allocation4 + $0x88] sm:$0xff] }
 0x216   : > { %788 = vst.msk [vmem:[#allocation4 + $0x80] sm:$0xf] %vm648_vm10, %v784_v32  ;;  %1125 = vmatpush.msra.mxu3 %v1044_v35 }
 0x217   : > { %1097 = vmatpush.msrb.mxu2 %v1033_v40 }
 0x219   : > { %1098 = vmatpush.msrb.mxu2 %v1032_v55 }
 0x21b   : > { %1099 = vmatpush.msrb.mxu2 %v1031_v56 }
 0x21d   : > { %1100 = vmatpush.msrb.mxu2 %v1030_v57  ;;  %v996_v60 = vpop.permute.xlu1 %995  ;;  %v1043_v61 = vld [vmem:[#allocation4 + $0x80] sm:$0xff] }
 0x21e   : > { %1000 = vst.msk [vmem:[#allocation4 + $0x11c] sm:$0xf] %vm648_vm10, %v996_v60  ;;  %1126 = vmatpush.msra.mxu3 %v1043_v61 }
 0x21f   : > { %1101 = vmatpush.msrb.mxu2 %v1029_v63  ;;  %1127 = vmatmul.f32.vlgmr.msra.gmra.mxu3 %v1022_v58 }
 0x220   : > { %v3150_v22 = vpop.permute.xlu0 %1395 }
 0x221   : > { %1102 = vmatpush.msrb.mxu2 %v1028_v24 }
 0x223   : > { %1103 = vmatpush.msrb.mxu2 %v1027_v2 }
 0x224   : > { %1104 = vmatmul.f32.vlgmr.msrb.gmra.mxu2 %v1021_v1 }
 0x225   : > { %v972_v4 = vpop.permute.xlu1 %971  ;;  %v1062_v5 = vld [vmem:[#allocation4 + $0x118] sm:$0xff] }
 0x226   : > { %976 = vst.msk [vmem:[#allocation4 + $0x104] sm:$0xf] %vm648_vm10, %v972_v4  ;;  %1146 = vmatpush.msrb.mxu0 %v1062_v5 }
 0x227   : > { %1130 = vmatmul.f32.gmra.mxu3 %v1025_v3  ;;  %v3119_v3 = vpop.permute.xlu2 %1579 }
 0x228   : > { %1147 = vmatpush.msrb.mxu0 %v1061_v7 }
 0x22a   : > { %1148 = vmatpush.msrb.mxu0 %v1060_v8 }
 0x22c   : > { %1107 = vmatmul.f32.gmra.mxu2 %v1024_v9 }
 0x22d   : > { %v1059_v11 = vld [vmem:[#allocation4 + $0x100] sm:$0xff]  ;;  %v3124_v5 = vpop.permute.xlu1 %1375 }
 0x22e   : > { %1149 = vmatpush.msrb.mxu0 %v1059_v11 }
 0x22f   : > { %2318 = vmatmul.msk.f32.vlgmr.msrb.gmra.mxu0 %vm1077_vm12, %v1023_v10 }
 0x230   : > { %v3161_v26 = vpop.permute.xlu0 %1599 }
 0x237   : > { %2319 = vmatmul.msk.f32.gmra.mxu0 %vm1077_vm12, %v1026_v12 }
 0x238   : > { %v3128_v7 = vpop.permute.xlu1 %1355 }
 0x242   : > { %v3122_v4 = vpop.permute.xlu2 %1559 }
 0x24b   : > { %v3126_v6 = vpop.permute.xlu2 %1303 }
 0x253   : > { %v3130_v8 = vpop.permute.xlu2 %1487 }
 0x25b   : > { %v3135_v10 = vpop.permute.xlu2 %1467 }
 0x25c   : > { %v3132_v9 = vpop.permute.xlu1 %1323 }
 0x263   : > { %v3140_v12 = vpop.permute.xlu2 %1230 }
 0x264   : > { %v3138_v11 = vpop.permute.xlu1 %1283 }
 0x26c   : > { %v3142_v13 = vpop.permute.xlu1 %1262 }
 0x274   : > { %v3144_v15 = vpop.permute.xlu1 %1447 }
 0x2a2   : > { %v1128_v25 = vpop.f32.mrf.mxu3 }
 0x2a7   : > { %v1105_v33 = vpop.f32.mrf.mxu2 }
 0x2a8   : > { %v1106_v36 = vadd.f32 %v1105_v33, %v1070_v31 }
 0x2aa   : > { %v1129_v38 = vadd.f32 %v1128_v25, %v1106_v36  ;;  %v1131_v28 = vpop.f32.mrf.mxu3  ;;  %v3173_v25 = vpop.permute.xlu0 %1539 }
 0x2ac   : > { %v1151_v39 = vpop.f32.mrf.mxu0 }
 0x2ad   : > { %v1152_v41 = vadd.f32 %v1151_v39, %v1129_v38 }
 0x2af   : > { %v2320_v34 = vmul.f32 -1.442695, %v1152_v41  ;;  %v1108_v44 = vpop.f32.mrf.mxu2 }
 0x2b0   : > { %v1109_v45 = vadd.f32 %v1108_v44, %v1075_v43 }
 0x2b1   : > { %2498 = vpow2.f32 %v2320_v34 }
 0x2b2   : > { %v1132_v30 = vadd.f32 %v1131_v28, %v1109_v45  ;;  %v1508_v45 = vpop.permute.xlu0 %1507 }
 0x2b4   : > { %v1154_v46 = vpop.f32.mrf.mxu0 }
 0x2b5   : > { %v1155_v47 = vadd.f32 %v1154_v46, %v1132_v30 }
 0x2b7   : > { %v2499_v48 = vpop.eup %2498  ;;  %v2321_v49 = vmul.f32 -1.442695, %v1155_v47 }
 0x2b8   : > { %v1163_v50 = vadd.f32 1.0, %v2499_v48 }
 0x2b9   : > { %2500 = vpow2.f32 %v2321_v49 }
 0x2ba   : > { %2502 = vrcp.f32 %v1163_v50  ;;  %v1176_v40 = vand.u32 2147483648, %v1163_v50  ;;  %v1174_v54 = vand.u32 2147483647, %v1163_v50  ;;  %vm1170_vm14 = vweird.f32 %v1163_v50  ;;  %v1652_v47 = vpop.permute.xlu0 %1651 }
 0x2bc   : > { %v1177_v56 = vor.u32 1.1754944e-38, %v1176_v40  ;;  %vm1175_vm0 = vcmp.eq.f32.partialorder %v1174_v54, 8.507059e+37 }
 0x2bf   : > { %v2501_v51 = vpop.eup %2500 }
 0x2c0   : > { %v2503_v52 = vpop.eup %2502  ;;  %v1164_v53 = vadd.f32 1.0, %v2501_v51 }
 0x2c1   : > { %v1166_v32 = vmul.f32 %v2503_v52, %v1163_v50  ;;  %vm1171_vm13 = vweird.f32 %v2503_v52 }
 0x2c2   : > { %2504 = vrcp.f32 %v1164_v53  ;;  %vm1172_vm15 = vmor %vm1170_vm14, %vm1171_vm13  ;;  %v1191_v61 = vand.u32 2147483648, %v1164_v53  ;;  %v1189_v63 = vand.u32 2147483647, %v1164_v53  ;;  %vm1185_vm2 = vweird.f32 %v1164_v53 }
 0x2c3   : > { %v1167_v35 = vsub.f32 1.0, %v1166_v32  ;;  %vm1213_vm13 = vcmask 527488   ;;  %vm1211_vm14 = vcmask 531584  }
 0x2c4   : > { %v1192_v24 = vor.u32 1.1754944e-38, %v1191_v61  ;;  %vm1190_vm4 = vcmp.eq.f32.partialorder %v1189_v63, 8.507059e+37 }
 0x2c5   : > { %v1168_v42 = vmul.f32 %v2503_v52, %v1167_v35 }
 0x2c7   : > { %v1169_v55 = vadd.f32 %v2503_v52, %v1168_v42 }
 0x2c8   : > { %v2505_v23 = vpop.eup %2504 }
 0x2c9   : > { %v1173_v57 = vsel %vm1172_vm15, %v2503_v52, %v1169_v55  ;;  %v1181_v58 = vmul.f32 %v2505_v23, %v1164_v53  ;;  %vm1186_vm1 = vweird.f32 %v2505_v23  ;;  %v1632_v53 = vpop.permute.xlu0 %1631 }
 0x2ca   : > { %v1178_v59 = vsel %vm1175_vm0, %v1177_v56, %v1173_v57  ;;  %vm1187_vm3 = vmor %vm1185_vm2, %vm1186_vm1 }
 0x2cb   : > { %1205 = vrot.lane.b32.xlu1 %v1178_v59, %s3810_s3  ;;  %v1182_v60 = vsub.f32 1.0, %v1181_v58 }
 0x2cd   : > { %v1183_v62 = vmul.f32 %v2505_v23, %v1182_v60 }
 0x2cf   : > { %v1184_v0 = vadd.f32 %v2505_v23, %v1183_v62 }
 0x2d1   : > { %v1188_v1 = vsel %vm1187_vm3, %v2505_v23, %v1184_v0 }
 0x2d2   : > { %v1193_v2 = vsel %vm1190_vm4, %v1192_v24, %v1188_v1 }
 0x2d3   : > { %1207 = vrot.lane.b32.xlu2 %v1193_v2, %s3810_s3  ;;  %s3815_s3 = smov 120  }
 0x32d   : > { %v1208_v14 = vpop.permute.xlu2 %1207 }
 0x32e   : > { %1214 = vst.msk [vmem:[#allocation3 + $0x8] sm:$0xf] %vm1213_vm13, %v1208_v14 }
 0x335   : > { %v1216_v17 = vld [vmem:[#allocation3 + $0x8] sm:$0xf] }
 0x336   : > { %v1222_v18 = vmul.f32 %v2481_v16, %v1216_v17  ;;  %v1339_v30 = vld [vmem:[#allocation3 + $0x8] sm:$0xf] }
 0x337   : > { %v1246_v48 = vld [vmem:[#allocation3 + $0x8] sm:$0xf] }
 0x338   : > { %1224 = vst.msk [vmem:[#allocation5 + $0x8] sm:$0xf] %vm648_vm10, %v1222_v18  ;;  %v1523_v49 = vld [vmem:[#allocation3 + $0x8] sm:$0xf] }
 0x339   : > { %v1319_v51 = vld [vmem:[#allocation3 + $0x8] sm:$0xf] }
 0x33a   : > { %v1327_v52 = vmul.f32 %v3132_v9, %v1319_v51  ;;  %v1615_v32 = vld [vmem:[#allocation3 + $0x8] sm:$0xf] }
 0x33b   : > { %v1299_v40 = vld [vmem:[#allocation3 + $0x8] sm:$0xf] }
 0x33c   : > { %v1307_v42 = vmul.f32 %v3126_v6, %v1299_v40  ;;  %v1431_v54 = vld [vmem:[#allocation3 + $0x8] sm:$0xf] }
 0x33d   : > { %v1206_v19 = vpop.permute.xlu1 %1205  ;;  %v1371_v23 = vld [vmem:[#allocation3 + $0x8] sm:$0xf] }
 0x33e   : > { %1212 = vst.msk [vmem:[#allocation3] sm:$0xff] %vm1211_vm14, %v1206_v19  ;;  %v1379_v56 = vmul.f32 %v3124_v5, %v1371_v23  ;;  %v1483_v58 = vld [vmem:[#allocation3 + $0x8] sm:$0xf]  ;;  %vm1860_vm14 = vcmask 801792  }
 0x33f   : > { %v1351_v59 = vld [vmem:[#allocation3 + $0x8] sm:$0xf]  ;;  %v1491_v61 = vmul.f32 %v3130_v8, %v1483_v58 }
 0x340   : > { %v1575_v60 = vld [vmem:[#allocation3 + $0x8] sm:$0xf]  ;;  %v1359_v62 = vmul.f32 %v3128_v7, %v1351_v59 }
 0x341   : > { %v1583_v63 = vmul.f32 %v3119_v3, %v1575_v60  ;;  %v1258_v0 = vld [vmem:[#allocation3 + $0x8] sm:$0xf] }
 0x342   : > { %v1503_v24 = vld [vmem:[#allocation3 + $0x8] sm:$0xf]  ;;  %v1266_v2 = vmul.f32 %v3142_v13, %v1258_v0 }
 0x343   : > { %v1555_v1 = vld [vmem:[#allocation3 + $0x8] sm:$0xf] }
 0x344   : > { %v1463_v18 = vld [vmem:[#allocation3 + $0x8] sm:$0xf] }
 0x345   : > { %v3152_v20 = vld [vmem:[#allocation3] sm:$0xff]  ;;  %v1278_v19 = vld [vmem:[#allocation3 + $0x8] sm:$0xf] }
 0x346   : > { %1342 = vrot.lane.b32.xlu2 %v3152_v20, %s3811_s29  ;;  %1249 = vrot.lane.b32.xlu0 %v3152_v20, %s3812_s15  ;;  %v1398_v21 = vmul.f32 %v3150_v22, %v3152_v20  ;;  %v1221_v27 = vmul.f32 %v2481_v16, %v3152_v20  ;;  %v1562_v29 = vmul.f32 %v3122_v4, %v3152_v20 }
 0x347   : > { %v1582_v31 = vmul.f32 %v3119_v3, %v3152_v20  ;;  %v1378_v33 = vmul.f32 %v3124_v5, %v3152_v20  ;;  %v1542_v36 = vmul.f32 %v3173_v25, %v3152_v20  ;;  %v1326_v37 = vmul.f32 %v3132_v9, %v3152_v20  ;;  %v1627_v3 = vld [vmem:[#allocation3 + $0x8] sm:$0xf] }
 0x348   : > { %1402 = vrot.lane.b32.xlu1 %v1398_v21, %s3813_s19  ;;  %1223 = vst.msk [vmem:[#allocation5] sm:$0xff] %vm646_vm7, %v1221_v27  ;;  %v1602_v38 = vmul.f32 %v3161_v26, %v3152_v20  ;;  %v1286_v39 = vmul.f32 %v3138_v11, %v3152_v20  ;;  %v1306_v41 = vmul.f32 %v3126_v6, %v3152_v20  ;;  %v1535_v9 = vld [vmem:[#allocation3 + $0x8] sm:$0xf] }
 0x349   : > { %v1358_v43 = vmul.f32 %v3128_v7, %v3152_v20  ;;  %v1470_v34 = vmul.f32 %v3135_v10, %v3152_v20  ;;  %v1490_v44 = vmul.f32 %v3130_v8, %v3152_v20  ;;  %v1510_v28 = vmul.f32 %v1508_v45, %v3152_v20  ;;  %v1647_v8 = vld [vmem:[#allocation3 + $0x8] sm:$0xf] }
 0x34a   : > { %v1265_v46 = vmul.f32 %v3142_v13, %v3152_v20  ;;  %v1654_v50 = vmul.f32 %v1652_v47, %v3152_v20  ;;  %v1634_v35 = vmul.f32 %v1632_v53, %v3152_v20  ;;  %v1450_v55 = vmul.f32 %v3144_v15, %v3152_v20 }
 0x34b   : > { %v1233_v57 = vmul.f32 %v3140_v12, %v3152_v20  ;;  %v1511_v5 = vmul.f32 %v1508_v45, %v1503_v24  ;;  %v1563_v6 = vmul.f32 %v3122_v4, %v1555_v1  ;;  %v1635_v14 = vmul.f32 %v1632_v53, %v1627_v3  ;;  %v1443_v4 = vld [vmem:[#allocation3 + $0x8] sm:$0xf] }
 0x34c   : > { %v1655_v16 = vmul.f32 %v1652_v47, %v1647_v8  ;;  %v1543_v13 = vmul.f32 %v3173_v25, %v1535_v9  ;;  %v1451_v21 = vmul.f32 %v3144_v15, %v1443_v4  ;;  %v1471_v27 = vmul.f32 %v3135_v10, %v1463_v18 }
 0x34e   : > { %1526 = vrot.lane.b32.xlu2 %v3152_v20, %s2617_s26  ;;  %1566 = vrot.lane.b32.xlu0 %v1562_v29, %s3797_s18  ;;  %s3801_s18 = smov 110   ;;  %v1287_v29 = vmul.f32 %v3138_v11, %v1278_v19  ;;  %v1411_v11 = vld [vmem:[#allocation3 + $0x8] sm:$0xf] }
 0x350   : > { %1586 = vrot.lane.b32.xlu1 %v1582_v31, %s3800_s20  ;;  %s2627_s20 = smov 125   ;;  %v1416_v31 = vpop.permute.xlu0 %1415 }
 0x356   : > { %1382 = vrot.lane.b32.xlu2 %v1378_v33, %s3814_s2  ;;  %1546 = vrot.lane.b32.xlu0 %v1542_v36, %s3796_s17  ;;  %s2623_s17 = smov 118   ;;  %v1226_v33 = vld [vmem:[#allocation3 + $0x8] sm:$0xf] }
 0x357   : > { %v1595_v36 = vld [vmem:[#allocation3 + $0x8] sm:$0xf] }
 0x358   : > { %1330 = vrot.lane.b32.xlu1 %v1326_v37, %s3815_s3  ;;  %v1234_v37 = vmul.f32 %v3140_v12, %v1226_v33  ;;  %v1603_v15 = vmul.f32 %v3161_v26, %v1595_v36  ;;  %v1419_v12 = vmul.f32 %v1416_v31, %v1411_v11 }
 0x35e   : > { %1606 = vrot.lane.b32.xlu2 %v1602_v38, %s3798_s16  ;;  %1290 = vrot.lane.b32.xlu0 %v1286_v39, %s3799_s28  ;;  %s2625_s16 = smov 107   ;;  %s2626_s28 = smov 106   ;;  %v1391_v39 = vld [vmem:[#allocation3 + $0x8] sm:$0xf] }
 0x35f   : > { %v1399_v26 = vmul.f32 %v3150_v22, %v1391_v39  ;;  %v1711_v22 = vld [vmem:[%s3767_s7 + $0x8] sm:$0xf] }
 0x360   : > { %1310 = vrot.lane.b32.xlu1 %v1306_v41, %s3816_s0 }
 0x366   : > { %1362 = vrot.lane.b32.xlu2 %v1358_v43, %s2623_s17  ;;  %1474 = vrot.lane.b32.xlu0 %v1470_v34, %s3801_s18  ;;  %s2628_s18 = smov 96   ;;  %v1418_v43 = vmul.f32 %v1416_v31, %v3152_v20 }
 0x368   : > { %1494 = vrot.lane.b32.xlu1 %v1490_v44, %s2625_s16 }
 0x36e   : > { %1514 = vrot.lane.b32.xlu2 %v1510_v28, %s2626_s28  ;;  %1344 = vrot.lane.b32.xlu0 %v1339_v30, %s3811_s29  ;;  %s2629_s29 = smov 98  }
 0x370   : > { %1269 = vrot.lane.b32.xlu1 %v1265_v46, %s2627_s20 }
 0x376   : > { %1251 = vrot.lane.b32.xlu2 %v1246_v48, %s3812_s15  ;;  %1528 = vrot.lane.b32.xlu0 %v1523_v49, %s2617_s26  ;;  %s2630_s15 = smov 97   ;;  %s3817_s26 = smov 112  }
 0x378   : > { %1658 = vrot.lane.b32.xlu1 %v1654_v50, %s2628_s18 }
 0x37e   : > { %1332 = vrot.lane.b32.xlu2 %v1327_v52, %s3815_s3  ;;  %1620 = vrot.lane.b32.xlu0 %v1615_v32, %s2629_s29  ;;  %s2631_s3 = smov 111  }
 0x380   : > { %1638 = vrot.lane.b32.xlu1 %v1634_v35, %s2630_s15 }
 0x386   : > { %1312 = vrot.lane.b32.xlu2 %v1307_v42, %s3816_s0  ;;  %1436 = vrot.lane.b32.xlu0 %v1431_v54, %s3817_s26  ;;  %s3818_s0 = smov 127  }
 0x388   : > { %1454 = vrot.lane.b32.xlu1 %v1450_v55, %s2631_s3 }
 0x38e   : > { %1434 = vrot.lane.b32.xlu2 %v3152_v20, %s3817_s26  ;;  %1384 = vrot.lane.b32.xlu0 %v1379_v56, %s3814_s2  ;;  %s3819_s26 = smov 100  }
 0x390   : > { %1237 = vrot.lane.b32.xlu1 %v1233_v57, %s3818_s0 }
 0x396   : > { %1496 = vrot.lane.b32.xlu2 %v1491_v61, %s2625_s16  ;;  %1364 = vrot.lane.b32.xlu0 %v1359_v62, %s2623_s17  ;;  %s3820_s16 = smov 103   ;;  %s3822_s17 = smov 110  }
 0x398   : > { %1588 = vrot.lane.b32.xlu1 %v1583_v63, %s3819_s26  ;;  %s3827_s26 = smov 87  }
 0x39e   : > { %1271 = vrot.lane.b32.xlu2 %v1266_v2, %s2627_s20  ;;  %1516 = vrot.lane.b32.xlu0 %v1511_v5, %s2626_s28  ;;  %s3821_s20 = smov 104  }
 0x3a0   : > { %v1343_v7 = vpop.permute.xlu2 %1342  ;;  %1568 = vrot.lane.b32.xlu1 %v1563_v6, %s3820_s16  ;;  %s2636_s16 = smov 27  }
 0x3a1   : > { %1348 = vst.msk [vmem:[#allocation5 + $0x54] sm:$0xff] %vm646_vm7, %v1343_v7 }
 0x3a6   : > { %1640 = vrot.lane.b32.xlu2 %v1635_v14, %s2630_s15  ;;  %1660 = vrot.lane.b32.xlu0 %v1655_v16, %s2628_s18  ;;  %s3823_s18 = smov 124   ;;  %s3824_s15 = smov 99  }
 0x3a8   : > { %v1527_v17 = vpop.permute.xlu2 %1526  ;;  %1548 = vrot.lane.b32.xlu1 %v1543_v13, %s3821_s20 }
 0x3a9   : > { %1532 = vst.msk [vmem:[#allocation5 + $0xcc] sm:$0xff] %vm646_vm7, %v1527_v17 }
 0x3ae   : > { %1456 = vrot.lane.b32.xlu2 %v1451_v21, %s2631_s3  ;;  %1476 = vrot.lane.b32.xlu0 %v1471_v27, %s3822_s17  ;;  %s3825_s3 = smov 113  }
 0x3b0   : > { %v1383_v25 = vpop.permute.xlu2 %1382  ;;  %1292 = vrot.lane.b32.xlu1 %v1287_v29, %s3823_s18 }
 0x3b1   : > { %1388 = vst.msk [vmem:[#allocation5 + $0x6c] sm:$0xff] %vm646_vm7, %v1383_v25 }
 0x3b6   : > { %1239 = vrot.lane.b32.xlu2 %v1234_v37, %s3818_s0  ;;  %1608 = vrot.lane.b32.xlu0 %v1603_v15, %s3824_s15  ;;  %s2632_s15 = smov 49   ;;  %s2634_s0 = smov 68  }
 0x3b8   : > { %v1607_v10 = vpop.permute.xlu2 %1606  ;;  %v1250_v38 = vpop.permute.xlu0 %1249  ;;  %1618 = vrot.lane.b32.xlu1 %v3152_v20, %s2629_s29 }
 0x3b9   : > { %1612 = vst.msk [vmem:[#allocation5 + $0xfc] sm:$0xff] %vm646_vm7, %v1607_v10  ;;  %v1710_v10 = vld [vmem:[%s3767_s7] sm:$0xff] }
 0x3ba   : > { %1255 = vst.msk [vmem:[#allocation5 + $0x18] sm:$0xff] %vm646_vm7, %v1250_v38  ;;  %v1403_v41 = vpop.permute.xlu1 %1402 }
 0x3bb   : > { %1408 = vst.msk [vmem:[#allocation5 + $0x78] sm:$0xff] %vm646_vm7, %v1403_v41 }
 0x3be   : > { %1424 = vrot.lane.b32.xlu2 %v1419_v12, %s3825_s3  ;;  %1404 = vrot.lane.b32.xlu0 %v1399_v26, %s3813_s19  ;;  %s2635_s19 = smov 57  }
 0x3c0   : > { %v1363_v34 = vpop.permute.xlu2 %1362  ;;  %v1567_v44 = vpop.permute.xlu0 %1566  ;;  %1422 = vrot.lane.b32.xlu1 %v1418_v43, %s3825_s3  ;;  %s2633_s3 = smov 19  }
 0x3c1   : > { %1368 = vst.msk [vmem:[#allocation5 + $0x60] sm:$0xff] %vm646_vm7, %v1363_v34 }
 0x3c2   : > { %1572 = vst.msk [vmem:[#allocation5 + $0xe4] sm:$0xff] %vm646_vm7, %v1567_v44  ;;  %v1587_v45 = vpop.permute.xlu1 %1586  ;;  %v1687_v28 = vld [vmem:[#allocation5 + $0x78] sm:$0xff] }
 0x3c3   : > { %1592 = vst.msk [vmem:[#allocation5 + $0xf0] sm:$0xff] %vm646_vm7, %v1587_v45  ;;  %1731 = vmatpush.msra.mxu1 %v1687_v28 }
 0x3c6   : > { %1719 = vperm.xlu2 %2445, %v1711_v22  }
 0x3c8   : > { %v1515_v30 = vpop.permute.xlu2 %1514  ;;  %v1547_v20 = vpop.permute.xlu0 %1546  ;;  %v1684_v8 = vld [vmem:[#allocation5 + $0x60] sm:$0xff]  ;;  %1714 = vperm.xlu1 %2446, %v1710_v10  }
 0x3c9   : > { %1520 = vst.msk [vmem:[#allocation5 + $0xc0] sm:$0xff] %vm646_vm7, %v1515_v30 }
 0x3ca   : > { %1552 = vst.msk [vmem:[#allocation5 + $0xd8] sm:$0xff] %vm646_vm7, %v1547_v20  ;;  %v1331_v46 = vpop.permute.xlu1 %1330  ;;  %v1702_v9 = vld [vmem:[#allocation5 + $0xf0] sm:$0xff] }
 0x3cb   : > { %1336 = vst.msk [vmem:[#allocation5 + $0x48] sm:$0xff] %vm646_vm7, %v1331_v46  ;;  %v1675_v46 = vld [vmem:[#allocation5 + $0x18] sm:$0xff] }
 0x3d0   : > { %v1252_v47 = vpop.permute.xlu2 %1251  ;;  %v1291_v48 = vpop.permute.xlu0 %1290  ;;  %v1696_v26 = vld [vmem:[#allocation5 + $0xc0] sm:$0xff] }
 0x3d1   : > { %1256 = vst.msk [vmem:[#allocation5 + $0x20] sm:$0xf] %vm648_vm10, %v1252_v47  ;;  %v1699_v36 = vld [vmem:[#allocation5 + $0xd8] sm:$0xff] }
 0x3d2   : > { %1296 = vst.msk [vmem:[#allocation5 + $0x30] sm:$0xff] %vm646_vm7, %v1291_v48  ;;  %v1311_v49 = vpop.permute.xlu1 %1310  ;;  %v1681_v4 = vld [vmem:[#allocation5 + $0x48] sm:$0xff] }
 0x3d3   : > { %1316 = vst.msk [vmem:[#allocation5 + $0x3c] sm:$0xff] %vm646_vm7, %v1311_v49 }
 0x3d8   : > { %v1333_v50 = vpop.permute.xlu2 %1332  ;;  %v1475_v51 = vpop.permute.xlu0 %1474 }
 0x3d9   : > { %1337 = vst.msk [vmem:[#allocation5 + $0x50] sm:$0xf] %vm648_vm10, %v1333_v50  ;;  %v1678_v43 = vld [vmem:[#allocation5 + $0x30] sm:$0xff] }
 0x3da   : > { %1480 = vst.msk [vmem:[#allocation5 + $0xa8] sm:$0xff] %vm646_vm7, %v1475_v51  ;;  %v1495_v52 = vpop.permute.xlu1 %1494 }
 0x3db   : > { %1500 = vst.msk [vmem:[#allocation5 + $0xb4] sm:$0xff] %vm646_vm7, %v1495_v52  ;;  %v1668_v52 = vld [vmem:[%s3766_s6 + $0x10] sm:$0xff] }
 0x3e0   : > { %v1313_v53 = vpop.permute.xlu2 %1312  ;;  %v1345_v32 = vpop.permute.xlu0 %1344  ;;  %v1682_v16 = vld [vmem:[#allocation5 + $0x50] sm:$0xff] }
 0x3e1   : > { %1317 = vst.msk [vmem:[#allocation5 + $0x44] sm:$0xf] %vm648_vm10, %v1313_v53  ;;  %v1693_v30 = vld [vmem:[#allocation5 + $0xa8] sm:$0xff] }
 0x3e2   : > { %1349 = vst.msk [vmem:[#allocation5 + $0x5c] sm:$0xf] %vm648_vm10, %v1345_v32  ;;  %v1270_v35 = vpop.permute.xlu1 %1269 }
 0x3e3   : > { %1275 = vst.msk [vmem:[#allocation5 + $0x24] sm:$0xff] %vm646_vm7, %v1270_v35  ;;  %v1666_v35 = vld [vmem:[%s3766_s6] sm:$0xff] }
 0x3e8   : > { %v1435_v40 = vpop.permute.xlu2 %1434  ;;  %v1529_v42 = vpop.permute.xlu0 %1528  ;;  %v1680_v21 = vld [vmem:[#allocation5 + $0x40] sm:$0xff] }
 0x3e9   : > { %1440 = vst.msk [vmem:[#allocation5 + $0x90] sm:$0xff] %vm646_vm7, %v1435_v40  ;;  %v1683_v14 = vld [vmem:[#allocation5 + $0x58] sm:$0xff]  ;;  %v1672_v40 = vld [vmem:[#allocation5] sm:$0xff] }
 0x3ea   : > { %1533 = vst.msk [vmem:[#allocation5 + $0xd4] sm:$0xf] %vm648_vm10, %v1529_v42  ;;  %v1659_v54 = vpop.permute.xlu1 %1658  ;;  %v1676_v22 = vld [vmem:[#allocation5 + $0x20] sm:$0xff] }
 0x3eb   : > { %1664 = vst.msk [vmem:[#allocation5 + $0x120] sm:$0xff] %vm646_vm7, %v1659_v54  ;;  %v1667_v54 = vld [vmem:[%s3766_s6 + $0x8] sm:$0xff] }
 0x3f0   : > { %v1497_v55 = vpop.permute.xlu2 %1496  ;;  %v1621_v23 = vpop.permute.xlu0 %1620  ;;  %v1690_v32 = vld [vmem:[#allocation5 + $0x90] sm:$0xff] }
 0x3f1   : > { %1501 = vst.msk [vmem:[#allocation5 + $0xbc] sm:$0xf] %vm648_vm10, %v1497_v55  ;;  %v1698_v15 = vld [vmem:[#allocation5 + $0xd0] sm:$0xff] }
 0x3f2   : > { %1625 = vst.msk [vmem:[#allocation5 + $0x110] sm:$0xf] %vm648_vm10, %v1621_v23  ;;  %v1639_v56 = vpop.permute.xlu1 %1638  ;;  %v1708_v33 = vld [vmem:[#allocation5 + $0x120] sm:$0xff] }
 0x3f3   : > { %1644 = vst.msk [vmem:[#allocation5 + $0x114] sm:$0xff] %vm646_vm7, %v1639_v56  ;;  %v1671_v23 = vld [vmem:[%s3766_s6 + $0x28] sm:$0xf]  ;;  %v1669_v56 = vld [vmem:[%s3766_s6 + $0x18] sm:$0xf] }
 0x3f8   : > { %v1272_v57 = vpop.permute.xlu2 %1271  ;;  %v1437_v58 = vpop.permute.xlu0 %1436  ;;  %v1695_v34 = vld [vmem:[#allocation5 + $0xb8] sm:$0xff] }
 0x3f9   : > { %1276 = vst.msk [vmem:[#allocation5 + $0x2c] sm:$0xf] %vm648_vm10, %v1272_v57  ;;  %v1670_v57 = vld [vmem:[%s3766_s6 + $0x20] sm:$0xf] }
 0x3fa   : > { %1441 = vst.msk [vmem:[#allocation5 + $0x98] sm:$0xf] %vm648_vm10, %v1437_v58  ;;  %v1455_v59 = vpop.permute.xlu1 %1454  ;;  %v1706_v38 = vld [vmem:[#allocation5 + $0x110] sm:$0xff] }
 0x3fb   : > { %1460 = vst.msk [vmem:[#allocation5 + $0x9c] sm:$0xff] %vm646_vm7, %v1455_v59 }
 0x400   : > { %v1641_v60 = vpop.permute.xlu2 %1640  ;;  %v1385_v61 = vpop.permute.xlu0 %1384  ;;  %v1677_v44 = vld [vmem:[#allocation5 + $0x28] sm:$0xff] }
 0x401   : > { %1645 = vst.msk [vmem:[#allocation5 + $0x11c] sm:$0xf] %vm648_vm10, %v1641_v60 }
 0x402   : > { %1389 = vst.msk [vmem:[#allocation5 + $0x74] sm:$0xf] %vm648_vm10, %v1385_v61  ;;  %v1238_v62 = vpop.permute.xlu1 %1237  ;;  %v1691_v50 = vld [vmem:[#allocation5 + $0x98] sm:$0xff] }
 0x403   : > { %1243 = vst.msk [vmem:[#allocation5 + $0xc] sm:$0xff] %vm646_vm7, %v1238_v62 }
 0x408   : > { %v1457_v63 = vpop.permute.xlu2 %1456  ;;  %v1365_v0 = vpop.permute.xlu0 %1364  ;;  %v1707_v37 = vld [vmem:[#allocation5 + $0x118] sm:$0xff] }
 0x409   : > { %1461 = vst.msk [vmem:[#allocation5 + $0xa4] sm:$0xf] %vm648_vm10, %v1457_v63  ;;  %v1686_v24 = vld [vmem:[#allocation5 + $0x70] sm:$0xff] }
 0x40a   : > { %1369 = vst.msk [vmem:[#allocation5 + $0x68] sm:$0xf] %vm648_vm10, %v1365_v0  ;;  %1732 = vmatpush.msra.mxu1 %v1686_v24  ;;  %v1589_v1 = vpop.permute.xlu1 %1588  ;;  %v1673_v53 = vld [vmem:[#allocation5 + $0x8] sm:$0xff] }
 0x40b   : > { %1593 = vst.msk [vmem:[#allocation5 + $0xf8] sm:$0xf] %vm648_vm10, %v1589_v1 }
 0x410   : > { %v1240_v2 = vpop.permute.xlu2 %1239  ;;  %v1517_v5 = vpop.permute.xlu0 %1516  ;;  %v1692_v47 = vld [vmem:[#allocation5 + $0xa0] sm:$0xff] }
 0x411   : > { %1244 = vst.msk [vmem:[#allocation5 + $0x14] sm:$0xf] %vm648_vm10, %v1240_v2  ;;  %v1685_v6 = vld [vmem:[#allocation5 + $0x68] sm:$0xff] }
 0x412   : > { %1521 = vst.msk [vmem:[#allocation5 + $0xc8] sm:$0xf] %vm648_vm10, %v1517_v5  ;;  %1733 = vmatpush.msra.mxu1 %v1685_v6  ;;  %v1569_v7 = vpop.permute.xlu1 %1568  ;;  %v1703_v3 = vld [vmem:[#allocation5 + $0xf8] sm:$0xff] }
 0x413   : > { %1573 = vst.msk [vmem:[#allocation5 + $0xec] sm:$0xf] %vm648_vm10, %v1569_v7  ;;  %1754 = vmatpush.msra.mxu0 %v1703_v3 }
 0x414   : > { %1734 = vmatpush.msra.mxu1 %v1684_v8 }
 0x415   : > { %1755 = vmatpush.msra.mxu0 %v1702_v9 }
 0x416   : > { %1735 = vmatpush.msra.mxu1 %v1683_v14  ;;  %v1838_v14 = vlaneseq }
 0x418   : > { %1736 = vmatpush.msra.mxu1 %v1682_v16  ;;  %v1425_v13 = vpop.permute.xlu2 %1424  ;;  %v1661_v17 = vpop.permute.xlu0 %1660  ;;  %v1674_v49 = vld [vmem:[#allocation5 + $0x10] sm:$0xff]  ;;  %vm1840_vm0 = vcmp.lt.s32.totalorder %v1838_v14, 49  ;;  %vm1850_vm5 = vcmp.ge.s32.totalorder %v1838_v14, 49  ;;  %vm1851_vm6 = vcmp.lt.s32.totalorder %v1838_v14, 98  ;;  %vm1863_vm9 = vcmp.ge.s32.totalorder %v1838_v14, 98 }
 0x419   : > { %1429 = vst.msk [vmem:[#allocation5 + $0x8c] sm:$0xf] %vm648_vm10, %v1425_v13  ;;  %v1697_v39 = vld [vmem:[#allocation5 + $0xc8] sm:$0xff]  ;;  %vm1852_vm8 = vmand %vm1850_vm5, %vm1851_vm6  ;;  %vm1864_vm13 = vcmp.lt.s32.totalorder %v1838_v14, 147 }
 0x41a   : > { %1665 = vst.msk [vmem:[#allocation5 + $0x128] sm:$0xf] %vm648_vm10, %v1661_v17  ;;  %1737 = vmatpush.msra.mxu1 %v1681_v4  ;;  %v1549_v18 = vpop.permute.xlu1 %1548  ;;  %v1701_v19 = vld [vmem:[#allocation5 + $0xe8] sm:$0xff] }
 0x41b   : > { %1553 = vst.msk [vmem:[#allocation5 + $0xe0] sm:$0xf] %vm648_vm10, %v1549_v18  ;;  %1756 = vmatpush.msra.mxu0 %v1701_v19 }
 0x41c   : > { %1738 = vmatpush.msra.mxu1 %v1680_v21 }
 0x420   : > { %v1477_v27 = vpop.permute.xlu0 %1476  ;;  %v1720_v18 = vpop.permute.xlu2 %1719 }
 0x421   : > { %1481 = vst.msk [vmem:[#allocation5 + $0xb0] sm:$0xf] %vm648_vm10, %v1477_v27  ;;  %v1709_v29 = vld [vmem:[#allocation5 + $0x128] sm:$0xf] }
 0x422   : > { %2337 = vmatpush.msk.msra.mxu2 %vm1084_vm11, %v1709_v29  ;;  %v1293_v31 = vpop.permute.xlu1 %1292  ;;  %v1700_v25 = vld [vmem:[#allocation5 + $0xe0] sm:$0xff] }
 0x423   : > { %1297 = vst.msk [vmem:[#allocation5 + $0x38] sm:$0xf] %vm648_vm10, %v1293_v31  ;;  %1757 = vmatpush.msra.mxu0 %v1700_v25 }
 0x424   : > { %1788 = vmatpush.msra.mxu2 %v1708_v33 }
 0x425   : > { %1758 = vmatpush.msra.mxu0 %v1699_v36 }
 0x426   : > { %1789 = vmatpush.msra.mxu2 %v1707_v37 }
 0x427   : > { %1759 = vmatpush.msra.mxu0 %v1698_v15 }
 0x428   : > { %1790 = vmatpush.msra.mxu2 %v1706_v38  ;;  %v1609_v11 = vpop.permute.xlu0 %1608  ;;  %v1694_v45 = vld [vmem:[#allocation5 + $0xb0] sm:$0xff] }
 0x429   : > { %1613 = vst.msk [vmem:[#allocation5 + $0x104] sm:$0xf] %vm648_vm10, %v1609_v11  ;;  %1760 = vmatpush.msra.mxu0 %v1697_v39 }
 0x42a   : > { %v1619_v41 = vpop.permute.xlu1 %1618  ;;  %v1679_v12 = vld [vmem:[#allocation5 + $0x38] sm:$0xff] }
 0x42b   : > { %1624 = vst.msk [vmem:[#allocation5 + $0x108] sm:$0xff] %vm646_vm7, %v1619_v41  ;;  %1739 = vmatpush.msra.mxu1 %v1679_v12  ;;  %1761 = vmatpush.msra.mxu0 %v1696_v26 }
 0x42d   : > { %1740 = vmatpush.msra.mxu1 %v1678_v43  ;;  %1762 = vmatpush.msra.mxu0 %v1695_v34 }
 0x42f   : > { %1741 = vmatpush.msra.mxu1 %v1677_v44  ;;  %1763 = vmatpush.msra.mxu0 %v1694_v45 }
 0x430   : > { %v1405_v28 = vpop.permute.xlu0 %1404  ;;  %v1704_v51 = vld [vmem:[#allocation5 + $0x100] sm:$0xff] }
 0x431   : > { %1409 = vst.msk [vmem:[#allocation5 + $0x80] sm:$0xf] %vm648_vm10, %v1405_v28  ;;  %1742 = vmatpush.msra.mxu1 %v1676_v22  ;;  %1764 = vmatpush.msra.mxu0 %v1693_v30 }
 0x432   : > { %v1423_v20 = vpop.permute.xlu1 %1422  ;;  %v1705_v48 = vld [vmem:[#allocation5 + $0x108] sm:$0xff] }
 0x433   : > { %1428 = vst.msk [vmem:[#allocation5 + $0x84] sm:$0xff] %vm646_vm7, %v1423_v20  ;;  %1743 = vmatpush.msra.mxu1 %v1675_v46  ;;  %1765 = vmatpush.msra.mxu0 %v1692_v47 }
 0x434   : > { %1791 = vmatpush.msra.mxu2 %v1705_v48 }
 0x435   : > { %1744 = vmatpush.msra.mxu1 %v1674_v49  ;;  %1766 = vmatpush.msra.mxu0 %v1691_v50 }
 0x436   : > { %1792 = vmatpush.msra.mxu2 %v1704_v51 }
 0x437   : > { %1745 = vmatpush.msra.mxu1 %v1673_v53  ;;  %1767 = vmatpush.msra.mxu0 %v1690_v32  ;;  %v2019_v53 = vld [vmem:[%s3768_s8 + $0x1b0] sm:$0xff]  ;;  %v1965_v32 = vld [vmem:[%s3768_s8] sm:$0xff] }
 0x438   : > { %2338 = vmatmul.msk.f32.vlgmr.msra.gmra.mxu2 %vm1077_vm12, %v1668_v52 }
 0x439   : > { %1746 = vmatpush.msra.mxu1 %v1672_v40  ;;  %v1979_v40 = vld [vmem:[%s3768_s8 + $0x70] sm:$0xff] }
 0x43a   : > { %1747 = vmatmul.f32.vlgmr.msra.gmra.mxu1 %v1666_v35  ;;  %v1689_v42 = vld [vmem:[#allocation5 + $0x88] sm:$0xff]  ;;  %v1688_v55 = vld [vmem:[#allocation5 + $0x80] sm:$0xff]  ;;  %v1715_v58 = vpop.permute.xlu1 %1714  ;;  %v1980_v35 = vld [vmem:[%s3768_s8 + $0x78] sm:$0xff] }
 0x43b   : > { %1768 = vmatpush.msra.mxu0 %v1689_v42  ;;  %2056 = vmatpush.msrb.mxu3 %v1980_v35  ;;  %v1986_v35 = vld [vmem:[%s3768_s8 + $0xa8] sm:$0xff] }
 0x43d   : > { %1769 = vmatpush.msra.mxu0 %v1688_v55  ;;  %v1996_v55 = vld [vmem:[%s3768_s8 + $0xf8] sm:$0xff]  ;;  %2057 = vmatpush.msrb.mxu3 %v1979_v40 }
 0x43e   : > { %1770 = vmatmul.f32.vlgmr.msra.gmra.mxu0 %v1667_v54  ;;  %v1978_v54 = vld [vmem:[%s3768_s8 + $0x68] sm:$0xff]  ;;  %2076 = vmatpush.msrb.mxu1 %v1996_v55 }
 0x43f   : > { %2058 = vmatpush.msrb.mxu3 %v1978_v54  ;;  %v2018_v54 = vld [vmem:[%s3768_s8 + $0x1a8] sm:$0xff] }
 0x440   : > { %2339 = vmatmul.msk.f32.gmra.mxu2 %vm1077_vm12, %v1671_v23  ;;  %v2012_v23 = vld [vmem:[%s3768_s8 + $0x178] sm:$0xff] }
 0x441   : > { %2096 = vmatpush.msrb.mxu2 %v2012_v23  ;;  %v2038_v23 = vld [vmem:[%s3768_s8 + $0x248] sm:$0xf] }
 0x442   : > { %1750 = vmatmul.f32.gmra.mxu1 %v1669_v56  ;;  %v2028_v56 = vld [vmem:[%s3768_s8 + $0x1f8] sm:$0xff] }
 0x443   : > { %2116 = vmatpush.msrb.mxu0 %v2028_v56  ;;  %v1985_v56 = vld [vmem:[%s3768_s8 + $0xa0] sm:$0xff] }
 0x446   : > { %1773 = vmatmul.f32.gmra.mxu0 %v1670_v57  ;;  %v1995_v57 = vld [vmem:[%s3768_s8 + $0xf0] sm:$0xff] }
 0x447   : > { %2077 = vmatpush.msrb.mxu1 %v1995_v57 }
 0x4b7   : > { %v1748_v59 = vpop.f32.mrf.mxu1 }
 0x4b8   : > { %v1749_v60 = vadd.f32 %v1748_v59, %v1715_v58  ;;  %v2011_v58 = vld [vmem:[%s3768_s8 + $0x170] sm:$0xff]  ;;  %v1977_v59 = vld [vmem:[%s3768_s8 + $0x60] sm:$0xff] }
 0x4b9   : > { %2097 = vmatpush.msrb.mxu2 %v2011_v58  ;;  %2059 = vmatpush.msrb.mxu3 %v1977_v59  ;;  %v2001_v58 = vld [vmem:[%s3768_s8 + $0x120] sm:$0xff] }
 0x4ba   : > { %v2017_v59 = vld [vmem:[%s3768_s8 + $0x1a0] sm:$0xff] }
 0x4bb   : > { %v1771_v61 = vpop.f32.mrf.mxu0  ;;  %v1794_v62 = vpop.f32.mrf.mxu2 }
 0x4bc   : > { %v1772_v63 = vadd.f32 %v1771_v61, %v1749_v60  ;;  %v2027_v60 = vld [vmem:[%s3768_s8 + $0x1f0] sm:$0xff]  ;;  %v1994_v61 = vld [vmem:[%s3768_s8 + $0xe8] sm:$0xff] }
 0x4bd   : > { %2117 = vmatpush.msrb.mxu0 %v2027_v60  ;;  %2078 = vmatpush.msrb.mxu1 %v1994_v61  ;;  %v2037_v60 = vld [vmem:[%s3768_s8 + $0x240] sm:$0xff]  ;;  %v1984_v61 = vld [vmem:[%s3768_s8 + $0x98] sm:$0xff] }
 0x4be   : > { %v1795_v0 = vadd.f32 %v1794_v62, %v1772_v63  ;;  %v2010_v62 = vld [vmem:[%s3768_s8 + $0x168] sm:$0xff] }
 0x4bf   : > { %v1751_v17 = vpop.f32.mrf.mxu1  ;;  %v2026_v63 = vld [vmem:[%s3768_s8 + $0x1e8] sm:$0xff]  ;;  %2098 = vmatpush.msrb.mxu2 %v2010_v62  ;;  %v2000_v62 = vld [vmem:[%s3768_s8 + $0x118] sm:$0xff] }
 0x4c0   : > { %v2340_v24 = vmul.f32 -1.442695, %v1795_v0  ;;  %v1752_v27 = vadd.f32 %v1751_v17, %v1720_v18  ;;  %2118 = vmatpush.msrb.mxu0 %v2026_v63  ;;  %v1972_v17 = vld [vmem:[%s3768_s8 + $0x38] sm:$0xff]  ;;  %v2009_v18 = vld [vmem:[%s3768_s8 + $0x160] sm:$0xff] }
 0x4c1   : > { %2099 = vmatpush.msrb.mxu2 %v2009_v18  ;;  %v2016_v63 = vld [vmem:[%s3768_s8 + $0x198] sm:$0xff] }
 0x4c2   : > { %2506 = vpow2.f32 %v2340_v24  ;;  %v1976_v24 = vld [vmem:[%s3768_s8 + $0x58] sm:$0xff] }
 0x4c3   : > { %v1774_v21 = vpop.f32.mrf.mxu0  ;;  %v1797_v31 = vpop.f32.mrf.mxu2  ;;  %2060 = vmatpush.msrb.mxu3 %v1976_v24  ;;  %v1983_v24 = vld [vmem:[%s3768_s8 + $0x90] sm:$0xff]  ;;  %v2032_v18 = vld [vmem:[%s3768_s8 + $0x218] sm:$0xff] }
 0x4c4   : > { %v1775_v29 = vadd.f32 %v1774_v21, %v1752_v27  ;;  %v1971_v21 = vld [vmem:[%s3768_s8 + $0x30] sm:$0xff]  ;;  %v1992_v27 = vld [vmem:[%s3768_s8 + $0xd8] sm:$0xff] }
 0x4c6   : > { %v1798_v25 = vadd.f32 %v1797_v31, %v1775_v29  ;;  %v2008_v29 = vld [vmem:[%s3768_s8 + $0x158] sm:$0xff] }
 0x4c7   : > { %v2024_v31 = vld [vmem:[%s3768_s8 + $0x1d8] sm:$0xff]  ;;  %2100 = vmatpush.msrb.mxu2 %v2008_v29  ;;  %v2029_v29 = vld [vmem:[%s3768_s8 + $0x200] sm:$0xff] }
 0x4c8   : > { %v2507_v1 = vpop.eup %2506  ;;  %v2341_v36 = vmul.f32 -1.442695, %v1798_v25  ;;  %v1970_v25 = vld [vmem:[%s3768_s8 + $0x28] sm:$0xff] }
 0x4c9   : > { %v1806_v2 = vadd.f32 1.0, %v2507_v1 }
 0x4cb   : > { %2508 = vrcp.f32 %v1806_v2  ;;  %v1819_v3 = vand.u32 2147483648, %v1806_v2  ;;  %v1817_v9 = vand.u32 2147483647, %v1806_v2  ;;  %vm1813_vm10 = vweird.f32 %v1806_v2 }
 0x4cc   : > { %2510 = vpow2.f32 %v2341_v36  ;;  %v2007_v36 = vld [vmem:[%s3768_s8 + $0x150] sm:$0xff] }
 0x4cd   : > { %v1820_v13 = vor.u32 1.1754944e-38, %v1819_v3  ;;  %vm1818_vm15 = vcmp.eq.f32.partialorder %v1817_v9, 8.507059e+37  ;;  %v1974_v3 = vld [vmem:[%s3768_s8 + $0x48] sm:$0xff]  ;;  %v1973_v9 = vld [vmem:[%s3768_s8 + $0x40] sm:$0xff]  ;;  %2101 = vmatpush.msrb.mxu2 %v2007_v36 }
 0x4d1   : > { %v2509_v5 = vpop.eup %2508 }
 0x4d2   : > { %v1809_v6 = vmul.f32 %v2509_v5, %v1806_v2  ;;  %vm1814_vm7 = vweird.f32 %v2509_v5  ;;  %v2511_v15 = vpop.eup %2510  ;;  %v1975_v2 = vld [vmem:[%s3768_s8 + $0x50] sm:$0xff] }
 0x4d3   : > { %vm1815_vm12 = vmor %vm1813_vm10, %vm1814_vm7  ;;  %v1807_v10 = vadd.f32 1.0, %v2511_v15  ;;  %vm3349_vm10 = vcmp.ge.s32.totalorder %v1838_v14, 19  ;;  %2061 = vmatpush.msrb.mxu3 %v1975_v2  ;;  %v1990_v15 = vld [vmem:[%s3768_s8 + $0xc8] sm:$0xff]  ;;  %v2015_v2 = vld [vmem:[%s3768_s8 + $0x190] sm:$0xff] }
 0x4d4   : > { %v1810_v7 = vsub.f32 1.0, %v1809_v6  ;;  %vm1865_vm7 = vmand %vm1863_vm9, %vm1864_vm13  ;;  %vm3494_vm9 = vcmp.lt.s32.totalorder %v1838_v14, 87  ;;  %v1982_v6 = vld [vmem:[%s3768_s8 + $0x88] sm:$0xff] }
 0x4d5   : > { %2512 = vrcp.f32 %v1807_v10  ;;  %v1834_v45 = vand.u32 2147483648, %v1807_v10  ;;  %vm1828_vm2 = vweird.f32 %v1807_v10  ;;  %v1832_v28 = vand.u32 2147483647, %v1807_v10  ;;  %2062 = vmatpush.msrb.mxu3 %v1974_v3  ;;  %v2014_v3 = vld [vmem:[%s3768_s8 + $0x188] sm:$0xff] }
 0x4d6   : > { %v1811_v8 = vmul.f32 %v2509_v5, %v1810_v7  ;;  %v1998_v7 = vld [vmem:[%s3768_s8 + $0x108] sm:$0xff] }
 0x4d7   : > { %v1835_v30 = vor.u32 1.1754944e-38, %v1834_v45  ;;  %vm1833_vm4 = vcmp.eq.f32.partialorder %v1832_v28, 8.507059e+37  ;;  %2063 = vmatpush.msrb.mxu3 %v1973_v9  ;;  %v2021_v28 = vld [vmem:[%s3768_s8 + $0x1c0] sm:$0xff]  ;;  %v2181_v45 = vld [vmem:[%s3770_s10 + $0x30] sm:$0xff] }
 0x4d8   : > { %v1812_v16 = vadd.f32 %v2509_v5, %v1811_v8  ;;  %v1981_v9 = vld [vmem:[%s3768_s8 + $0x80] sm:$0xff] }
 0x4d9   : > { %2064 = vmatpush.msrb.mxu3 %v1972_v17 }
 0x4da   : > { %v1816_v4 = vsel %vm1815_vm12, %v2509_v5, %v1812_v16  ;;  %vm3354_vm12 = vcmp.lt.s32.totalorder %v1838_v14, 68  ;;  %v2035_v5 = vld [vmem:[%s3768_s8 + $0x230] sm:$0xff] }
 0x4db   : > { %v1821_v19 = vsel %vm1818_vm15, %v1820_v13, %v1816_v4  ;;  %v2513_v39 = vpop.eup %2512  ;;  %vm1875_vm15 = vmand %vm3349_vm10, %vm3354_vm12  ;;  %v1993_v4 = vld [vmem:[%s3768_s8 + $0xe0] sm:$0xff]  ;;  %2065 = vmatpush.msrb.mxu3 %v1971_v21  ;;  %vm3531_vm10 = vcmp.ge.s32.totalorder %v1838_v14, 8  ;;  %vm3536_vm12 = vcmp.lt.s32.totalorder %v1838_v14, 57 }
 0x4dc   : > { %1844 = vst [vmem:[#allocation1] sm:$0xff] %v1821_v19  ;;  %v1824_v41 = vmul.f32 %v2513_v39, %v1807_v10  ;;  %vm1829_vm1 = vweird.f32 %v2513_v39  ;;  %2079 = vmatpush.msrb.mxu1 %v1993_v4  ;;  %v2006_v10 = vld [vmem:[%s3768_s8 + $0x148] sm:$0xff]  ;;  %v2033_v4 = vld [vmem:[%s3768_s8 + $0x220] sm:$0xff] }
 0x4dd   : > { %1842 = vst.msk [vmem:[#allocation6] sm:$0x1] %vm1840_vm0, %v1821_v19  ;;  %vm1830_vm3 = vmor %vm1828_vm2, %vm1829_vm1  ;;  %vm3413_vm0 = vcmp.ge.s32.totalorder %v1838_v14, 68  ;;  %vm1884_vm1 = vcmp.lt.s32.totalorder %v1838_v14, 117  ;;  %vm3419_vm2 = vcmp.ge.s32.totalorder %v1838_v14, 117  ;;  %2066 = vmatpush.msrb.mxu3 %v1970_v25  ;;  %2102 = vmatpush.msrb.mxu2 %v2006_v10 }
 0x4de   : > { %v1825_v26 = vsub.f32 1.0, %v1824_v41  ;;  %vm1885_vm5 = vmand %vm3413_vm0, %vm1884_vm1  ;;  %2080 = vmatpush.msrb.mxu1 %v1992_v27  ;;  %v2030_v27 = vld [vmem:[%s3768_s8 + $0x208] sm:$0xff]  ;;  %v2186_v41 = vld [vmem:[%s3770_s10 + $0x58] sm:$0xff] }
 0x4df   : > { %vm1929_vm1 = vmand %vm3531_vm10, %vm3536_vm12  ;;  %vm2050_vm10 = vcmask 621568  }
 0x4e0   : > { %v1826_v43 = vmul.f32 %v2513_v39, %v1825_v26  ;;  %v1968_v26 = vld [vmem:[%s3768_s8 + $0x18] sm:$0xff] }
 0x4e2   : > { %v1827_v44 = vadd.f32 %v2513_v39, %v1826_v43  ;;  %v1989_v43 = vld [vmem:[%s3768_s8 + $0xc0] sm:$0xff] }
 0x4e3   : > { %v1846_v33 = vld [vmem:[#allocation1 + $0x1] ss:$9 sm:$0xff] }
 0x4e4   : > { %1847 = vrot.lane.b32.xlu1 %v1846_v33, %s2632_s15  ;;  %1854 = vst [vmem:[#allocation1] sm:$0xff] %v1821_v19  ;;  %v1831_v22 = vsel %vm1830_vm3, %v2513_v39, %v1827_v44  ;;  %vm3424_vm3 = vcmp.lt.s32.totalorder %v1838_v14, 166  ;;  %v1991_v33 = vld [vmem:[%s3768_s8 + $0xd0] sm:$0xff]  ;;  %v2182_v44 = vld [vmem:[%s3770_s10 + $0x38] sm:$0xff] }
 0x4e5   : > { %v1836_v46 = vsel %vm1833_vm4, %v1835_v30, %v1831_v22  ;;  %vm1893_vm4 = vcmask 957440   ;;  %vm1898_vm6 = vmand %vm3419_vm2, %vm3424_vm3  ;;  %2081 = vmatpush.msrb.mxu1 %v1991_v33  ;;  %v1967_v22 = vld [vmem:[%s3768_s8 + $0x10] sm:$0xff]  ;;  %v1988_v30 = vld [vmem:[%s3768_s8 + $0xb8] sm:$0xff]  ;;  %vm3656_vm2 = vcmp.ge.s32.totalorder %v1838_v14, 57  ;;  %vm1938_vm3 = vcmp.lt.s32.totalorder %v1838_v14, 106 }
 0x4e7   : > { %2082 = vmatpush.msrb.mxu1 %v1990_v15 }
 0x4e9   : > { %2083 = vmatpush.msrb.mxu1 %v1989_v43  ;;  %v2183_v43 = vld [vmem:[%s3770_s10 + $0x40] sm:$0xff] }
 0x4eb   : > { %v1856_v37 = vld [vmem:[#allocation1 + $0x2] ss:$9 sm:$0xff]  ;;  %2084 = vmatpush.msrb.mxu1 %v1988_v30 }
 0x4ec   : > { %1857 = vrot.lane.b32.xlu0 %v1856_v37, %s2629_s29  ;;  %1867 = vst [vmem:[#allocation1] sm:$0xff] %v1821_v19  ;;  %s3826_s29 = smov 38   ;;  %v2023_v37 = vld [vmem:[%s3768_s8 + $0x1d0] sm:$0xff]  ;;  %v2180_v30 = vld [vmem:[%s3770_s10 + $0x28] sm:$0xff] }
 0x4f3   : > { %v1869_v38 = vld [vmem:[#allocation1 + $0x3] ss:$9 sm:$0xff] }
 0x4f4   : > { %1870 = vrot.lane.b32.xlu0 %v1869_v38, %s2633_s3  ;;  %1877 = vst [vmem:[#allocation1] sm:$0xff] %v1821_v19  ;;  %v1969_v38 = vld [vmem:[%s3768_s8 + $0x20] sm:$0xff] }
 0x4f5   : > { %2067 = vmatpush.msrb.mxu3 %v1969_v38 }
 0x4f7   : > { %2068 = vmatpush.msrb.mxu3 %v1968_v26  ;;  %v2184_v26 = vld [vmem:[%s3770_s10 + $0x48] sm:$0xff] }
 0x4f9   : > { %2069 = vmatpush.msrb.mxu3 %v1967_v22 }
 0x4fb   : > { %v1879_v11 = vld [vmem:[#allocation1 + $0x4] ss:$9 sm:$0xff] }
 0x4fc   : > { %1880 = vrot.lane.b32.xlu1 %v1879_v11, %s2634_s0  ;;  %1887 = vst [vmem:[#allocation1] sm:$0xff] %v1821_v19  ;;  %v2022_v11 = vld [vmem:[%s3768_s8 + $0x1c8] sm:$0xff] }
 0x503   : > { %v1889_v12 = vld [vmem:[#allocation1 + $0x5] ss:$9 sm:$0xff] }
 0x504   : > { %1890 = vrot.lane.b32.xlu2 %v1889_v12, %s3814_s2  ;;  %1900 = vst [vmem:[#allocation1] sm:$0xff] %v1821_v19  ;;  %s3828_s2 = smov 8  }
 0x50b   : > { %v1902_v34 = vld [vmem:[#allocation1 + $0x6] ss:$9 sm:$0xff] }
 0x50c   : > { %1903 = vrot.lane.b32.xlu0 %v1902_v34, %s3826_s29  ;;  %1910 = vst [vmem:[#allocation1] sm:$0xff] %v1821_v19  ;;  %v2025_v19 = vld [vmem:[%s3768_s8 + $0x1e0] sm:$0xff] }
 0x50d   : > { %2119 = vmatpush.msrb.mxu0 %v2025_v19  ;;  %v2005_v34 = vld [vmem:[%s3768_s8 + $0x140] sm:$0xff]  ;;  %v2031_v19 = vld [vmem:[%s3768_s8 + $0x210] sm:$0xff] }
 0x50e   : > { %2103 = vmatpush.msrb.mxu2 %v2005_v34  ;;  %v2039_v34 = vld [vmem:[%s3769_s9] sm:$0x1] }
 0x50f   : > { %2120 = vmatpush.msrb.mxu0 %v2024_v31 }
 0x511   : > { %2121 = vmatpush.msrb.mxu0 %v2023_v37 }
 0x513   : > { %v1912_v20 = vld [vmem:[#allocation1 + $0x7] ss:$9 sm:$0xff]  ;;  %2122 = vmatpush.msrb.mxu0 %v2022_v11 }
 0x514   : > { %1913 = vrot.lane.b32.xlu2 %v1912_v20, %s3827_s26  ;;  %1931 = vst [vmem:[#allocation1] sm:$0xff] %v1836_v46  ;;  %s404_s26 = sand.u32 1, %s2572_s22  }
 0x515   : > { %2123 = vmatpush.msrb.mxu0 %v2021_v28  ;;  %s405_s17 = scalar_lea.vmem [#allocation7], %s404_s26  ;;  %s2219_s3 = scalar_lea.sflag [#allocation8], %s404_s26 }
 0x516   : > { %s2229_s18 = sshll.u32 %s405_s17, 4  ;;  %s2230_s18 = int_to_ptr.vmem [resolvable:$true] %s2229_s18 }
 0x51b   : > { %v1933_v47 = vld [vmem:[#allocation1 + $0x1] ss:$9 sm:$0xff] }
 0x51c   : > { %1924 = vrot.lane.b32.xlu2 %v1836_v46, %s3828_s2  ;;  %1934 = vrot.lane.b32.xlu0 %v1933_v47, %s2635_s19  ;;  %1941 = vst [vmem:[#allocation1] sm:$0xff] %v1836_v46  ;;  %v2179_v47 = vld [vmem:[%s3770_s10 + $0x20] sm:$0xff]  ;;  %s2538_s19 = scalar_lea.hbm %s3772_s12, 2 }
 0x523   : > { %v1943_v48 = vld [vmem:[#allocation1 + $0x2] ss:$9 sm:$0xff] }
 0x524   : > { %1944 = vrot.lane.b32.xlu1 %v1943_v48, %s2626_s28  ;;  %1954 = vst [vmem:[#allocation1] sm:$0xff] %v1836_v46  ;;  %v2004_v48 = vld [vmem:[%s3768_s8 + $0x138] sm:$0xff] }
 0x525   : > { %2104 = vmatpush.msrb.mxu2 %v2004_v48 }
 0x52b   : > { %v1956_v49 = vld [vmem:[#allocation1 + $0x3] ss:$9 sm:$0xff] }
 0x52c   : > { %1957 = vrot.lane.b32.xlu1 %v1956_v49, %s2636_s16  ;;  %v2020_v49 = vld [vmem:[%s3768_s8 + $0x1b8] sm:$0xff]  ;;  %s2227_s16 = scalar_lea.hbm %s3772_s12, %s2723_s25 }
 0x52d   : > { %2124 = vmatpush.msrb.mxu0 %v2020_v49  ;;  %s2231_s15 = sshll.u32 %s2227_s16, 4  ;;  %s2232_s15 = int_to_ptr.hbm [resolvable:$true] %s2231_s15 }
 0x52e   : > { %s2532_s0 = sshra.s32 %s2232_s15, 4  ;;  %s2533_s0 = int_to_ptr.hbm [resolvable:$true] %s2532_s0 }
 0x52f   : > { %2125 = vmatpush.msrb.mxu0 %v2019_v53  ;;  %v2177_v53 = vld [vmem:[%s3770_s10 + $0x10] sm:$0xff]  ;;  %s2534_s29 = scalar_lea.hbm %s2533_s0, 1  ;;  %p2539_p0 = scmp.lt.s32.totalorder %s2533_s0, %s3772_s12 }
 0x530   : > { %p2535_p11 = scmp.ne.s32.totalorder %s2533_s0, %s2534_s29  ;;  %p2540_p1 = scmp.lt.s32.totalorder %s2538_s19, %s2534_s29 }
 0x531   : > { %2126 = vmatpush.msrb.mxu0 %v2018_v54  ;;  %v2175_v54 = vld [vmem:[%s3770_s10] sm:$0xff] }
 0x532   : > { %p2536_p12 = pnand %p2535_p11, %p2740_p5  ;;  %p2541_p2 = por %p2540_p1, %p2539_p0 }
 0x533   : > { %2127 = vmatpush.msrb.mxu0 %v2017_v59 }
 0x534   : > { %p2537_p13 = pneg %p2536_p12 }
 0x535   : > { %2128 = vmatpush.msrb.mxu0 %v2016_v63 }
 0x536   : > { %p2542_p3 = pnand %p2541_p2, %p2537_p13 }
 0x537   : > { %2129 = vmatpush.msrb.mxu0 %v2015_v2 }
 0x539   : > { %2130 = vmatpush.msrb.mxu0 %v2014_v3 }
 0x556   : > { %v1848_v50 = vpop.permute.xlu1 %1847 }
 0x557   : > { %1853 = vst.msk [vmem:[#allocation6] sm:$0x1] %vm1852_vm8, %v1848_v50  ;;  %vm3489_vm8 = vcmp.ge.s32.totalorder %v1838_v14, 38  ;;  %v1966_v50 = vld [vmem:[%s3768_s8 + $0x8] sm:$0xff] }
 0x558   : > { %vm1908_vm13 = vmand %vm3489_vm8, %vm3494_vm9  ;;  %2070 = vmatpush.msrb.mxu3 %v1966_v50  ;;  %vm1947_vm8 = vcmask 867328   ;;  %v2178_v50 = vld [vmem:[%s3770_s10 + $0x18] sm:$0xff] }
 0x55a   : > { %2071 = vmatpush.msrb.mxu3 %v1965_v32 }
 0x55c   : > { %2342 = vmatpush.msk.msra.mxu3 %vm1084_vm11, %v2038_v23 }
 0x55e   : > { %v1858_v51 = vpop.permute.xlu0 %1857  ;;  %v1891_v1 = vpop.permute.xlu2 %1890  ;;  %2143 = vmatpush.msra.mxu3 %v2037_v60 }
 0x55f   : > { %v1859_v52 = vrot.slane %v1858_v51, 7  ;;  %v1892_v8 = vrot.slane %v1891_v1, 7 }
 0x561   : > { %v1861_v42 = vsel %vm1860_vm14, %v1859_v52, %v1858_v51  ;;  %v1894_v13 = vsel %vm1893_vm4, %v1892_v8, %v1891_v1  ;;  %vm3512_vm14 = vcmp.ge.s32.totalorder %v1838_v14, 87  ;;  %v1987_v51 = vld [vmem:[%s3768_s8 + $0xb0] sm:$0xff]  ;;  %v2034_v8 = vld [vmem:[%s3768_s8 + $0x228] sm:$0xff]  ;;  %vm1939_vm4 = vmand %vm3656_vm2, %vm1938_vm3  ;;  %vm2216_vm2 = vcmask 73728  }
 0x562   : > { %1866 = vst.msk [vmem:[#allocation6] sm:$0x3] %vm1865_vm7, %v1861_v42  ;;  %vm3517_vm7 = vcmp.lt.s32.totalorder %v1838_v14, 136  ;;  %v2003_v52 = vld [vmem:[%s3768_s8 + $0x130] sm:$0xff]  ;;  %2085 = vmatpush.msrb.mxu1 %v1987_v51  ;;  %v2002_v42 = vld [vmem:[%s3768_s8 + $0x128] sm:$0xff] }
 0x563   : > { %vm1921_vm0 = vmand %vm3512_vm14, %vm3517_vm7  ;;  %2105 = vmatpush.msrb.mxu2 %v2003_v52  ;;  %v1999_v1 = vld [vmem:[%s3768_s8 + $0x110] sm:$0xff]  ;;  %vm1961_vm14 = vcmp.lt.s32.totalorder %v1838_v14, 76 }
 0x564   : > { %2086 = vmatpush.msrb.mxu1 %v1986_v35 }
 0x565   : > { %2106 = vmatpush.msrb.mxu2 %v2002_v42 }
 0x566   : > { %v1871_v0 = vpop.permute.xlu0 %1870  ;;  %2087 = vmatpush.msrb.mxu1 %v1985_v56 }
 0x567   : > { %1876 = vst.msk [vmem:[#allocation6 + $0x1] sm:$0x1] %vm1875_vm15, %v1871_v0  ;;  %vm1916_vm15 = vcmask 711680   ;;  %2107 = vmatpush.msrb.mxu2 %v2001_v58  ;;  %v2036_v0 = vld [vmem:[%s3768_s8 + $0x238] sm:$0xff] }
 0x568   : > { %2088 = vmatpush.msrb.mxu1 %v1984_v61  ;;  %2144 = vmatpush.msra.mxu3 %v2036_v0 }
 0x569   : > { %2108 = vmatpush.msrb.mxu2 %v2000_v62 }
 0x56a   : > { %2089 = vmatpush.msrb.mxu1 %v1983_v24  ;;  %2145 = vmatpush.msra.mxu3 %v2035_v5 }
 0x56b   : > { %2109 = vmatpush.msrb.mxu2 %v1999_v1  ;;  %v2188_v1 = vld [vmem:[%s3771_s11] sm:$0x1] }
 0x56c   : > { %2090 = vmatpush.msrb.mxu1 %v1982_v6  ;;  %2146 = vmatpush.msra.mxu3 %v2034_v8 }
 0x56d   : > { %2110 = vmatpush.msrb.mxu2 %v1998_v7 }
 0x56e   : > { %v1881_v16 = vpop.permute.xlu1 %1880  ;;  %v1914_v12 = vpop.permute.xlu2 %1913  ;;  %2091 = vmatpush.msrb.mxu1 %v1981_v9  ;;  %2147 = vmatpush.msra.mxu3 %v2033_v4 }
 0x56f   : > { %1886 = vst.msk [vmem:[#allocation6 + $0x1] sm:$0x1] %vm1885_vm5, %v1881_v16  ;;  %v1915_v20 = vrot.slane %v1914_v12, 7  ;;  %v1997_v16 = vld [vmem:[%s3768_s8 + $0x100] sm:$0xff]  ;;  %vm1950_vm5 = vcmp.ge.s32.totalorder %v1838_v14, 106 }
 0x570   : > { %1899 = vst.msk [vmem:[#allocation6 + $0x1] sm:$0x3] %vm1898_vm6, %v1894_v13  ;;  %v2013_v13 = vld [vmem:[%s3768_s8 + $0x180] sm:$0xff]  ;;  %2111 = vmatpush.msrb.mxu2 %v1997_v16  ;;  %2148 = vmatpush.msra.mxu3 %v2032_v18  ;;  %vm1951_vm6 = vcmp.lt.s32.totalorder %v1838_v14, 155 }
 0x571   : > { %v1917_v55 = vsel %vm1916_vm15, %v1915_v20, %v1914_v12  ;;  %2131 = vmatpush.msrb.mxu0 %v2013_v13  ;;  %vm1952_vm9 = vmand %vm1950_vm5, %vm1951_vm6  ;;  %v2185_v12 = vld [vmem:[%s3770_s10 + $0x50] sm:$0xff] }
 0x572   : > { %2149 = vmatpush.msra.mxu3 %v2031_v19 }
 0x574   : > { %2150 = vmatpush.msra.mxu3 %v2030_v27 }
 0x576   : > { %v1925_v57 = vpop.permute.xlu2 %1924  ;;  %2151 = vmatpush.msra.mxu3 %v2029_v29 }
 0x57e   : > { %v1904_v40 = vpop.permute.xlu0 %1903 }
 0x57f   : > { %1909 = vst.msk [vmem:[#allocation6 + $0x2] sm:$0x1] %vm1908_vm13, %v1904_v40  ;;  %vm1960_vm13 = vcmp.ge.s32.totalorder %v1838_v14, 27  ;;  %v2187_v14 = vld [vmem:[%s3770_s10 + $0x60] sm:$0xf]  ;;  %v2176_v40 = vld [vmem:[%s3770_s10 + $0x8] sm:$0xff] }
 0x580   : > { %1922 = vst.msk [vmem:[#allocation6 + $0x2] sm:$0x3] %vm1921_vm0, %v1917_v55  ;;  %vm1962_vm7 = vmand %vm1960_vm13, %vm1961_vm14  ;;  %2345 = vmatpush.msk.msra.mxu1 %vm1084_vm11, %v2187_v14  ;;  %vm2189_vm0 = vcmask 818176  }
 0x581   : > { %1930 = vst.msk [vmem:[#allocation6 + $0x3] sm:$0x1] %vm1929_vm1, %v1925_v57 }
 0x582   : > { %2200 = vmatpush.msra.mxu1 %v2186_v41 }
 0x584   : > { %2201 = vmatpush.msra.mxu1 %v2185_v12 }
 0x586   : > { %2202 = vmatpush.msra.mxu1 %v2184_v26 }
 0x588   : > { %2203 = vmatpush.msra.mxu1 %v2183_v43 }
 0x58a   : > { %2204 = vmatpush.msra.mxu1 %v2182_v44 }
 0x58c   : > { %2205 = vmatpush.msra.mxu1 %v2181_v45 }
 0x58e   : > { %v1935_v21 = vpop.permute.xlu0 %1934  ;;  %2206 = vmatpush.msra.mxu1 %v2180_v30 }
 0x58f   : > { %1940 = vst.msk [vmem:[#allocation6 + $0x3] sm:$0x1] %vm1939_vm4, %v1935_v21 }
 0x590   : > { %2207 = vmatpush.msra.mxu1 %v2179_v47 }
 0x592   : > { %2208 = vmatpush.msra.mxu1 %v2178_v50 }
 0x594   : > { %2209 = vmatpush.msra.mxu1 %v2177_v53 }
 0x596   : > { %v1945_v31 = vpop.permute.xlu1 %1944  ;;  %2210 = vmatpush.msra.mxu1 %v2176_v40 }
 0x597   : > { %v1946_v25 = vrot.slane %v1945_v31, 7 }
 0x598   : > { %2211 = vmatpush.msra.mxu1 %v2175_v54 }
 0x599   : > { %v1948_v33 = vsel %vm1947_vm8, %v1946_v25, %v1945_v31 }
 0x59a   : > { %1953 = vst.msk [vmem:[#allocation6 + $0x3] sm:$0x3] %vm1952_vm9, %v1948_v33 }
 0x59e   : > { %v1958_v36 = vpop.permute.xlu1 %1957 }
 0x59f   : > { %1963 = vst.msk [vmem:[#allocation6 + $0x4] sm:$0x1] %vm1962_vm7, %v1958_v36 }
 0x5a6   : > { %v1964_v37 = vld [vmem:[#allocation6] sm:$0x1f] }
 0x5a7   : > { %v2041_v15 = vperm.slane %v1964_v37, 0  ;;  %v2042_v10 = vperm.slane %v1964_v37, 1  ;;  %v2043_v38 = vperm.slane %v1964_v37, 2  ;;  %v2044_v11 = vperm.slane %v1964_v37, 3 }
 0x5a8   : > { %v2045_v39 = vperm.slane %v1964_v37, 4 }
 0x5a9   : > { %2072 = vmatmul.f32.vlgmr.msrb.gmra.mxu3 %v2041_v15  ;;  %2092 = vmatmul.f32.vlgmr.msrb.gmra.mxu1 %v2042_v10 }
 0x5aa   : > { %2112 = vmatmul.f32.vlgmr.msrb.gmra.mxu2 %v2043_v38  ;;  %2132 = vmatmul.f32.vlgmr.msrb.gmra.mxu0 %v2044_v11 }
 0x5b1   : > { %2343 = vmatmul.msk.f32.vlgmr.msra.gmra.mxu3 %vm2050_vm10, %v2045_v39 }
 0x626   : > { %v2093_v20 = vpop.f32.mrf.mxu1 }
 0x627   : > { %v2133_v51 = vpop.f32.mrf.mxu0 }
 0x62c   : > { %v2073_v28 = vpop.f32.mrf.mxu3 }
 0x62d   : > { %v2074_v22 = vadd.f32 %v2073_v28, %v2039_v34  ;;  %v2113_v48 = vpop.f32.mrf.mxu2 }
 0x62f   : > { %v2094_v46 = vadd.f32 %v2093_v20, %v2074_v22 }
 0x631   : > { %v2114_v49 = vadd.f32 %v2113_v48, %v2094_v46 }
 0x633   : > { %v2134_v52 = vadd.f32 %v2133_v51, %v2114_v49 }
 0x634   : > { %v2153_v32 = vpop.f32.mrf.mxu3 }
 0x635   : > { %v2154_v35 = vadd.f32 %v2153_v32, %v2134_v52 }
 0x637   : > { %v2344_v42 = vmul.f32 -1.442695, %v2154_v35 }
 0x639   : > { %2514 = vpow2.f32 %v2344_v42 }
 0x63f   : > { %v2515_v55 = vpop.eup %2514 }
 0x640   : > { %v2159_v23 = vadd.f32 1.0, %v2515_v55 }
 0x642   : > { %2516 = vrcp.f32 %v2159_v23  ;;  %v2171_v59 = vand.u32 2147483648, %v2159_v23  ;;  %v2169_v61 = vand.u32 2147483647, %v2159_v23  ;;  %vm2165_vm12 = vweird.f32 %v2159_v23 }
 0x644   : > { %v2172_v63 = vor.u32 1.1754944e-38, %v2171_v59  ;;  %vm2170_vm1 = vcmp.eq.f32.partialorder %v2169_v61, 8.507059e+37 }
 0x648   : > { %v2517_v56 = vpop.eup %2516 }
 0x649   : > { %v2161_v57 = vmul.f32 %v2517_v56, %v2159_v23  ;;  %vm2166_vm11 = vweird.f32 %v2517_v56 }
 0x64a   : > { %vm2167_vm15 = vmor %vm2165_vm12, %vm2166_vm11 }
 0x64b   : > { %v2162_v58 = vsub.f32 1.0, %v2161_v57 }
 0x64d   : > { %v2163_v60 = vmul.f32 %v2517_v56, %v2162_v58 }
 0x64f   : > { %v2164_v62 = vadd.f32 %v2517_v56, %v2163_v60 }
 0x651   : > { %v2168_v0 = vsel %vm2167_vm15, %v2517_v56, %v2164_v62 }
 0x652   : > { %v2173_v24 = vsel %vm2170_vm1, %v2172_v63, %v2168_v0 }
 0x653   : > { %2346 = vmatmul.msk.f32.vlgmr.msra.gmra.mxu1 %vm2189_vm0, %v2173_v24 }
 0x6d0   : > { %v2213_v2 = vpop.f32.mrf.mxu1 }
 0x6d1   : > { %v2214_v5 = vadd.f32 %v2213_v2, %v2188_v1 }
 0x6d3   : > { %2217 = vst.msk [vmem:[%s405_s17] sm:$0x1] %vm2216_vm2, %v2214_v5 }
 0x6d4   : > { %2545 = shalt.err (!%p2542_p3)
}
 0x6d5   : > { %2350 = dma.vmem_to_hbm [thread:$0]  (%p2740_p5), %s2230_s18, 16, %s2232_s15, %s2219_s3  }
 0x6d6 PF: > { %p2356_p4 = scmp.ge.s32.totalorder %s2580_s24, 2  ;;  %s2243_s26 = sand.u32 1, %s2568_s21  }
 0x6d7   : > { %s2244_s20 = scalar_lea.sflag [#allocation8], %s2243_s26 }
 0x6d8   : > { %p2353_p7 = pnand %p2356_p4, %p2744_p6 }
 0x6da   : > { %p2354_p8 = pneg %p2353_p7 }
 0x6dc   : > { %2563 = dma.done.wait (%p2354_p8), %s2244_s20, 16  }
 0x6dd   : > { %2565 = vsyncadd (%p2354_p8), %s2244_s20, 4294967280  ;;  %p22_p9 = scmp.ge.s32.totalorder %s2727_s27, 4   ;;  %s3853_s21 = smov %s2572_s22 }
 0x6de   : > { %s3854_s22 = smov %s2576_s23  ;;  %s3855_s23 = smov %s2738_s30 }
 0x6df   : > { %s3856_s24 = smov %s2727_s27  ;;  %24 = sbr.rel (!%p22_p9) target bundleno = 7 (0x7), region = 119 }
 0x6e4   :  { %2249 = vsyncpa [#allocation8], 1 }
 0x6e5   :  { %2251 = vsyncpa [#allocation8 + $0x1], 1 }

</bundles_post_ra>
